<compile_context>
chip_gen: v6e
topology: v6e:2x2x1
jax: 0.10.0
libtpu: 0.0.40
codegen_flags: <defaults>
</compile_context>

<pallas_src>
import math

import jax
import jax.numpy as jnp
from jax.experimental import pallas as pl
from jax.experimental.pallas import tpu as pltpu

EPS = 1e-5


def simsiam_kernel(
    x0_ref, x1_ref,              # (B, feat_in) f32 — the two flattened views
    wb_ref,                      # (feat_in, dim) bf16 backbone weight
    w1_ref, w2_ref, w3_ref,      # (dim, dim) bf16 encoder weights
    pw1_ref,                     # (dim, pred_dim) bf16 predictor weight 1
    pw2_ref,                     # (pred_dim, dim) bf16 predictor weight 2
    vd_ref,                      # (8, dim) f32: [bb, g1, be1, g2, be2, g3, be3, pb2]
    vp_ref,                      # (2, pred_dim) f32: [pg1, pbe1]
    p_ref, z_ref,                # outputs (2B, dim) f32: prediction p, projection z
):
    B = x0_ref.shape[0]

    # Packed per-feature vectors: one vector load each, sliced into rows.
    vd = vd_ref[...]
    bb, g1, be1 = vd[0:1], vd[1:2], vd[2:3]
    g2, be2, g3, be3, pb2 = vd[3:4], vd[4:5], vd[5:6], vd[6:7], vd[7:8]
    vp = vp_ref[...]
    pg1, pbe1 = vp[0:1], vp[1:2]

    def lin(a, w_ref):
        # Cast activation to bf16 right before the MXU (VPU cast co-issues).
        return jnp.dot(a.astype(jnp.bfloat16), w_ref[...],
                       preferred_element_type=jnp.float32)

    def bn(h, gamma, beta, relu):
        # Training-mode BatchNorm with PER-VIEW batch statistics; h is (2B, N)
        # with view0 in rows [:B] and view1 in rows [B:].
        def one(hv):
            mean = jnp.mean(hv, axis=0, keepdims=True)
            msq = jnp.mean(hv * hv, axis=0, keepdims=True)
            var = jnp.maximum(msq - mean * mean, 0.0)       # biased var (PyTorch fwd)
            scale = gamma * jax.lax.rsqrt(var + EPS)
            shift = beta - mean * scale
            out = hv * scale + shift
            return jnp.maximum(out, 0.0) if relu else out
        return jnp.concatenate([one(h[:B]), one(h[B:])], axis=0)

    # ---- backbone: single M = 2B matmul over the merged views ----
    x = jnp.concatenate([x0_ref[...], x1_ref[...]], axis=0)     # (2B, feat_in) f32
    f = jnp.maximum(lin(x, wb_ref) + bb, 0.0)

    # ---- projection head (encoder) ----
    h = bn(lin(f, w1_ref), g1, be1, relu=True)
    h = bn(lin(h, w2_ref), g2, be2, relu=True)
    z = bn(lin(h, w3_ref), g3, be3, relu=False)                 # final BN, identity affine
    z_ref[...] = z

    # ---- prediction head (predictor) ----
    q = bn(lin(z, pw1_ref), pg1, pbe1, relu=True)
    p_ref[...] = lin(q, pw2_ref) + pb2


def make_params(key, feat_in, dim, pred_dim):
    """Deterministic synthetic parameters. Linear weights stored as (in, out), bf16."""
    ks = jax.random.split(key, 6)
    s = 0.05
    bf16 = jnp.bfloat16
    f32 = jnp.float32
    return dict(
        wb=(s * jax.random.normal(ks[0], (feat_in, dim), f32)).astype(bf16),
        bb=jnp.zeros((dim,), f32),
        w1=(s * jax.random.normal(ks[1], (dim, dim), f32)).astype(bf16),
        g1=jnp.ones((dim,), f32),
        be1=jnp.zeros((dim,), f32),
        w2=(s * jax.random.normal(ks[2], (dim, dim), f32)).astype(bf16),
        g2=jnp.ones((dim,), f32),
        be2=jnp.zeros((dim,), f32),
        w3=(s * jax.random.normal(ks[3], (dim, dim), f32)).astype(bf16),
        g3=jnp.ones((dim,), f32),        # final BN: affine=False => gamma=1
        be3=jnp.zeros((dim,), f32),      #                        => beta=0
        pw1=(s * jax.random.normal(ks[4], (dim, pred_dim), f32)).astype(bf16),
        pg1=jnp.ones((pred_dim,), f32),
        pbe1=jnp.zeros((pred_dim,), f32),
        pw2=(s * jax.random.normal(ks[5], (pred_dim, dim), f32)).astype(bf16),
        pb2=jnp.zeros((dim,), f32),
    )


def simsiam_forward(x0_nchw, x1_nchw, params, dim, pred_dim):
    """Both views through backbone + encoder + predictor in ONE gridless pallas_call."""
    B = x0_nchw.shape[0]
    feat_in = math.prod(x0_nchw.shape[1:])
    assert B % 8 == 0, "batch must be a multiple of 8 (f32 sublane)"
    assert dim % 128 == 0 and pred_dim % 128 == 0 and feat_in % 128 == 0

    # Glue: flatten(start_dim=1); kept f32 — the bf16 cast happens inside the kernel.
    x0f = x0_nchw.reshape(B, feat_in)
    x1f = x1_nchw.reshape(B, feat_in)

    # Pack the nine tiny per-feature vectors into two stacked arrays (one DMA each).
    vd = jnp.stack([params["bb"], params["g1"], params["be1"],
                    params["g2"], params["be2"], params["g3"], params["be3"],
                    params["pb2"]], axis=0)                       # (8, dim) f32
    vp = jnp.stack([params["pg1"], params["pbe1"]], axis=0)       # (2, pred_dim) f32

    # Everything must be VMEM-resident in this collapsed (grid-free) kernel.
    resident_bytes = (
        2 * B * feat_in * 4                       # f32 views
        + (feat_in * dim + 3 * dim * dim + 2 * dim * pred_dim) * 2   # bf16 weights
        + (vd.size + vp.size) * 4                 # packed f32 vectors
        + 2 * 2 * B * dim * 4                     # f32 outputs p, z
    )
    assert resident_bytes < 40 * 1024 * 1024, (
        "fully-resident kernel would exceed VMEM; re-enable the K-streamed backbone")

    flops = int(2 * (2 * B) * (feat_in * dim + 3 * dim * dim + 2 * dim * pred_dim))
    transcendentals = int(2 * (3 * dim + pred_dim))   # rsqrt per BN feature per view
    cost = pl.CostEstimate(flops=flops, transcendentals=transcendentals,
                           bytes_accessed=int(resident_bytes))

    p, z = pl.pallas_call(
        simsiam_kernel,
        out_shape=(
            jax.ShapeDtypeStruct((2 * B, dim), jnp.float32),   # p (both views)
            jax.ShapeDtypeStruct((2 * B, dim), jnp.float32),   # z (both views)
        ),
        compiler_params=pltpu.CompilerParams(
            vmem_limit_bytes=48 * 1024 * 1024,   # safe on v5e/v6e/v7x, ample headroom
        ),
        cost_estimate=cost,
    )(
        x0f, x1f,
        params["wb"],
        params["w1"], params["w2"], params["w3"],
        params["pw1"], params["pw2"],
        vd, vp,
    )

    # z.detach() has identical forward values; stop_gradient mirrors detach.
    return ((p[:B], jax.lax.stop_gradient(z[:B])),
            (p[B:], jax.lax.stop_gradient(z[B:])))


if __name__ == "__main__":
    # Small but hardware-aligned shapes: batch multiple of 8 (f32 sublane),
    # dim / pred_dim multiples of 128 (lane), pred_dim = dim / 4 as in the module.
    B, C, H, W = 8, 4, 16, 16            # feat_in = 1024
    DIM, PRED_DIM = 512, 128
    FEAT_IN = C * H * W

    key = jax.random.PRNGKey(0)
    k_x0, k_x1, k_p = jax.random.split(key, 3)
    x0 = jax.random.normal(k_x0, (B, C, H, W), jnp.float32)
    x1 = jax.random.normal(k_x1, (B, C, H, W), jnp.float32)
    params = make_params(k_p, FEAT_IN, DIM, PRED_DIM)

    (p0, z0), (p1, z1) = simsiam_forward(x0, x1, params, DIM, PRED_DIM)
    jax.block_until_ready((p0, z0, p1, z1))

    assert p0.shape == (B, DIM) and z0.shape == (B, DIM)
    assert p1.shape == (B, DIM) and z1.shape == (B, DIM)
    assert bool(jnp.all(jnp.isfinite(p0))) and bool(jnp.all(jnp.isfinite(z0)))
    print("KERNEL_OK")
</pallas_src>

<mosaic_0001>
module attributes {stable_mosaic.version = 11 : i64} {
  func.func @simsiam_kernel(%arg0: memref<8x1024xf32, #tpu.memory_space<vmem>>, %arg1: memref<8x1024xf32, #tpu.memory_space<vmem>>, %arg2: memref<1024x512xbf16, #tpu.memory_space<vmem>>, %arg3: memref<512x512xbf16, #tpu.memory_space<vmem>>, %arg4: memref<512x512xbf16, #tpu.memory_space<vmem>>, %arg5: memref<512x512xbf16, #tpu.memory_space<vmem>>, %arg6: memref<512x128xbf16, #tpu.memory_space<vmem>>, %arg7: memref<128x512xbf16, #tpu.memory_space<vmem>>, %arg8: memref<8x512xf32, #tpu.memory_space<vmem>>, %arg9: memref<2x128xf32, #tpu.memory_space<vmem>>, %arg10: memref<16x512xf32, #tpu.memory_space<vmem>>, %arg11: memref<16x512xf32, #tpu.memory_space<vmem>>) attributes {dimension_semantics = [], scalar_prefetch = 0 : i64, scratch_operands = 0 : i64, tpu.core_type = #tpu.core_type<tc>} {
    %c0 = arith.constant 0 : index
    %c0_0 = arith.constant 0 : index
    %0 = vector.load %arg8[%c0, %c0_0] : memref<8x512xf32, #tpu.memory_space<vmem>>, vector<8x512xf32>
    %1 = vector.extract_strided_slice %0 {offsets = [0, 0], sizes = [1, 512], strides = [1, 1]} : vector<8x512xf32> to vector<1x512xf32>
    %2 = vector.extract_strided_slice %0 {offsets = [1, 0], sizes = [1, 512], strides = [1, 1]} : vector<8x512xf32> to vector<1x512xf32>
    %3 = vector.extract_strided_slice %0 {offsets = [2, 0], sizes = [1, 512], strides = [1, 1]} : vector<8x512xf32> to vector<1x512xf32>
    %4 = vector.extract_strided_slice %0 {offsets = [3, 0], sizes = [1, 512], strides = [1, 1]} : vector<8x512xf32> to vector<1x512xf32>
    %5 = vector.extract_strided_slice %0 {offsets = [4, 0], sizes = [1, 512], strides = [1, 1]} : vector<8x512xf32> to vector<1x512xf32>
    %6 = vector.extract_strided_slice %0 {offsets = [5, 0], sizes = [1, 512], strides = [1, 1]} : vector<8x512xf32> to vector<1x512xf32>
    %7 = vector.extract_strided_slice %0 {offsets = [6, 0], sizes = [1, 512], strides = [1, 1]} : vector<8x512xf32> to vector<1x512xf32>
    %8 = vector.extract_strided_slice %0 {offsets = [7, 0], sizes = [1, 512], strides = [1, 1]} : vector<8x512xf32> to vector<1x512xf32>
    %c0_1 = arith.constant 0 : index
    %c0_2 = arith.constant 0 : index
    %9 = vector.load %arg9[%c0_1, %c0_2] : memref<2x128xf32, #tpu.memory_space<vmem>>, vector<2x128xf32>
    %10 = vector.extract_strided_slice %9 {offsets = [0, 0], sizes = [1, 128], strides = [1, 1]} : vector<2x128xf32> to vector<1x128xf32>
    %11 = vector.extract_strided_slice %9 {offsets = [1, 0], sizes = [1, 128], strides = [1, 1]} : vector<2x128xf32> to vector<1x128xf32>
    %c0_3 = arith.constant 0 : index
    %c0_4 = arith.constant 0 : index
    %12 = vector.load %arg0[%c0_3, %c0_4] : memref<8x1024xf32, #tpu.memory_space<vmem>>, vector<8x1024xf32>
    %c0_5 = arith.constant 0 : index
    %c0_6 = arith.constant 0 : index
    %13 = vector.load %arg1[%c0_5, %c0_6] : memref<8x1024xf32, #tpu.memory_space<vmem>>, vector<8x1024xf32>
    %14 = tpu.concatenate %12, %13 in 0 : vector<8x1024xf32>, vector<8x1024xf32> -> vector<16x1024xf32>
    %15 = arith.truncf %14 : vector<16x1024xf32> to vector<16x1024xbf16>
    %c0_7 = arith.constant 0 : index
    %c0_8 = arith.constant 0 : index
    %16 = vector.load %arg2[%c0_7, %c0_8] : memref<1024x512xbf16, #tpu.memory_space<vmem>>, vector<1024x512xbf16>
    %cst = arith.constant dense<0.000000e+00> : vector<16x512xf32>
    %17 = tpu.matmul %15, %16, %cst {dimension_numbers = #tpu.dot_dimension_numbers<[1], [0], [0], [1], [0, 0, 1, 1], [], []>} : vector<16x1024xbf16>, vector<1024x512xbf16>, vector<16x512xf32> -> vector<16x512xf32>
    %18 = vector.broadcast %1 : vector<1x512xf32> to vector<16x512xf32>
    %19 = arith.addf %17, %18 : vector<16x512xf32>
    %cst_9 = arith.constant 0.000000e+00 : f32
    %20 = vector.broadcast %cst_9 : f32 to vector<16x512xf32>
    %21 = arith.maximumf %19, %20 : vector<16x512xf32>
    %22 = arith.truncf %21 : vector<16x512xf32> to vector<16x512xbf16>
    %c0_10 = arith.constant 0 : index
    %c0_11 = arith.constant 0 : index
    %23 = vector.load %arg3[%c0_10, %c0_11] : memref<512x512xbf16, #tpu.memory_space<vmem>>, vector<512x512xbf16>
    %cst_12 = arith.constant dense<0.000000e+00> : vector<16x512xf32>
    %24 = tpu.matmul %22, %23, %cst_12 {dimension_numbers = #tpu.dot_dimension_numbers<[1], [0], [0], [1], [0, 0, 1, 1], [], []>} : vector<16x512xbf16>, vector<512x512xbf16>, vector<16x512xf32> -> vector<16x512xf32>
    %25 = vector.extract_strided_slice %24 {offsets = [0, 0], sizes = [8, 512], strides = [1, 1]} : vector<16x512xf32> to vector<8x512xf32>
    %cst_13 = arith.constant dense<0.000000e+00> : vector<512xf32>
    %26 = vector.multi_reduction <add>, %25, %cst_13 [0] : vector<8x512xf32> to vector<512xf32>
    %27 = vector.shape_cast %26 : vector<512xf32> to vector<1x512xf32>
    %cst_14 = arith.constant 8.000000e+00 : f32
    %28 = vector.broadcast %cst_14 : f32 to vector<1x512xf32>
    %29 = arith.divf %27, %28 : vector<1x512xf32>
    %30 = arith.mulf %25, %25 : vector<8x512xf32>
    %cst_15 = arith.constant dense<0.000000e+00> : vector<512xf32>
    %31 = vector.multi_reduction <add>, %30, %cst_15 [0] : vector<8x512xf32> to vector<512xf32>
    %32 = vector.shape_cast %31 : vector<512xf32> to vector<1x512xf32>
    %cst_16 = arith.constant 8.000000e+00 : f32
    %33 = vector.broadcast %cst_16 : f32 to vector<1x512xf32>
    %34 = arith.divf %32, %33 : vector<1x512xf32>
    %35 = arith.mulf %29, %29 : vector<1x512xf32>
    %36 = arith.subf %34, %35 : vector<1x512xf32>
    %cst_17 = arith.constant 0.000000e+00 : f32
    %37 = vector.broadcast %cst_17 : f32 to vector<1x512xf32>
    %38 = arith.maximumf %36, %37 : vector<1x512xf32>
    %cst_18 = arith.constant 9.99999974E-6 : f32
    %39 = vector.broadcast %cst_18 : f32 to vector<1x512xf32>
    %40 = arith.addf %38, %39 : vector<1x512xf32>
    %41 = math.rsqrt %40 : vector<1x512xf32>
    %42 = arith.mulf %2, %41 : vector<1x512xf32>
    %43 = arith.mulf %29, %42 : vector<1x512xf32>
    %44 = arith.subf %3, %43 : vector<1x512xf32>
    %45 = vector.broadcast %42 : vector<1x512xf32> to vector<8x512xf32>
    %46 = arith.mulf %25, %45 : vector<8x512xf32>
    %47 = vector.broadcast %44 : vector<1x512xf32> to vector<8x512xf32>
    %48 = arith.addf %46, %47 : vector<8x512xf32>
    %cst_19 = arith.constant 0.000000e+00 : f32
    %49 = vector.broadcast %cst_19 : f32 to vector<8x512xf32>
    %50 = arith.maximumf %48, %49 : vector<8x512xf32>
    %51 = vector.extract_strided_slice %24 {offsets = [8, 0], sizes = [8, 512], strides = [1, 1]} : vector<16x512xf32> to vector<8x512xf32>
    %cst_20 = arith.constant dense<0.000000e+00> : vector<512xf32>
    %52 = vector.multi_reduction <add>, %51, %cst_20 [0] : vector<8x512xf32> to vector<512xf32>
    %53 = vector.shape_cast %52 : vector<512xf32> to vector<1x512xf32>
    %cst_21 = arith.constant 8.000000e+00 : f32
    %54 = vector.broadcast %cst_21 : f32 to vector<1x512xf32>
    %55 = arith.divf %53, %54 : vector<1x512xf32>
    %56 = arith.mulf %51, %51 : vector<8x512xf32>
    %cst_22 = arith.constant dense<0.000000e+00> : vector<512xf32>
    %57 = vector.multi_reduction <add>, %56, %cst_22 [0] : vector<8x512xf32> to vector<512xf32>
    %58 = vector.shape_cast %57 : vector<512xf32> to vector<1x512xf32>
    %cst_23 = arith.constant 8.000000e+00 : f32
    %59 = vector.broadcast %cst_23 : f32 to vector<1x512xf32>
    %60 = arith.divf %58, %59 : vector<1x512xf32>
    %61 = arith.mulf %55, %55 : vector<1x512xf32>
    %62 = arith.subf %60, %61 : vector<1x512xf32>
    %cst_24 = arith.constant 0.000000e+00 : f32
    %63 = vector.broadcast %cst_24 : f32 to vector<1x512xf32>
    %64 = arith.maximumf %62, %63 : vector<1x512xf32>
    %cst_25 = arith.constant 9.99999974E-6 : f32
    %65 = vector.broadcast %cst_25 : f32 to vector<1x512xf32>
    %66 = arith.addf %64, %65 : vector<1x512xf32>
    %67 = math.rsqrt %66 : vector<1x512xf32>
    %68 = arith.mulf %2, %67 : vector<1x512xf32>
    %69 = arith.mulf %55, %68 : vector<1x512xf32>
    %70 = arith.subf %3, %69 : vector<1x512xf32>
    %71 = vector.broadcast %68 : vector<1x512xf32> to vector<8x512xf32>
    %72 = arith.mulf %51, %71 : vector<8x512xf32>
    %73 = vector.broadcast %70 : vector<1x512xf32> to vector<8x512xf32>
    %74 = arith.addf %72, %73 : vector<8x512xf32>
    %cst_26 = arith.constant 0.000000e+00 : f32
    %75 = vector.broadcast %cst_26 : f32 to vector<8x512xf32>
    %76 = arith.maximumf %74, %75 : vector<8x512xf32>
    %77 = tpu.concatenate %50, %76 in 0 : vector<8x512xf32>, vector<8x512xf32> -> vector<16x512xf32>
    %78 = arith.truncf %77 : vector<16x512xf32> to vector<16x512xbf16>
    %c0_27 = arith.constant 0 : index
    %c0_28 = arith.constant 0 : index
    %79 = vector.load %arg4[%c0_27, %c0_28] : memref<512x512xbf16, #tpu.memory_space<vmem>>, vector<512x512xbf16>
    %cst_29 = arith.constant dense<0.000000e+00> : vector<16x512xf32>
    %80 = tpu.matmul %78, %79, %cst_29 {dimension_numbers = #tpu.dot_dimension_numbers<[1], [0], [0], [1], [0, 0, 1, 1], [], []>} : vector<16x512xbf16>, vector<512x512xbf16>, vector<16x512xf32> -> vector<16x512xf32>
    %81 = vector.extract_strided_slice %80 {offsets = [0, 0], sizes = [8, 512], strides = [1, 1]} : vector<16x512xf32> to vector<8x512xf32>
    %cst_30 = arith.constant dense<0.000000e+00> : vector<512xf32>
    %82 = vector.multi_reduction <add>, %81, %cst_30 [0] : vector<8x512xf32> to vector<512xf32>
    %83 = vector.shape_cast %82 : vector<512xf32> to vector<1x512xf32>
    %cst_31 = arith.constant 8.000000e+00 : f32
    %84 = vector.broadcast %cst_31 : f32 to vector<1x512xf32>
    %85 = arith.divf %83, %84 : vector<1x512xf32>
    %86 = arith.mulf %81, %81 : vector<8x512xf32>
    %cst_32 = arith.constant dense<0.000000e+00> : vector<512xf32>
    %87 = vector.multi_reduction <add>, %86, %cst_32 [0] : vector<8x512xf32> to vector<512xf32>
    %88 = vector.shape_cast %87 : vector<512xf32> to vector<1x512xf32>
    %cst_33 = arith.constant 8.000000e+00 : f32
    %89 = vector.broadcast %cst_33 : f32 to vector<1x512xf32>
    %90 = arith.divf %88, %89 : vector<1x512xf32>
    %91 = arith.mulf %85, %85 : vector<1x512xf32>
    %92 = arith.subf %90, %91 : vector<1x512xf32>
    %cst_34 = arith.constant 0.000000e+00 : f32
    %93 = vector.broadcast %cst_34 : f32 to vector<1x512xf32>
    %94 = arith.maximumf %92, %93 : vector<1x512xf32>
    %cst_35 = arith.constant 9.99999974E-6 : f32
    %95 = vector.broadcast %cst_35 : f32 to vector<1x512xf32>
    %96 = arith.addf %94, %95 : vector<1x512xf32>
    %97 = math.rsqrt %96 : vector<1x512xf32>
    %98 = arith.mulf %4, %97 : vector<1x512xf32>
    %99 = arith.mulf %85, %98 : vector<1x512xf32>
    %100 = arith.subf %5, %99 : vector<1x512xf32>
    %101 = vector.broadcast %98 : vector<1x512xf32> to vector<8x512xf32>
    %102 = arith.mulf %81, %101 : vector<8x512xf32>
    %103 = vector.broadcast %100 : vector<1x512xf32> to vector<8x512xf32>
    %104 = arith.addf %102, %103 : vector<8x512xf32>
    %cst_36 = arith.constant 0.000000e+00 : f32
    %105 = vector.broadcast %cst_36 : f32 to vector<8x512xf32>
    %106 = arith.maximumf %104, %105 : vector<8x512xf32>
    %107 = vector.extract_strided_slice %80 {offsets = [8, 0], sizes = [8, 512], strides = [1, 1]} : vector<16x512xf32> to vector<8x512xf32>
    %cst_37 = arith.constant dense<0.000000e+00> : vector<512xf32>
    %108 = vector.multi_reduction <add>, %107, %cst_37 [0] : vector<8x512xf32> to vector<512xf32>
    %109 = vector.shape_cast %108 : vector<512xf32> to vector<1x512xf32>
    %cst_38 = arith.constant 8.000000e+00 : f32
    %110 = vector.broadcast %cst_38 : f32 to vector<1x512xf32>
    %111 = arith.divf %109, %110 : vector<1x512xf32>
    %112 = arith.mulf %107, %107 : vector<8x512xf32>
    %cst_39 = arith.constant dense<0.000000e+00> : vector<512xf32>
    %113 = vector.multi_reduction <add>, %112, %cst_39 [0] : vector<8x512xf32> to vector<512xf32>
    %114 = vector.shape_cast %113 : vector<512xf32> to vector<1x512xf32>
    %cst_40 = arith.constant 8.000000e+00 : f32
    %115 = vector.broadcast %cst_40 : f32 to vector<1x512xf32>
    %116 = arith.divf %114, %115 : vector<1x512xf32>
    %117 = arith.mulf %111, %111 : vector<1x512xf32>
    %118 = arith.subf %116, %117 : vector<1x512xf32>
    %cst_41 = arith.constant 0.000000e+00 : f32
    %119 = vector.broadcast %cst_41 : f32 to vector<1x512xf32>
    %120 = arith.maximumf %118, %119 : vector<1x512xf32>
    %cst_42 = arith.constant 9.99999974E-6 : f32
    %121 = vector.broadcast %cst_42 : f32 to vector<1x512xf32>
    %122 = arith.addf %120, %121 : vector<1x512xf32>
    %123 = math.rsqrt %122 : vector<1x512xf32>
    %124 = arith.mulf %4, %123 : vector<1x512xf32>
    %125 = arith.mulf %111, %124 : vector<1x512xf32>
    %126 = arith.subf %5, %125 : vector<1x512xf32>
    %127 = vector.broadcast %124 : vector<1x512xf32> to vector<8x512xf32>
    %128 = arith.mulf %107, %127 : vector<8x512xf32>
    %129 = vector.broadcast %126 : vector<1x512xf32> to vector<8x512xf32>
    %130 = arith.addf %128, %129 : vector<8x512xf32>
    %cst_43 = arith.constant 0.000000e+00 : f32
    %131 = vector.broadcast %cst_43 : f32 to vector<8x512xf32>
    %132 = arith.maximumf %130, %131 : vector<8x512xf32>
    %133 = tpu.concatenate %106, %132 in 0 : vector<8x512xf32>, vector<8x512xf32> -> vector<16x512xf32>
    %134 = arith.truncf %133 : vector<16x512xf32> to vector<16x512xbf16>
    %c0_44 = arith.constant 0 : index
    %c0_45 = arith.constant 0 : index
    %135 = vector.load %arg5[%c0_44, %c0_45] : memref<512x512xbf16, #tpu.memory_space<vmem>>, vector<512x512xbf16>
    %cst_46 = arith.constant dense<0.000000e+00> : vector<16x512xf32>
    %136 = tpu.matmul %134, %135, %cst_46 {dimension_numbers = #tpu.dot_dimension_numbers<[1], [0], [0], [1], [0, 0, 1, 1], [], []>} : vector<16x512xbf16>, vector<512x512xbf16>, vector<16x512xf32> -> vector<16x512xf32>
    %137 = vector.extract_strided_slice %136 {offsets = [0, 0], sizes = [8, 512], strides = [1, 1]} : vector<16x512xf32> to vector<8x512xf32>
    %cst_47 = arith.constant dense<0.000000e+00> : vector<512xf32>
    %138 = vector.multi_reduction <add>, %137, %cst_47 [0] : vector<8x512xf32> to vector<512xf32>
    %139 = vector.shape_cast %138 : vector<512xf32> to vector<1x512xf32>
    %cst_48 = arith.constant 8.000000e+00 : f32
    %140 = vector.broadcast %cst_48 : f32 to vector<1x512xf32>
    %141 = arith.divf %139, %140 : vector<1x512xf32>
    %142 = arith.mulf %137, %137 : vector<8x512xf32>
    %cst_49 = arith.constant dense<0.000000e+00> : vector<512xf32>
    %143 = vector.multi_reduction <add>, %142, %cst_49 [0] : vector<8x512xf32> to vector<512xf32>
    %144 = vector.shape_cast %143 : vector<512xf32> to vector<1x512xf32>
    %cst_50 = arith.constant 8.000000e+00 : f32
    %145 = vector.broadcast %cst_50 : f32 to vector<1x512xf32>
    %146 = arith.divf %144, %145 : vector<1x512xf32>
    %147 = arith.mulf %141, %141 : vector<1x512xf32>
    %148 = arith.subf %146, %147 : vector<1x512xf32>
    %cst_51 = arith.constant 0.000000e+00 : f32
    %149 = vector.broadcast %cst_51 : f32 to vector<1x512xf32>
    %150 = arith.maximumf %148, %149 : vector<1x512xf32>
    %cst_52 = arith.constant 9.99999974E-6 : f32
    %151 = vector.broadcast %cst_52 : f32 to vector<1x512xf32>
    %152 = arith.addf %150, %151 : vector<1x512xf32>
    %153 = math.rsqrt %152 : vector<1x512xf32>
    %154 = arith.mulf %6, %153 : vector<1x512xf32>
    %155 = arith.mulf %141, %154 : vector<1x512xf32>
    %156 = arith.subf %7, %155 : vector<1x512xf32>
    %157 = vector.broadcast %154 : vector<1x512xf32> to vector<8x512xf32>
    %158 = arith.mulf %137, %157 : vector<8x512xf32>
    %159 = vector.broadcast %156 : vector<1x512xf32> to vector<8x512xf32>
    %160 = arith.addf %158, %159 : vector<8x512xf32>
    %161 = vector.extract_strided_slice %136 {offsets = [8, 0], sizes = [8, 512], strides = [1, 1]} : vector<16x512xf32> to vector<8x512xf32>
    %cst_53 = arith.constant dense<0.000000e+00> : vector<512xf32>
    %162 = vector.multi_reduction <add>, %161, %cst_53 [0] : vector<8x512xf32> to vector<512xf32>
    %163 = vector.shape_cast %162 : vector<512xf32> to vector<1x512xf32>
    %cst_54 = arith.constant 8.000000e+00 : f32
    %164 = vector.broadcast %cst_54 : f32 to vector<1x512xf32>
    %165 = arith.divf %163, %164 : vector<1x512xf32>
    %166 = arith.mulf %161, %161 : vector<8x512xf32>
    %cst_55 = arith.constant dense<0.000000e+00> : vector<512xf32>
    %167 = vector.multi_reduction <add>, %166, %cst_55 [0] : vector<8x512xf32> to vector<512xf32>
    %168 = vector.shape_cast %167 : vector<512xf32> to vector<1x512xf32>
    %cst_56 = arith.constant 8.000000e+00 : f32
    %169 = vector.broadcast %cst_56 : f32 to vector<1x512xf32>
    %170 = arith.divf %168, %169 : vector<1x512xf32>
    %171 = arith.mulf %165, %165 : vector<1x512xf32>
    %172 = arith.subf %170, %171 : vector<1x512xf32>
    %cst_57 = arith.constant 0.000000e+00 : f32
    %173 = vector.broadcast %cst_57 : f32 to vector<1x512xf32>
    %174 = arith.maximumf %172, %173 : vector<1x512xf32>
    %cst_58 = arith.constant 9.99999974E-6 : f32
    %175 = vector.broadcast %cst_58 : f32 to vector<1x512xf32>
    %176 = arith.addf %174, %175 : vector<1x512xf32>
    %177 = math.rsqrt %176 : vector<1x512xf32>
    %178 = arith.mulf %6, %177 : vector<1x512xf32>
    %179 = arith.mulf %165, %178 : vector<1x512xf32>
    %180 = arith.subf %7, %179 : vector<1x512xf32>
    %181 = vector.broadcast %178 : vector<1x512xf32> to vector<8x512xf32>
    %182 = arith.mulf %161, %181 : vector<8x512xf32>
    %183 = vector.broadcast %180 : vector<1x512xf32> to vector<8x512xf32>
    %184 = arith.addf %182, %183 : vector<8x512xf32>
    %185 = tpu.concatenate %160, %184 in 0 : vector<8x512xf32>, vector<8x512xf32> -> vector<16x512xf32>
    %c0_59 = arith.constant 0 : index
    %c0_60 = arith.constant 0 : index
    %186 = vector.load %arg11[%c0_59, %c0_60] : memref<16x512xf32, #tpu.memory_space<vmem>>, vector<16x512xf32>
    tpu.vector_store %arg11[%c0_59, %c0_60], %185 {strides = array<i32>} : memref<16x512xf32, #tpu.memory_space<vmem>>, vector<16x512xf32>,
    %187 = arith.truncf %185 : vector<16x512xf32> to vector<16x512xbf16>
    %c0_61 = arith.constant 0 : index
    %c0_62 = arith.constant 0 : index
    %188 = vector.load %arg6[%c0_61, %c0_62] : memref<512x128xbf16, #tpu.memory_space<vmem>>, vector<512x128xbf16>
    %cst_63 = arith.constant dense<0.000000e+00> : vector<16x128xf32>
    %189 = tpu.matmul %187, %188, %cst_63 {dimension_numbers = #tpu.dot_dimension_numbers<[1], [0], [0], [1], [0, 0, 1, 1], [], []>} : vector<16x512xbf16>, vector<512x128xbf16>, vector<16x128xf32> -> vector<16x128xf32>
    %190 = vector.extract_strided_slice %189 {offsets = [0, 0], sizes = [8, 128], strides = [1, 1]} : vector<16x128xf32> to vector<8x128xf32>
    %cst_64 = arith.constant dense<0.000000e+00> : vector<128xf32>
    %191 = vector.multi_reduction <add>, %190, %cst_64 [0] : vector<8x128xf32> to vector<128xf32>
    %192 = vector.shape_cast %191 : vector<128xf32> to vector<1x128xf32>
    %cst_65 = arith.constant 8.000000e+00 : f32
    %193 = vector.broadcast %cst_65 : f32 to vector<1x128xf32>
    %194 = arith.divf %192, %193 : vector<1x128xf32>
    %195 = arith.mulf %190, %190 : vector<8x128xf32>
    %cst_66 = arith.constant dense<0.000000e+00> : vector<128xf32>
    %196 = vector.multi_reduction <add>, %195, %cst_66 [0] : vector<8x128xf32> to vector<128xf32>
    %197 = vector.shape_cast %196 : vector<128xf32> to vector<1x128xf32>
    %cst_67 = arith.constant 8.000000e+00 : f32
    %198 = vector.broadcast %cst_67 : f32 to vector<1x128xf32>
    %199 = arith.divf %197, %198 : vector<1x128xf32>
    %200 = arith.mulf %194, %194 : vector<1x128xf32>
    %201 = arith.subf %199, %200 : vector<1x128xf32>
    %cst_68 = arith.constant 0.000000e+00 : f32
    %202 = vector.broadcast %cst_68 : f32 to vector<1x128xf32>
    %203 = arith.maximumf %201, %202 : vector<1x128xf32>
    %cst_69 = arith.constant 9.99999974E-6 : f32
    %204 = vector.broadcast %cst_69 : f32 to vector<1x128xf32>
    %205 = arith.addf %203, %204 : vector<1x128xf32>
    %206 = math.rsqrt %205 : vector<1x128xf32>
    %207 = arith.mulf %10, %206 : vector<1x128xf32>
    %208 = arith.mulf %194, %207 : vector<1x128xf32>
    %209 = arith.subf %11, %208 : vector<1x128xf32>
    %210 = vector.broadcast %207 : vector<1x128xf32> to vector<8x128xf32>
    %211 = arith.mulf %190, %210 : vector<8x128xf32>
    %212 = vector.broadcast %209 : vector<1x128xf32> to vector<8x128xf32>
    %213 = arith.addf %211, %212 : vector<8x128xf32>
    %cst_70 = arith.constant 0.000000e+00 : f32
    %214 = vector.broadcast %cst_70 : f32 to vector<8x128xf32>
    %215 = arith.maximumf %213, %214 : vector<8x128xf32>
    %216 = vector.extract_strided_slice %189 {offsets = [8, 0], sizes = [8, 128], strides = [1, 1]} : vector<16x128xf32> to vector<8x128xf32>
    %cst_71 = arith.constant dense<0.000000e+00> : vector<128xf32>
    %217 = vector.multi_reduction <add>, %216, %cst_71 [0] : vector<8x128xf32> to vector<128xf32>
    %218 = vector.shape_cast %217 : vector<128xf32> to vector<1x128xf32>
    %cst_72 = arith.constant 8.000000e+00 : f32
    %219 = vector.broadcast %cst_72 : f32 to vector<1x128xf32>
    %220 = arith.divf %218, %219 : vector<1x128xf32>
    %221 = arith.mulf %216, %216 : vector<8x128xf32>
    %cst_73 = arith.constant dense<0.000000e+00> : vector<128xf32>
    %222 = vector.multi_reduction <add>, %221, %cst_73 [0] : vector<8x128xf32> to vector<128xf32>
    %223 = vector.shape_cast %222 : vector<128xf32> to vector<1x128xf32>
    %cst_74 = arith.constant 8.000000e+00 : f32
    %224 = vector.broadcast %cst_74 : f32 to vector<1x128xf32>
    %225 = arith.divf %223, %224 : vector<1x128xf32>
    %226 = arith.mulf %220, %220 : vector<1x128xf32>
    %227 = arith.subf %225, %226 : vector<1x128xf32>
    %cst_75 = arith.constant 0.000000e+00 : f32
    %228 = vector.broadcast %cst_75 : f32 to vector<1x128xf32>
    %229 = arith.maximumf %227, %228 : vector<1x128xf32>
    %cst_76 = arith.constant 9.99999974E-6 : f32
    %230 = vector.broadcast %cst_76 : f32 to vector<1x128xf32>
    %231 = arith.addf %229, %230 : vector<1x128xf32>
    %232 = math.rsqrt %231 : vector<1x128xf32>
    %233 = arith.mulf %10, %232 : vector<1x128xf32>
    %234 = arith.mulf %220, %233 : vector<1x128xf32>
    %235 = arith.subf %11, %234 : vector<1x128xf32>
    %236 = vector.broadcast %233 : vector<1x128xf32> to vector<8x128xf32>
    %237 = arith.mulf %216, %236 : vector<8x128xf32>
    %238 = vector.broadcast %235 : vector<1x128xf32> to vector<8x128xf32>
    %239 = arith.addf %237, %238 : vector<8x128xf32>
    %cst_77 = arith.constant 0.000000e+00 : f32
    %240 = vector.broadcast %cst_77 : f32 to vector<8x128xf32>
    %241 = arith.maximumf %239, %240 : vector<8x128xf32>
    %242 = tpu.concatenate %215, %241 in 0 : vector<8x128xf32>, vector<8x128xf32> -> vector<16x128xf32>
    %243 = arith.truncf %242 : vector<16x128xf32> to vector<16x128xbf16>
    %c0_78 = arith.constant 0 : index
    %c0_79 = arith.constant 0 : index
    %244 = vector.load %arg7[%c0_78, %c0_79] : memref<128x512xbf16, #tpu.memory_space<vmem>>, vector<128x512xbf16>
    %cst_80 = arith.constant dense<0.000000e+00> : vector<16x512xf32>
    %245 = tpu.matmul %243, %244, %cst_80 {dimension_numbers = #tpu.dot_dimension_numbers<[1], [0], [0], [1], [0, 0, 1, 1], [], []>} : vector<16x128xbf16>, vector<128x512xbf16>, vector<16x512xf32> -> vector<16x512xf32>
    %246 = vector.broadcast %8 : vector<1x512xf32> to vector<16x512xf32>
    %247 = arith.addf %245, %246 : vector<16x512xf32>
    %c0_81 = arith.constant 0 : index
    %c0_82 = arith.constant 0 : index
    %248 = vector.load %arg10[%c0_81, %c0_82] : memref<16x512xf32, #tpu.memory_space<vmem>>, vector<16x512xf32>
    tpu.vector_store %arg10[%c0_81, %c0_82], %247 {strides = array<i32>} : memref<16x512xf32, #tpu.memory_space<vmem>>, vector<16x512xf32>,
    return
  }
}

</mosaic_0001>

<bundles_post_ra>
// kernel: tpu_custom_call.1
= control target key start
LH: loop header
LB: loop body
LE: loop exit
PB: predicated region body
PF: predicated region fallthrough
CT: control target
= control target key end

     0   :  { %17 = vsyncpa [#allocation3], 0  ;;  %s9193_s0 = inlined_call_operand.hbm [shape: f32[8,1024], index: 0, kind: input, shape index: {}]   ;;  %s9194_s1 = inlined_call_operand.hbm [shape: f32[8,1024], index: 1, kind: input, shape index: {}]   ;;  %s9195_s2 = inlined_call_operand.hbm [shape: bf16[1024,512], index: 2, kind: input, shape index: {}]   ;;  %s9196_s3 = inlined_call_operand.hbm [shape: bf16[512,512], index: 3, kind: input, shape index: {}]   ;;  %s9197_s4 = inlined_call_operand.hbm [shape: bf16[512,512], index: 4, kind: input, shape index: {}]   ;;  %s9198_s5 = inlined_call_operand.hbm [shape: bf16[512,512], index: 5, kind: input, shape index: {}]   ;;  %s9199_s6 = inlined_call_operand.hbm [shape: bf16[512,128], index: 6, kind: input, shape index: {}]   ;;  %s9200_s7 = inlined_call_operand.hbm [shape: bf16[128,512], index: 7, kind: input, shape index: {}]   ;;  %s9201_s8 = inlined_call_operand.hbm [shape: f32[8,512], index: 8, kind: input, shape index: {}]   ;;  %s9202_s9 = inlined_call_operand.vmem [shape: f32[2,128], index: 9, kind: input, shape index: {}]   ;;  %s9203_s10 = inlined_call_operand.hbm [shape: f32[16,512], index: 10, kind: output, shape index: {0}]   ;;  %s9204_s11 = inlined_call_operand.hbm [shape: f32[16,512], index: 11, kind: output, shape index: {1}]  }
   0x1   :  { %18 = vsyncpa [#allocation6], 0 }
   0x2   :  { %19 = vsyncpa [#allocation9], 0 }
   0x3   :  { %20 = vsyncpa [#allocation12], 0 }
   0x4   :  { %21 = vsyncpa [#allocation15], 0 }
   0x5   :  { %22 = vsyncpa [#allocation4], 0 }
   0x6   :  { %23 = vsyncpa [#allocation19], 0  ;;  %s8670_s17 = smov [#allocation5]  }
   0x7   :  { %s40_s18 = sshll.u32 %s8670_s17, 4  ;;  %s41_s18 = int_to_ptr.vmem [resolvable:$true] %s40_s18 }
   0x8   :  { %s8444_s19 = scalar_lea.vmem %s41_s18, 1024  ;;  %p8449_p1 = scmp.lt.s32.totalorder %s41_s18, %s41_s18 }
   0x9   :  { %p8445_p0 = scmp.ne.s32.totalorder %s41_s18, %s8444_s19  ;;  %p8450_p2 = scmp.lt.s32.totalorder %s8444_s19, %s8444_s19 }
   0xb   :  { %p8451_p3 = por %p8450_p2, %p8449_p1 }
   0xd   :  { %p8452_p4 = pnand %p8451_p3, %p8445_p0 }
   0xf   :  { %8455 = shalt.err (!%p8452_p4)
}
  0x10   :  { %43 = dma.hbm_to_vmem [thread:$0]  %s9194_s1, 1024, %s41_s18, [#allocation6]  }
  0x11   :  { %s8671_s22 = smov [#allocation8]   ;;  %s8672_s24 = smov [#allocation11]  }
  0x12   :  { %s61_s23 = sshll.u32 %s8671_s22, 4  ;;  %s85_s25 = sshll.u32 %s8672_s24, 4  ;;  %s62_s23 = int_to_ptr.vmem [resolvable:$true] %s61_s23  ;;  %s86_s25 = int_to_ptr.vmem [resolvable:$true] %s85_s25 }
  0x13   :  { %s8464_s26 = scalar_lea.vmem %s62_s23, 16384  ;;  %p8469_p6 = scmp.lt.s32.totalorder %s62_s23, %s62_s23 }
  0x14   :  { %p8465_p5 = scmp.ne.s32.totalorder %s62_s23, %s8464_s26  ;;  %p8470_p7 = scmp.lt.s32.totalorder %s8464_s26, %s8464_s26 }
  0x16   :  { %p8471_p8 = por %p8470_p7, %p8469_p6 }
  0x18   :  { %p8472_p9 = pnand %p8471_p8, %p8465_p5 }
  0x1a   :  { %8475 = shalt.err (!%p8472_p9)
}
  0x1b   :  { %s8673_s27 = smov 256   ;;  %s8674_s28 = smov 16  }
  0x1c   :  { %67 = dma.hbm_to_vmem [thread:$0]  %s9196_s3, 16384, %s62_s23, [#allocation9], %s8673_s27, %s8673_s27, %s8674_s28  }
  0x1d   :  { %s8484_s1 = scalar_lea.vmem %s86_s25, 16384  ;;  %p8489_p11 = scmp.lt.s32.totalorder %s86_s25, %s86_s25 }
  0x1e   :  { %p8485_p10 = scmp.ne.s32.totalorder %s86_s25, %s8484_s1  ;;  %p8490_p12 = scmp.lt.s32.totalorder %s8484_s1, %s8484_s1 }
  0x20   :  { %p8491_p13 = por %p8490_p12, %p8489_p11 }
  0x22   :  { %p8492_p0 = pnand %p8491_p13, %p8485_p10 }
  0x24   :  { %8495 = shalt.err (!%p8492_p0)
}
  0x25   :  { %91 = dma.hbm_to_vmem [thread:$0]  %s9198_s5, 16384, %s86_s25, [#allocation12], %s8673_s27, %s8673_s27, %s8674_s28  }
  0x26   :  { %s8675_s14 = smov [#allocation14]   ;;  %s8676_s16 = smov [#allocation2]  }
  0x27   :  { %s109_s15 = sshll.u32 %s8675_s14, 4  ;;  %s30_s3 = sshll.u32 %s8676_s16, 4  ;;  %s110_s15 = int_to_ptr.vmem [resolvable:$true] %s109_s15  ;;  %s31_s3 = int_to_ptr.vmem [resolvable:$true] %s30_s3 }
  0x28   :  { %s8504_s17 = scalar_lea.vmem %s110_s15, 4096  ;;  %p8509_p2 = scmp.lt.s32.totalorder %s110_s15, %s110_s15 }
  0x29   :  { %p8505_p1 = scmp.ne.s32.totalorder %s110_s15, %s8504_s17  ;;  %p8510_p3 = scmp.lt.s32.totalorder %s8504_s17, %s8504_s17 }
  0x2b   :  { %p8511_p4 = por %p8510_p3, %p8509_p2 }
  0x2d   :  { %p8512_p5 = pnand %p8511_p4, %p8505_p1 }
  0x2f   :  { %8515 = shalt.err (!%p8512_p5)
}
  0x30   :  { %115 = dma.hbm_to_vmem [thread:$0]  %s9200_s7, 4096, %s110_s15, [#allocation15], %s8673_s27, %s8673_s27, %s8674_s28  }
  0x31   :  { %s8524_s5 = scalar_lea.vmem %s31_s3, 1024  ;;  %p8529_p7 = scmp.lt.s32.totalorder %s31_s3, %s31_s3 }
  0x32   :  { %p8525_p6 = scmp.ne.s32.totalorder %s31_s3, %s8524_s5  ;;  %p8530_p8 = scmp.lt.s32.totalorder %s8524_s5, %s8524_s5 }
  0x34   :  { %p8531_p9 = por %p8530_p8, %p8529_p7 }
  0x36   :  { %p8532_p10 = pnand %p8531_p9, %p8525_p6 }
  0x38   :  { %8535 = shalt.err (!%p8532_p10)
}
  0x39   :  { %33 = dma.hbm_to_vmem [thread:$0]  %s9193_s0, 1024, %s31_s3, [#allocation3]  }
  0x3a   :  { %s8677_s22 = smov [#allocation7]   ;;  %s8678_s24 = smov [#allocation10]  }
  0x3b   :  { %s49_s23 = sshll.u32 %s8677_s22, 4  ;;  %s73_s25 = sshll.u32 %s8678_s24, 4  ;;  %s50_s23 = int_to_ptr.vmem [resolvable:$true] %s49_s23  ;;  %s74_s25 = int_to_ptr.vmem [resolvable:$true] %s73_s25 }
  0x3c   :  { %s8544_s26 = scalar_lea.vmem %s50_s23, 32768  ;;  %p8549_p12 = scmp.lt.s32.totalorder %s50_s23, %s50_s23 }
  0x3d   :  { %p8545_p11 = scmp.ne.s32.totalorder %s50_s23, %s8544_s26  ;;  %p8550_p13 = scmp.lt.s32.totalorder %s8544_s26, %s8544_s26 }
  0x3f   :  { %p8551_p0 = por %p8550_p13, %p8549_p12 }
  0x41   :  { %p8552_p1 = pnand %p8551_p0, %p8545_p11 }
  0x43   :  { %8555 = shalt.err (!%p8552_p1)
}
  0x44   :  { %55 = dma.hbm_to_vmem [thread:$0]  %s9195_s2, 32768, %s50_s23, [#allocation6], %s8673_s27, %s8673_s27, %s8674_s28  }
  0x45   :  { %s8564_s0 = scalar_lea.vmem %s74_s25, 16384  ;;  %p8569_p3 = scmp.lt.s32.totalorder %s74_s25, %s74_s25 }
  0x46   :  { %p8565_p2 = scmp.ne.s32.totalorder %s74_s25, %s8564_s0  ;;  %p8570_p4 = scmp.lt.s32.totalorder %s8564_s0, %s8564_s0 }
  0x48   :  { %p8571_p5 = por %p8570_p4, %p8569_p3 }
  0x4a   :  { %p8572_p6 = pnand %p8571_p5, %p8565_p2 }
  0x4c   :  { %8575 = shalt.err (!%p8572_p6)
}
  0x4d   :  { %79 = dma.hbm_to_vmem [thread:$0]  %s9197_s4, 16384, %s74_s25, [#allocation9], %s8673_s27, %s8673_s27, %s8674_s28  }
  0x4e   :  { %s8679_s12 = smov [#allocation13]  }
  0x4f   :  { %s97_s13 = sshll.u32 %s8679_s12, 4  ;;  %s98_s13 = int_to_ptr.vmem [resolvable:$true] %s97_s13 }
  0x50   :  { %s8584_s14 = scalar_lea.vmem %s98_s13, 4096  ;;  %p8589_p8 = scmp.lt.s32.totalorder %s98_s13, %s98_s13 }
  0x51   :  { %p8585_p7 = scmp.ne.s32.totalorder %s98_s13, %s8584_s14  ;;  %p8590_p9 = scmp.lt.s32.totalorder %s8584_s14, %s8584_s14 }
  0x53   :  { %p8591_p10 = por %p8590_p9, %p8589_p8 }
  0x55   :  { %p8592_p11 = pnand %p8591_p10, %p8585_p7 }
  0x57   :  { %8595 = shalt.err (!%p8592_p11)
}
  0x58   :  { %s8680_s2 = smov 64   ;;  %s8681_s15 = smov 4  }
  0x59   :  { %103 = dma.hbm_to_vmem [thread:$0]  %s9199_s6, 4096, %s98_s13, [#allocation12], %s8680_s2, %s8680_s2, %s8681_s15  }
  0x5a   :  { %s8682_s17 = smov [#allocation16]  }
  0x5b   :  { %s122_s18 = sshll.u32 %s8682_s17, 4  ;;  %s123_s18 = int_to_ptr.vmem [resolvable:$true] %s122_s18 }
  0x5c   :  { %s8604_s4 = scalar_lea.vmem %s123_s18, 512  ;;  %p8609_p13 = scmp.lt.s32.totalorder %s123_s18, %s123_s18 }
  0x5d   :  { %p8605_p12 = scmp.ne.s32.totalorder %s123_s18, %s8604_s4  ;;  %p8610_p0 = scmp.lt.s32.totalorder %s8604_s4, %s8604_s4 }
  0x5f   :  { %p8611_p1 = por %p8610_p0, %p8609_p13 }
  0x61   :  { %p8612_p2 = pnand %p8611_p1, %p8605_p12 }
  0x63   :  { %8615 = shalt.err (!%p8612_p2)
}
  0x64   :  { %125 = dma.hbm_to_vmem [thread:$0]  %s9201_s8, 512, %s123_s18, [#allocation15]  }
  0x65   :  { %8656 = dma.done.wait [#allocation3], 1024  }
  0x66   :  { %8657 = vsyncadd [#allocation3], 4294966272 }
  0x67   :  { %8658 = dma.done.wait [#allocation6], 33792  }
  0x68   :  { %8659 = vsyncadd [#allocation6], 4294933504 }
  0x69   :  { %8660 = dma.done.wait [#allocation9], 32768  }
  0x6a   :  { %8661 = vsyncadd [#allocation9], 4294934528 }
  0x6b   :  { %8662 = dma.done.wait [#allocation12], 20480  }
  0x6c   :  { %8663 = vsyncadd [#allocation12], 4294946816 }
  0x6d   :  { %8664 = dma.done.wait [#allocation15], 4608  }
  0x6e   :  { %8665 = vsyncadd [#allocation15], 4294962688  ;;  %v7332_v0 = vld [vmem:[#allocation7 + $0xe4] ss:$16 sps:$4 sm:$0xff]   ;;  %v7336_v2 = vld [vmem:[#allocation7 + $0xe0] ss:$16 sps:$4 sm:$0xff]  }
  0x6f   :  { %v7334_v1 = vld [vmem:[#allocation7 + $0x2e4] ss:$16 sps:$4 sm:$0xff]   ;;  %1737 = vmatprep.subr.bf16.mxu0 %v7332_v0  ;;  %v7337_v3 = vld [vmem:[#allocation7 + $0x2e0] ss:$16 sps:$4 sm:$0xff]   ;;  %v162_v46 = vld [vmem:[#allocation2 + $0x8] sm:$0xff] }
  0x70   :  { %1780 = vmatprep.subr.bf16.mxu1 %v7334_v1  ;;  %v7338_v4 = vld [vmem:[#allocation7 + $0xc4] ss:$16 sps:$4 sm:$0xff]   ;;  %1738 = vmatpush1.bf16.msra.mxu0 %v7336_v2  ;;  %v7342_v6 = vld [vmem:[#allocation7 + $0xc0] ss:$16 sps:$4 sm:$0xff]   ;;  %v170_v47 = vld [vmem:[#allocation5 + $0x8] sm:$0xff] }
  0x71   :  { %1781 = vmatpush1.bf16.msra.mxu1 %v7337_v3  ;;  %v7340_v5 = vld [vmem:[#allocation7 + $0x2c4] ss:$16 sps:$4 sm:$0xff]   ;;  %1739 = vmatprep.subr.bf16.mxu0 %v7338_v4  ;;  %v7343_v7 = vld [vmem:[#allocation7 + $0x2c0] ss:$16 sps:$4 sm:$0xff]   ;;  %v164_v48 = vld [vmem:[#allocation2 + $0x18] sm:$0xff]  ;;  %v8790_v53 = vpack.c.bf16 %v170_v47, %v162_v46 }
  0x72   :  { %1782 = vmatprep.subr.bf16.mxu1 %v7340_v5  ;;  %v7344_v8 = vld [vmem:[#allocation7 + $0xa4] ss:$16 sps:$4 sm:$0xff]   ;;  %v7348_v10 = vld [vmem:[#allocation7 + $0xa0] ss:$16 sps:$4 sm:$0xff]   ;;  %v172_v49 = vld [vmem:[#allocation5 + $0x18] sm:$0xff] }
  0x73   :  { %v7346_v9 = vld [vmem:[#allocation7 + $0x2a4] ss:$16 sps:$4 sm:$0xff]   ;;  %v7349_v11 = vld [vmem:[#allocation7 + $0x2a0] ss:$16 sps:$4 sm:$0xff]   ;;  %v8792_v54 = vpack.c.bf16 %v172_v49, %v164_v48  ;;  %1769 = vmatprep.mubr.bf16.mxu0 %v8790_v53  ;;  %v176_v46 = vld [vmem:[#allocation5 + $0x38] sm:$0xff] }
  0x74   :  { %1740 = vmatpush1.bf16.msra.mxu0 %v7342_v6  ;;  %v7350_v12 = vld [vmem:[#allocation7 + $0x84] ss:$16 sps:$4 sm:$0xff]   ;;  %v7354_v14 = vld [vmem:[#allocation7 + $0x80] ss:$16 sps:$4 sm:$0xff]  }
  0x75   :  { %1783 = vmatpush1.bf16.msra.mxu1 %v7343_v7  ;;  %1741 = vmatprep.subr.bf16.mxu0 %v7344_v8  ;;  %v7352_v13 = vld [vmem:[#allocation7 + $0x284] ss:$16 sps:$4 sm:$0xff]   ;;  %v7355_v15 = vld [vmem:[#allocation7 + $0x280] ss:$16 sps:$4 sm:$0xff]  }
  0x76   :  { %1784 = vmatprep.subr.bf16.mxu1 %v7346_v9  ;;  %v7356_v16 = vld [vmem:[#allocation7 + $0x64] ss:$16 sps:$4 sm:$0xff]   ;;  %v7360_v18 = vld [vmem:[#allocation7 + $0x60] ss:$16 sps:$4 sm:$0xff]   ;;  %1812 = vmatprep.mubr.bf16.mxu1 %v8792_v54 }
  0x77   :  { %v7358_v17 = vld [vmem:[#allocation7 + $0x264] ss:$16 sps:$4 sm:$0xff]   ;;  %v7361_v19 = vld [vmem:[#allocation7 + $0x260] ss:$16 sps:$4 sm:$0xff]  }
  0x78   :  { %1742 = vmatpush1.bf16.msra.mxu0 %v7348_v10  ;;  %v7362_v20 = vld [vmem:[#allocation7 + $0x44] ss:$16 sps:$4 sm:$0xff]   ;;  %v7366_v22 = vld [vmem:[#allocation7 + $0x40] ss:$16 sps:$4 sm:$0xff]  }
  0x79   :  { %1785 = vmatpush1.bf16.msra.mxu1 %v7349_v11  ;;  %1743 = vmatprep.subr.bf16.mxu0 %v7350_v12  ;;  %v7364_v21 = vld [vmem:[#allocation7 + $0x244] ss:$16 sps:$4 sm:$0xff]   ;;  %v7367_v23 = vld [vmem:[#allocation7 + $0x240] ss:$16 sps:$4 sm:$0xff]  }
  0x7a   :  { %1786 = vmatprep.subr.bf16.mxu1 %v7352_v13  ;;  %v7368_v24 = vld [vmem:[#allocation7 + $0x24] ss:$16 sps:$4 sm:$0xff]   ;;  %v7372_v26 = vld [vmem:[#allocation7 + $0x20] ss:$16 sps:$4 sm:$0xff]  }
  0x7b   :  { %v7370_v25 = vld [vmem:[#allocation7 + $0x224] ss:$16 sps:$4 sm:$0xff]   ;;  %v7373_v27 = vld [vmem:[#allocation7 + $0x220] ss:$16 sps:$4 sm:$0xff]  }
  0x7c   :  { %1744 = vmatpush1.bf16.msra.mxu0 %v7354_v14  ;;  %v7374_v28 = vld [vmem:[#allocation7 + $0x4] ss:$16 sps:$4 sm:$0xff]   ;;  %v7378_v30 = vld [vmem:[#allocation7] ss:$16 sps:$4 sm:$0xff]  }
  0x7d   :  { %1787 = vmatpush1.bf16.msra.mxu1 %v7355_v15  ;;  %1745 = vmatprep.subr.bf16.mxu0 %v7356_v16  ;;  %v7376_v29 = vld [vmem:[#allocation7 + $0x204] ss:$16 sps:$4 sm:$0xff]   ;;  %v7379_v31 = vld [vmem:[#allocation7 + $0x200] ss:$16 sps:$4 sm:$0xff]  }
  0x7e   :  { %1788 = vmatprep.subr.bf16.mxu1 %v7358_v17  ;;  %v7380_v32 = vld [vmem:[#allocation7 + $0x1e4] ss:$16 sps:$4 sm:$0xff]   ;;  %v7384_v34 = vld [vmem:[#allocation7 + $0x1e0] ss:$16 sps:$4 sm:$0xff]  }
  0x7f   :  { %v7382_v33 = vld [vmem:[#allocation7 + $0x3e4] ss:$16 sps:$4 sm:$0xff]   ;;  %v7385_v35 = vld [vmem:[#allocation7 + $0x3e0] ss:$16 sps:$4 sm:$0xff]  }
  0x80   :  { %1746 = vmatpush1.bf16.msra.mxu0 %v7360_v18  ;;  %v7386_v36 = vld [vmem:[#allocation7 + $0x1c4] ss:$16 sps:$4 sm:$0xff]   ;;  %v7390_v38 = vld [vmem:[#allocation7 + $0x1c0] ss:$16 sps:$4 sm:$0xff]  }
  0x81   :  { %1789 = vmatpush1.bf16.msra.mxu1 %v7361_v19  ;;  %1747 = vmatprep.subr.bf16.mxu0 %v7362_v20  ;;  %v7388_v37 = vld [vmem:[#allocation7 + $0x3c4] ss:$16 sps:$4 sm:$0xff]   ;;  %v7391_v39 = vld [vmem:[#allocation7 + $0x3c0] ss:$16 sps:$4 sm:$0xff]  }
  0x82   :  { %1790 = vmatprep.subr.bf16.mxu1 %v7364_v21  ;;  %v7392_v40 = vld [vmem:[#allocation7 + $0x1a4] ss:$16 sps:$4 sm:$0xff]   ;;  %v7396_v42 = vld [vmem:[#allocation7 + $0x1a0] ss:$16 sps:$4 sm:$0xff]  }
  0x83   :  { %v7394_v41 = vld [vmem:[#allocation7 + $0x3a4] ss:$16 sps:$4 sm:$0xff]   ;;  %v7397_v43 = vld [vmem:[#allocation7 + $0x3a0] ss:$16 sps:$4 sm:$0xff]  }
  0x84   :  { %1748 = vmatpush1.bf16.msra.mxu0 %v7366_v22  ;;  %v7398_v44 = vld [vmem:[#allocation7 + $0x184] ss:$16 sps:$4 sm:$0xff]   ;;  %v7402_v50 = vld [vmem:[#allocation7 + $0x180] ss:$16 sps:$4 sm:$0xff]  }
  0x85   :  { %1791 = vmatpush1.bf16.msra.mxu1 %v7367_v23  ;;  %1749 = vmatprep.subr.bf16.mxu0 %v7368_v24  ;;  %v7400_v45 = vld [vmem:[#allocation7 + $0x384] ss:$16 sps:$4 sm:$0xff]   ;;  %v7403_v51 = vld [vmem:[#allocation7 + $0x380] ss:$16 sps:$4 sm:$0xff]  }
  0x86   :  { %1792 = vmatprep.subr.bf16.mxu1 %v7370_v25  ;;  %v7404_v52 = vld [vmem:[#allocation7 + $0x164] ss:$16 sps:$4 sm:$0xff]   ;;  %v7408_v56 = vld [vmem:[#allocation7 + $0x160] ss:$16 sps:$4 sm:$0xff]  }
  0x87   :  { %v7406_v55 = vld [vmem:[#allocation7 + $0x364] ss:$16 sps:$4 sm:$0xff]   ;;  %v7409_v57 = vld [vmem:[#allocation7 + $0x360] ss:$16 sps:$4 sm:$0xff]  }
  0x88   :  { %1750 = vmatpush1.bf16.msra.mxu0 %v7372_v26  ;;  %v7410_v58 = vld [vmem:[#allocation7 + $0x144] ss:$16 sps:$4 sm:$0xff]   ;;  %v7414_v60 = vld [vmem:[#allocation7 + $0x140] ss:$16 sps:$4 sm:$0xff]  }
  0x89   :  { %1793 = vmatpush1.bf16.msra.mxu1 %v7373_v27  ;;  %1751 = vmatprep.subr.bf16.mxu0 %v7374_v28  ;;  %v7412_v59 = vld [vmem:[#allocation7 + $0x344] ss:$16 sps:$4 sm:$0xff]   ;;  %v7415_v61 = vld [vmem:[#allocation7 + $0x340] ss:$16 sps:$4 sm:$0xff]  }
  0x8a   :  { %1794 = vmatprep.subr.bf16.mxu1 %v7376_v29  ;;  %v7416_v62 = vld [vmem:[#allocation7 + $0x124] ss:$16 sps:$4 sm:$0xff]   ;;  %v7420_v0 = vld [vmem:[#allocation7 + $0x120] ss:$16 sps:$4 sm:$0xff]  }
  0x8b   :  { %v7418_v63 = vld [vmem:[#allocation7 + $0x324] ss:$16 sps:$4 sm:$0xff]   ;;  %v7421_v1 = vld [vmem:[#allocation7 + $0x320] ss:$16 sps:$4 sm:$0xff]  }
  0x8c   :  { %1752 = vmatpush1.bf16.msra.mxu0 %v7378_v30  ;;  %v7422_v2 = vld [vmem:[#allocation7 + $0x104] ss:$16 sps:$4 sm:$0xff]   ;;  %v7426_v4 = vld [vmem:[#allocation7 + $0x100] ss:$16 sps:$4 sm:$0xff]  }
  0x8d   :  { %1795 = vmatpush1.bf16.msra.mxu1 %v7379_v31  ;;  %1753 = vmatprep.subr.bf16.mxu0 %v7380_v32  ;;  %v7424_v3 = vld [vmem:[#allocation7 + $0x304] ss:$16 sps:$4 sm:$0xff]   ;;  %v7427_v5 = vld [vmem:[#allocation7 + $0x300] ss:$16 sps:$4 sm:$0xff]  }
  0x8e   :  { %1796 = vmatprep.subr.bf16.mxu1 %v7382_v33  ;;  %v161_v6 = vld [vmem:[#allocation2] sm:$0xff]  ;;  %v163_v8 = vld [vmem:[#allocation2 + $0x10] sm:$0xff] }
  0x8f   :  { %v169_v7 = vld [vmem:[#allocation5] sm:$0xff]  ;;  %v171_v9 = vld [vmem:[#allocation5 + $0x10] sm:$0xff] }
  0x90   :  { %1754 = vmatpush2.bf16.msra.mxu0 %v7384_v34  ;;  %v7430_v10 = vld [vmem:[#allocation7 + $0x4e4] ss:$16 sps:$4 sm:$0xff]   ;;  %v8796_v12 = vpack.c.bf16 %v169_v7, %v161_v6  ;;  %v8798_v13 = vpack.c.bf16 %v171_v9, %v163_v8  ;;  %v7428_v14 = vld [vmem:[#allocation7 + $0x4e0] ss:$16 sps:$4 sm:$0xff]  }
  0x91   :  { %1797 = vmatpush2.bf16.msra.mxu1 %v7385_v35  ;;  %1755 = vmatprep.subr.bf16.mxu0 %v7386_v36  ;;  %v7433_v11 = vld [vmem:[#allocation7 + $0x6e4] ss:$16 sps:$4 sm:$0xff]   ;;  %v7431_v15 = vld [vmem:[#allocation7 + $0x6e0] ss:$16 sps:$4 sm:$0xff]  }
  0x92   :  { %1798 = vmatprep.subr.bf16.mxu1 %v7388_v37  ;;  %v7436_v16 = vld [vmem:[#allocation7 + $0x4c4] ss:$16 sps:$4 sm:$0xff]   ;;  %v7434_v18 = vld [vmem:[#allocation7 + $0x4c0] ss:$16 sps:$4 sm:$0xff]  }
  0x93   :  { %v7439_v17 = vld [vmem:[#allocation7 + $0x6c4] ss:$16 sps:$4 sm:$0xff]   ;;  %v7437_v19 = vld [vmem:[#allocation7 + $0x6c0] ss:$16 sps:$4 sm:$0xff]  }
  0x94   :  { %1756 = vmatpush2.bf16.msra.mxu0 %v7390_v38  ;;  %v7442_v20 = vld [vmem:[#allocation7 + $0x4a4] ss:$16 sps:$4 sm:$0xff]   ;;  %v7440_v22 = vld [vmem:[#allocation7 + $0x4a0] ss:$16 sps:$4 sm:$0xff]  }
  0x95   :  { %1799 = vmatpush2.bf16.msra.mxu1 %v7391_v39  ;;  %1757 = vmatprep.subr.bf16.mxu0 %v7392_v40  ;;  %v7445_v21 = vld [vmem:[#allocation7 + $0x6a4] ss:$16 sps:$4 sm:$0xff]   ;;  %v7443_v23 = vld [vmem:[#allocation7 + $0x6a0] ss:$16 sps:$4 sm:$0xff]   ;;  %v166_v40 = vld [vmem:[#allocation2 + $0x28] sm:$0xff] }
  0x96   :  { %1800 = vmatprep.subr.bf16.mxu1 %v7394_v41  ;;  %v7448_v24 = vld [vmem:[#allocation7 + $0x484] ss:$16 sps:$4 sm:$0xff]   ;;  %v7446_v26 = vld [vmem:[#allocation7 + $0x480] ss:$16 sps:$4 sm:$0xff]   ;;  %v174_v41 = vld [vmem:[#allocation5 + $0x28] sm:$0xff] }
  0x97   :  { %v7451_v25 = vld [vmem:[#allocation7 + $0x684] ss:$16 sps:$4 sm:$0xff]   ;;  %v7449_v27 = vld [vmem:[#allocation7 + $0x680] ss:$16 sps:$4 sm:$0xff]  }
  0x98   :  { %1758 = vmatpush2.bf16.msra.mxu0 %v7396_v42  ;;  %v7454_v28 = vld [vmem:[#allocation7 + $0x464] ss:$16 sps:$4 sm:$0xff]   ;;  %v7452_v30 = vld [vmem:[#allocation7 + $0x460] ss:$16 sps:$4 sm:$0xff]   ;;  %v168_v42 = vld [vmem:[#allocation2 + $0x38] sm:$0xff] }
  0x99   :  { %1801 = vmatpush2.bf16.msra.mxu1 %v7397_v43  ;;  %1759 = vmatprep.subr.bf16.mxu0 %v7398_v44  ;;  %v7457_v29 = vld [vmem:[#allocation7 + $0x664] ss:$16 sps:$4 sm:$0xff]   ;;  %v7455_v31 = vld [vmem:[#allocation7 + $0x660] ss:$16 sps:$4 sm:$0xff]   ;;  %v8804_v47 = vpack.c.bf16 %v176_v46, %v168_v42  ;;  %v7542_v42 = vld [vmem:[#allocation7 + $0x88] ss:$16 sps:$4 sm:$0xff]  }
  0x9a   :  { %1802 = vmatprep.subr.bf16.mxu1 %v7400_v45  ;;  %v7460_v32 = vld [vmem:[#allocation7 + $0x444] ss:$16 sps:$4 sm:$0xff]   ;;  %v7458_v34 = vld [vmem:[#allocation7 + $0x440] ss:$16 sps:$4 sm:$0xff]   ;;  %v8802_v45 = vpack.c.bf16 %v174_v41, %v166_v40  ;;  %v7544_v40 = vld [vmem:[#allocation7 + $0x8c] ss:$16 sps:$4 sm:$0xff]  }
  0x9b   :  { %v7463_v33 = vld [vmem:[#allocation7 + $0x644] ss:$16 sps:$4 sm:$0xff]   ;;  %v7461_v35 = vld [vmem:[#allocation7 + $0x640] ss:$16 sps:$4 sm:$0xff]   ;;  %v7547_v41 = vld [vmem:[#allocation7 + $0x28c] ss:$16 sps:$4 sm:$0xff]  }
  0x9c   :  { %1760 = vmatpush2.bf16.msra.mxu0 %v7402_v50  ;;  %v7466_v36 = vld [vmem:[#allocation7 + $0x424] ss:$16 sps:$4 sm:$0xff]   ;;  %v7464_v38 = vld [vmem:[#allocation7 + $0x420] ss:$16 sps:$4 sm:$0xff]   ;;  %v7553_v46 = vld [vmem:[#allocation7 + $0x26c] ss:$16 sps:$4 sm:$0xff]  }
  0x9d   :  { %1803 = vmatpush2.bf16.msra.mxu1 %v7403_v51  ;;  %1761 = vmatprep.subr.bf16.mxu0 %v7404_v52  ;;  %v7469_v37 = vld [vmem:[#allocation7 + $0x624] ss:$16 sps:$4 sm:$0xff]   ;;  %v7467_v39 = vld [vmem:[#allocation7 + $0x620] ss:$16 sps:$4 sm:$0xff]  }
  0x9e   :  { %1804 = vmatprep.subr.bf16.mxu1 %v7406_v55  ;;  %v7472_v43 = vld [vmem:[#allocation7 + $0x404] ss:$16 sps:$4 sm:$0xff]   ;;  %v7470_v48 = vld [vmem:[#allocation7 + $0x400] ss:$16 sps:$4 sm:$0xff]  }
  0x9f   :  { %v7475_v44 = vld [vmem:[#allocation7 + $0x604] ss:$16 sps:$4 sm:$0xff]   ;;  %v7473_v49 = vld [vmem:[#allocation7 + $0x600] ss:$16 sps:$4 sm:$0xff]  }
  0xa0   :  { %1762 = vmatpush2.bf16.msra.mxu0 %v7408_v56  ;;  %v7478_v50 = vld [vmem:[#allocation7 + $0x5e4] ss:$16 sps:$4 sm:$0xff]   ;;  %v7476_v52 = vld [vmem:[#allocation7 + $0x5e0] ss:$16 sps:$4 sm:$0xff]  }
  0xa1   :  { %1805 = vmatpush2.bf16.msra.mxu1 %v7409_v57  ;;  %1763 = vmatprep.subr.bf16.mxu0 %v7410_v58  ;;  %v7481_v51 = vld [vmem:[#allocation7 + $0x7e4] ss:$16 sps:$4 sm:$0xff]   ;;  %v7479_v55 = vld [vmem:[#allocation7 + $0x7e0] ss:$16 sps:$4 sm:$0xff]  }
  0xa2   :  { %1806 = vmatprep.subr.bf16.mxu1 %v7412_v59  ;;  %v7484_v56 = vld [vmem:[#allocation7 + $0x5c4] ss:$16 sps:$4 sm:$0xff]   ;;  %v7482_v58 = vld [vmem:[#allocation7 + $0x5c0] ss:$16 sps:$4 sm:$0xff]  }
  0xa3   :  { %v7487_v57 = vld [vmem:[#allocation7 + $0x7c4] ss:$16 sps:$4 sm:$0xff]   ;;  %v7485_v59 = vld [vmem:[#allocation7 + $0x7c0] ss:$16 sps:$4 sm:$0xff]  }
  0xa4   :  { %1764 = vmatpush2.bf16.msra.mxu0 %v7414_v60  ;;  %v7490_v60 = vld [vmem:[#allocation7 + $0x5a4] ss:$16 sps:$4 sm:$0xff]   ;;  %v7500_v6 = vld [vmem:[#allocation7 + $0x560] ss:$16 sps:$4 sm:$0xff]  }
  0xa5   :  { %1807 = vmatpush2.bf16.msra.mxu1 %v7415_v61  ;;  %1765 = vmatprep.subr.bf16.mxu0 %v7416_v62  ;;  %v7493_v61 = vld [vmem:[#allocation7 + $0x7a4] ss:$16 sps:$4 sm:$0xff]   ;;  %v7488_v62 = vld [vmem:[#allocation7 + $0x5a0] ss:$16 sps:$4 sm:$0xff]  }
  0xa6   :  { %1808 = vmatprep.subr.bf16.mxu1 %v7418_v63  ;;  %v7491_v63 = vld [vmem:[#allocation7 + $0x7a0] ss:$16 sps:$4 sm:$0xff]   ;;  %v7508_v8 = vld [vmem:[#allocation7 + $0x544] ss:$16 sps:$4 sm:$0xff]  }
  0xa7   :  { %v7503_v7 = vld [vmem:[#allocation7 + $0x760] ss:$16 sps:$4 sm:$0xff]   ;;  %v7511_v9 = vld [vmem:[#allocation7 + $0x744] ss:$16 sps:$4 sm:$0xff]  }
  0xa8   :  { %1766 = vmatpush2.bf16.msra.mxu0 %v7420_v0  ;;  %v7496_v0 = vld [vmem:[#allocation7 + $0x584] ss:$16 sps:$4 sm:$0xff]  }
  0xa9   :  { %1809 = vmatpush2.bf16.msra.mxu1 %v7421_v1  ;;  %1767 = vmatprep.subr.bf16.mxu0 %v7422_v2  ;;  %v7499_v1 = vld [vmem:[#allocation7 + $0x784] ss:$16 sps:$4 sm:$0xff]   ;;  %v7494_v2 = vld [vmem:[#allocation7 + $0x580] ss:$16 sps:$4 sm:$0xff]  }
  0xaa   :  { %1810 = vmatprep.subr.bf16.mxu1 %v7424_v3  ;;  %v7497_v3 = vld [vmem:[#allocation7 + $0x780] ss:$16 sps:$4 sm:$0xff]  }
  0xac   :  { %1768 = vmatpush2.bf16.msra.mxu0 %v7426_v4  ;;  %v7502_v4 = vld [vmem:[#allocation7 + $0x564] ss:$16 sps:$4 sm:$0xff]  }
  0xad   :  { %1811 = vmatpush2.bf16.msra.mxu1 %v7427_v5  ;;  %1823 = vmatprep.subr.bf16.mxu0 %v7430_v10  ;;  %v7505_v5 = vld [vmem:[#allocation7 + $0x764] ss:$16 sps:$4 sm:$0xff]   ;;  %v7506_v10 = vld [vmem:[#allocation7 + $0x540] ss:$16 sps:$4 sm:$0xff]  }
  0xae   :  { %1866 = vmatprep.subr.bf16.mxu1 %v7433_v11  ;;  %v7509_v11 = vld [vmem:[#allocation7 + $0x740] ss:$16 sps:$4 sm:$0xff]  }
  0xaf   :  { %1770 = vmatmul.mubr.bf16.vlgmr.msra.gmra.mxu0 %v8796_v12 }
  0xb0   :  { %1813 = vmatmul.mubr.bf16.vlgmr.msra.gmra.mxu1 %v8798_v13  ;;  %1824 = vmatpush1.bf16.msra.mxu0 %v7428_v14  ;;  %v7514_v14 = vld [vmem:[#allocation7 + $0x524] ss:$16 sps:$4 sm:$0xff]  }
  0xb1   :  { %1867 = vmatpush1.bf16.msra.mxu1 %v7431_v15  ;;  %1825 = vmatprep.subr.bf16.mxu0 %v7436_v16  ;;  %v7517_v15 = vld [vmem:[#allocation7 + $0x724] ss:$16 sps:$4 sm:$0xff]   ;;  %v7512_v16 = vld [vmem:[#allocation7 + $0x520] ss:$16 sps:$4 sm:$0xff]  }
  0xb2   :  { %1868 = vmatprep.subr.bf16.mxu1 %v7439_v17  ;;  %1855 = vmatprep.mubr.bf16.mxu0 %v8802_v45  ;;  %v7515_v17 = vld [vmem:[#allocation7 + $0x720] ss:$16 sps:$4 sm:$0xff]  }
  0xb3   :  { %1898 = vmatprep.mubr.bf16.mxu1 %v8804_v47 }
  0xb4   :  { %1826 = vmatpush1.bf16.msra.mxu0 %v7434_v18  ;;  %v7520_v18 = vld [vmem:[#allocation7 + $0x504] ss:$16 sps:$4 sm:$0xff]  }
  0xb5   :  { %1869 = vmatpush1.bf16.msra.mxu1 %v7437_v19  ;;  %1827 = vmatprep.subr.bf16.mxu0 %v7442_v20  ;;  %v7523_v19 = vld [vmem:[#allocation7 + $0x704] ss:$16 sps:$4 sm:$0xff]   ;;  %v7518_v20 = vld [vmem:[#allocation7 + $0x500] ss:$16 sps:$4 sm:$0xff]  }
  0xb6   :  { %1870 = vmatprep.subr.bf16.mxu1 %v7445_v21  ;;  %v7521_v21 = vld [vmem:[#allocation7 + $0x700] ss:$16 sps:$4 sm:$0xff]  }
  0xb8   :  { %1828 = vmatpush1.bf16.msra.mxu0 %v7440_v22  ;;  %v165_v22 = vld [vmem:[#allocation2 + $0x20] sm:$0xff] }
  0xb9   :  { %1871 = vmatpush1.bf16.msra.mxu1 %v7443_v23  ;;  %1829 = vmatprep.subr.bf16.mxu0 %v7448_v24  ;;  %v173_v23 = vld [vmem:[#allocation5 + $0x20] sm:$0xff]  ;;  %v167_v24 = vld [vmem:[#allocation2 + $0x30] sm:$0xff] }
  0xba   :  { %1872 = vmatprep.subr.bf16.mxu1 %v7451_v25  ;;  %v175_v25 = vld [vmem:[#allocation5 + $0x30] sm:$0xff] }
  0xbc   :  { %1830 = vmatpush1.bf16.msra.mxu0 %v7446_v26  ;;  %v7526_v26 = vld [vmem:[#allocation7 + $0xec] ss:$16 sps:$4 sm:$0xff]  }
  0xbd   :  { %1873 = vmatpush1.bf16.msra.mxu1 %v7449_v27  ;;  %1831 = vmatprep.subr.bf16.mxu0 %v7454_v28  ;;  %v7529_v27 = vld [vmem:[#allocation7 + $0x2ec] ss:$16 sps:$4 sm:$0xff]   ;;  %v8808_v28 = vpack.c.bf16 %v173_v23, %v165_v22  ;;  %v7602_v22 = vld [vmem:[#allocation7 + $0x148] ss:$16 sps:$4 sm:$0xff]  }
  0xbe   :  { %1874 = vmatprep.subr.bf16.mxu1 %v7457_v29  ;;  %v8810_v29 = vpack.c.bf16 %v175_v25, %v167_v24  ;;  %v7605_v23 = vld [vmem:[#allocation7 + $0x348] ss:$16 sps:$4 sm:$0xff]   ;;  %v7610_v24 = vld [vmem:[#allocation7 + $0x12c] ss:$16 sps:$4 sm:$0xff]  }
  0xbf   :  { %v7613_v25 = vld [vmem:[#allocation7 + $0x32c] ss:$16 sps:$4 sm:$0xff]  }
  0xc0   :  { %1832 = vmatpush1.bf16.msra.mxu0 %v7452_v30  ;;  %v7524_v30 = vld [vmem:[#allocation7 + $0xe8] ss:$16 sps:$4 sm:$0xff]  }
  0xc1   :  { %1875 = vmatpush1.bf16.msra.mxu1 %v7455_v31  ;;  %1833 = vmatprep.subr.bf16.mxu0 %v7460_v32  ;;  %v7527_v31 = vld [vmem:[#allocation7 + $0x2e8] ss:$16 sps:$4 sm:$0xff]   ;;  %v7532_v32 = vld [vmem:[#allocation7 + $0xcc] ss:$16 sps:$4 sm:$0xff]  }
  0xc2   :  { %1876 = vmatprep.subr.bf16.mxu1 %v7463_v33  ;;  %v7535_v33 = vld [vmem:[#allocation7 + $0x2cc] ss:$16 sps:$4 sm:$0xff]  }
  0xc4   :  { %1834 = vmatpush1.bf16.msra.mxu0 %v7458_v34  ;;  %v7530_v34 = vld [vmem:[#allocation7 + $0xc8] ss:$16 sps:$4 sm:$0xff]  }
  0xc5   :  { %1877 = vmatpush1.bf16.msra.mxu1 %v7461_v35  ;;  %1835 = vmatprep.subr.bf16.mxu0 %v7466_v36  ;;  %v7533_v35 = vld [vmem:[#allocation7 + $0x2c8] ss:$16 sps:$4 sm:$0xff]   ;;  %v7538_v36 = vld [vmem:[#allocation7 + $0xac] ss:$16 sps:$4 sm:$0xff]  }
  0xc6   :  { %1878 = vmatprep.subr.bf16.mxu1 %v7469_v37  ;;  %v7541_v37 = vld [vmem:[#allocation7 + $0x2ac] ss:$16 sps:$4 sm:$0xff]  }
  0xc8   :  { %1836 = vmatpush1.bf16.msra.mxu0 %v7464_v38  ;;  %v7536_v38 = vld [vmem:[#allocation7 + $0xa8] ss:$16 sps:$4 sm:$0xff]  }
  0xc9   :  { %1879 = vmatpush1.bf16.msra.mxu1 %v7467_v39  ;;  %1837 = vmatprep.subr.bf16.mxu0 %v7472_v43  ;;  %v7539_v39 = vld [vmem:[#allocation7 + $0x2a8] ss:$16 sps:$4 sm:$0xff]  }
  0xca   :  { %1880 = vmatprep.subr.bf16.mxu1 %v7475_v44  ;;  %v7545_v43 = vld [vmem:[#allocation7 + $0x288] ss:$16 sps:$4 sm:$0xff]   ;;  %v7550_v44 = vld [vmem:[#allocation7 + $0x6c] ss:$16 sps:$4 sm:$0xff]  }
  0xcc   :  { %1838 = vmatpush1.bf16.msra.mxu0 %v7470_v48  ;;  %v7548_v48 = vld [vmem:[#allocation7 + $0x68] ss:$16 sps:$4 sm:$0xff]  }
  0xcd   :  { %1881 = vmatpush1.bf16.msra.mxu1 %v7473_v49  ;;  %1839 = vmatprep.subr.bf16.mxu0 %v7478_v50  ;;  %v7559_v49 = vld [vmem:[#allocation7 + $0x24c] ss:$16 sps:$4 sm:$0xff]   ;;  %v7554_v50 = vld [vmem:[#allocation7 + $0x48] ss:$16 sps:$4 sm:$0xff]  }
  0xce   :  { %1882 = vmatprep.subr.bf16.mxu1 %v7481_v51  ;;  %v7557_v51 = vld [vmem:[#allocation7 + $0x248] ss:$16 sps:$4 sm:$0xff]  }
  0xd0   :  { %1840 = vmatpush2.bf16.msra.mxu0 %v7476_v52  ;;  %v7562_v52 = vld [vmem:[#allocation7 + $0x2c] ss:$16 sps:$4 sm:$0xff]  }
  0xd1   :  { %1883 = vmatpush2.bf16.msra.mxu1 %v7479_v55  ;;  %1841 = vmatprep.subr.bf16.mxu0 %v7484_v56  ;;  %v7565_v55 = vld [vmem:[#allocation7 + $0x22c] ss:$16 sps:$4 sm:$0xff]   ;;  %v7560_v56 = vld [vmem:[#allocation7 + $0x28] ss:$16 sps:$4 sm:$0xff]  }
  0xd2   :  { %1884 = vmatprep.subr.bf16.mxu1 %v7487_v57  ;;  %v7563_v57 = vld [vmem:[#allocation7 + $0x228] ss:$16 sps:$4 sm:$0xff]  }
  0xd4   :  { %1842 = vmatpush2.bf16.msra.mxu0 %v7482_v58  ;;  %v7568_v58 = vld [vmem:[#allocation7 + $0xc] ss:$16 sps:$4 sm:$0xff]  }
  0xd5   :  { %1885 = vmatpush2.bf16.msra.mxu1 %v7485_v59  ;;  %1843 = vmatprep.subr.bf16.mxu0 %v7490_v60  ;;  %v7571_v59 = vld [vmem:[#allocation7 + $0x20c] ss:$16 sps:$4 sm:$0xff]   ;;  %v7566_v60 = vld [vmem:[#allocation7 + $0x8] ss:$16 sps:$4 sm:$0xff]  }
  0xd6   :  { %1886 = vmatprep.subr.bf16.mxu1 %v7493_v61  ;;  %v7569_v61 = vld [vmem:[#allocation7 + $0x208] ss:$16 sps:$4 sm:$0xff]  }
  0xd8   :  { %1844 = vmatpush2.bf16.msra.mxu0 %v7488_v62  ;;  %v7574_v62 = vld [vmem:[#allocation7 + $0x1ec] ss:$16 sps:$4 sm:$0xff]  }
  0xd9   :  { %1887 = vmatpush2.bf16.msra.mxu1 %v7491_v63  ;;  %1845 = vmatprep.subr.bf16.mxu0 %v7496_v0  ;;  %v7577_v63 = vld [vmem:[#allocation7 + $0x3ec] ss:$16 sps:$4 sm:$0xff]   ;;  %v7572_v0 = vld [vmem:[#allocation7 + $0x1e8] ss:$16 sps:$4 sm:$0xff]  }
  0xda   :  { %1888 = vmatprep.subr.bf16.mxu1 %v7499_v1  ;;  %v7575_v1 = vld [vmem:[#allocation7 + $0x3e8] ss:$16 sps:$4 sm:$0xff]  }
  0xdc   :  { %1846 = vmatpush2.bf16.msra.mxu0 %v7494_v2  ;;  %v7580_v2 = vld [vmem:[#allocation7 + $0x1cc] ss:$16 sps:$4 sm:$0xff]  }
  0xdd   :  { %1889 = vmatpush2.bf16.msra.mxu1 %v7497_v3  ;;  %1847 = vmatprep.subr.bf16.mxu0 %v7502_v4  ;;  %v7583_v3 = vld [vmem:[#allocation7 + $0x3cc] ss:$16 sps:$4 sm:$0xff]   ;;  %v7578_v4 = vld [vmem:[#allocation7 + $0x1c8] ss:$16 sps:$4 sm:$0xff]  }
  0xde   :  { %1890 = vmatprep.subr.bf16.mxu1 %v7505_v5  ;;  %v7581_v5 = vld [vmem:[#allocation7 + $0x3c8] ss:$16 sps:$4 sm:$0xff]  }
  0xe0   :  { %1848 = vmatpush2.bf16.msra.mxu0 %v7500_v6  ;;  %v7586_v6 = vld [vmem:[#allocation7 + $0x1ac] ss:$16 sps:$4 sm:$0xff]  }
  0xe1   :  { %1891 = vmatpush2.bf16.msra.mxu1 %v7503_v7  ;;  %1849 = vmatprep.subr.bf16.mxu0 %v7508_v8  ;;  %v7589_v7 = vld [vmem:[#allocation7 + $0x3ac] ss:$16 sps:$4 sm:$0xff]   ;;  %v7584_v8 = vld [vmem:[#allocation7 + $0x1a8] ss:$16 sps:$4 sm:$0xff]  }
  0xe2   :  { %1892 = vmatprep.subr.bf16.mxu1 %v7511_v9  ;;  %v7587_v9 = vld [vmem:[#allocation7 + $0x3a8] ss:$16 sps:$4 sm:$0xff]  }
  0xe4   :  { %1850 = vmatpush2.bf16.msra.mxu0 %v7506_v10  ;;  %v7592_v10 = vld [vmem:[#allocation7 + $0x18c] ss:$16 sps:$4 sm:$0xff]  }
  0xe5   :  { %1893 = vmatpush2.bf16.msra.mxu1 %v7509_v11  ;;  %1851 = vmatprep.subr.bf16.mxu0 %v7514_v14  ;;  %v7595_v11 = vld [vmem:[#allocation7 + $0x38c] ss:$16 sps:$4 sm:$0xff]   ;;  %v7590_v14 = vld [vmem:[#allocation7 + $0x188] ss:$16 sps:$4 sm:$0xff]  }
  0xe6   :  { %1894 = vmatprep.subr.bf16.mxu1 %v7517_v15  ;;  %v7593_v15 = vld [vmem:[#allocation7 + $0x388] ss:$16 sps:$4 sm:$0xff]  }
  0xe8   :  { %1852 = vmatpush2.bf16.msra.mxu0 %v7512_v16  ;;  %v7598_v16 = vld [vmem:[#allocation7 + $0x16c] ss:$16 sps:$4 sm:$0xff]  }
  0xe9   :  { %1895 = vmatpush2.bf16.msra.mxu1 %v7515_v17  ;;  %1853 = vmatprep.subr.bf16.mxu0 %v7520_v18  ;;  %v7601_v17 = vld [vmem:[#allocation7 + $0x36c] ss:$16 sps:$4 sm:$0xff]   ;;  %v7596_v18 = vld [vmem:[#allocation7 + $0x168] ss:$16 sps:$4 sm:$0xff]  }
  0xea   :  { %1896 = vmatprep.subr.bf16.mxu1 %v7523_v19  ;;  %v7599_v19 = vld [vmem:[#allocation7 + $0x368] ss:$16 sps:$4 sm:$0xff]  }
  0xec   :  { %1854 = vmatpush2.bf16.msra.mxu0 %v7518_v20  ;;  %v7604_v20 = vld [vmem:[#allocation7 + $0x14c] ss:$16 sps:$4 sm:$0xff]  }
  0xed   :  { %1897 = vmatpush2.bf16.msra.mxu1 %v7521_v21  ;;  %1909 = vmatprep.subr.bf16.mxu0 %v7526_v26  ;;  %v7607_v21 = vld [vmem:[#allocation7 + $0x34c] ss:$16 sps:$4 sm:$0xff]   ;;  %v7608_v26 = vld [vmem:[#allocation7 + $0x128] ss:$16 sps:$4 sm:$0xff]  }
  0xee   :  { %1952 = vmatprep.subr.bf16.mxu1 %v7529_v27  ;;  %v7611_v27 = vld [vmem:[#allocation7 + $0x328] ss:$16 sps:$4 sm:$0xff]  }
  0xef   :  { %1856 = vmatmul.mubr.bf16.vlgmr.msra.gmra.mxu0 %v8808_v28 }
  0xf0   :  { %1899 = vmatmul.mubr.bf16.vlgmr.msra.gmra.mxu1 %v8810_v29  ;;  %1910 = vmatpush1.bf16.msra.mxu0 %v7524_v30  ;;  %v7616_v30 = vld [vmem:[#allocation7 + $0x10c] ss:$16 sps:$4 sm:$0xff]  }
  0xf1   :  { %1953 = vmatpush1.bf16.msra.mxu1 %v7527_v31  ;;  %1911 = vmatprep.subr.bf16.mxu0 %v7532_v32  ;;  %v7619_v31 = vld [vmem:[#allocation7 + $0x30c] ss:$16 sps:$4 sm:$0xff]   ;;  %v7614_v32 = vld [vmem:[#allocation7 + $0x108] ss:$16 sps:$4 sm:$0xff]  }
  0xf2   :  { %1954 = vmatprep.subr.bf16.mxu1 %v7535_v33  ;;  %1941 = vmatprep.mubr.bf16.mxu0 %v8790_v53  ;;  %v7551_v53 = vld [vmem:[#allocation7 + $0x268] ss:$16 sps:$4 sm:$0xff]  }
  0xf3   :  { %1984 = vmatprep.mubr.bf16.mxu1 %v8792_v54  ;;  %v7556_v54 = vld [vmem:[#allocation7 + $0x4c] ss:$16 sps:$4 sm:$0xff]   ;;  %v7617_v33 = vld [vmem:[#allocation7 + $0x308] ss:$16 sps:$4 sm:$0xff]  }
  0xf4   :  { %1912 = vmatpush1.bf16.msra.mxu0 %v7530_v34  ;;  %v7622_v34 = vld [vmem:[#allocation7 + $0x4ec] ss:$16 sps:$4 sm:$0xff]  }
  0xf5   :  { %1955 = vmatpush1.bf16.msra.mxu1 %v7533_v35  ;;  %1913 = vmatprep.subr.bf16.mxu0 %v7538_v36  ;;  %v7625_v35 = vld [vmem:[#allocation7 + $0x6ec] ss:$16 sps:$4 sm:$0xff]   ;;  %v7620_v36 = vld [vmem:[#allocation7 + $0x4e8] ss:$16 sps:$4 sm:$0xff]  }
  0xf6   :  { %1956 = vmatprep.subr.bf16.mxu1 %v7541_v37  ;;  %v7623_v37 = vld [vmem:[#allocation7 + $0x6e8] ss:$16 sps:$4 sm:$0xff]  }
  0xf8   :  { %1914 = vmatpush1.bf16.msra.mxu0 %v7536_v38  ;;  %v7628_v38 = vld [vmem:[#allocation7 + $0x4cc] ss:$16 sps:$4 sm:$0xff]  }
  0xf9   :  { %1957 = vmatpush1.bf16.msra.mxu1 %v7539_v39  ;;  %1915 = vmatprep.subr.bf16.mxu0 %v7544_v40  ;;  %v7631_v39 = vld [vmem:[#allocation7 + $0x6cc] ss:$16 sps:$4 sm:$0xff]   ;;  %v7626_v40 = vld [vmem:[#allocation7 + $0x4c8] ss:$16 sps:$4 sm:$0xff]  }
  0xfa   :  { %1958 = vmatprep.subr.bf16.mxu1 %v7547_v41  ;;  %v7629_v41 = vld [vmem:[#allocation7 + $0x6c8] ss:$16 sps:$4 sm:$0xff]  }
  0xfc   :  { %1916 = vmatpush1.bf16.msra.mxu0 %v7542_v42  ;;  %v7634_v42 = vld [vmem:[#allocation7 + $0x4ac] ss:$16 sps:$4 sm:$0xff]  }
  0xfd   :  { %1959 = vmatpush1.bf16.msra.mxu1 %v7545_v43  ;;  %1917 = vmatprep.subr.bf16.mxu0 %v7550_v44  ;;  %v7637_v43 = vld [vmem:[#allocation7 + $0x6ac] ss:$16 sps:$4 sm:$0xff]   ;;  %v7632_v44 = vld [vmem:[#allocation7 + $0x4a8] ss:$16 sps:$4 sm:$0xff]  }
  0xfe   :  { %1960 = vmatprep.subr.bf16.mxu1 %v7553_v46  ;;  %v7635_v46 = vld [vmem:[#allocation7 + $0x6a8] ss:$16 sps:$4 sm:$0xff]  }
 0x100   :  { %1918 = vmatpush1.bf16.msra.mxu0 %v7548_v48  ;;  %v7640_v48 = vld [vmem:[#allocation7 + $0x48c] ss:$16 sps:$4 sm:$0xff]  }
 0x101   :  { %1961 = vmatpush1.bf16.msra.mxu1 %v7551_v53  ;;  %1919 = vmatprep.subr.bf16.mxu0 %v7556_v54  ;;  %v7638_v53 = vld [vmem:[#allocation7 + $0x488] ss:$16 sps:$4 sm:$0xff]   ;;  %v7646_v54 = vld [vmem:[#allocation7 + $0x46c] ss:$16 sps:$4 sm:$0xff]  }
 0x102   :  { %1962 = vmatprep.subr.bf16.mxu1 %v7559_v49  ;;  %v7649_v49 = vld [vmem:[#allocation7 + $0x66c] ss:$16 sps:$4 sm:$0xff]  }
 0x104   :  { %1920 = vmatpush1.bf16.msra.mxu0 %v7554_v50  ;;  %v7644_v50 = vld [vmem:[#allocation7 + $0x468] ss:$16 sps:$4 sm:$0xff]  }
 0x105   :  { %1963 = vmatpush1.bf16.msra.mxu1 %v7557_v51  ;;  %1921 = vmatprep.subr.bf16.mxu0 %v7562_v52  ;;  %v7647_v51 = vld [vmem:[#allocation7 + $0x668] ss:$16 sps:$4 sm:$0xff]  }
 0x106   :  { %1964 = vmatprep.subr.bf16.mxu1 %v7565_v55  ;;  %v7650_v52 = vld [vmem:[#allocation7 + $0x448] ss:$16 sps:$4 sm:$0xff]  }
 0x107   :  { %v7653_v55 = vld [vmem:[#allocation7 + $0x648] ss:$16 sps:$4 sm:$0xff]  }
 0x108   :  { %1922 = vmatpush1.bf16.msra.mxu0 %v7560_v56  ;;  %v7658_v56 = vld [vmem:[#allocation7 + $0x42c] ss:$16 sps:$4 sm:$0xff]  }
 0x109   :  { %1965 = vmatpush1.bf16.msra.mxu1 %v7563_v57  ;;  %1923 = vmatprep.subr.bf16.mxu0 %v7568_v58  ;;  %v7661_v57 = vld [vmem:[#allocation7 + $0x62c] ss:$16 sps:$4 sm:$0xff]   ;;  %v7656_v58 = vld [vmem:[#allocation7 + $0x428] ss:$16 sps:$4 sm:$0xff]  }
 0x10a   :  { %1966 = vmatprep.subr.bf16.mxu1 %v7571_v59  ;;  %v7659_v59 = vld [vmem:[#allocation7 + $0x628] ss:$16 sps:$4 sm:$0xff]  }
 0x10c   :  { %1924 = vmatpush1.bf16.msra.mxu0 %v7566_v60  ;;  %v7664_v60 = vld [vmem:[#allocation7 + $0x40c] ss:$16 sps:$4 sm:$0xff]  }
 0x10d   :  { %1967 = vmatpush1.bf16.msra.mxu1 %v7569_v61  ;;  %1925 = vmatprep.subr.bf16.mxu0 %v7574_v62  ;;  %v7667_v61 = vld [vmem:[#allocation7 + $0x60c] ss:$16 sps:$4 sm:$0xff]   ;;  %v7662_v62 = vld [vmem:[#allocation7 + $0x408] ss:$16 sps:$4 sm:$0xff]  }
 0x10e   :  { %1968 = vmatprep.subr.bf16.mxu1 %v7577_v63  ;;  %v7665_v63 = vld [vmem:[#allocation7 + $0x608] ss:$16 sps:$4 sm:$0xff]  }
 0x110   :  { %1926 = vmatpush2.bf16.msra.mxu0 %v7572_v0  ;;  %v7670_v0 = vld [vmem:[#allocation7 + $0x5ec] ss:$16 sps:$4 sm:$0xff]  }
 0x111   :  { %1969 = vmatpush2.bf16.msra.mxu1 %v7575_v1  ;;  %1927 = vmatprep.subr.bf16.mxu0 %v7580_v2  ;;  %v7673_v1 = vld [vmem:[#allocation7 + $0x7ec] ss:$16 sps:$4 sm:$0xff]   ;;  %v7668_v2 = vld [vmem:[#allocation7 + $0x5e8] ss:$16 sps:$4 sm:$0xff]  }
 0x112   :  { %1970 = vmatprep.subr.bf16.mxu1 %v7583_v3  ;;  %v7671_v3 = vld [vmem:[#allocation7 + $0x7e8] ss:$16 sps:$4 sm:$0xff]  }
 0x114   :  { %1928 = vmatpush2.bf16.msra.mxu0 %v7578_v4  ;;  %v7676_v4 = vld [vmem:[#allocation7 + $0x5cc] ss:$16 sps:$4 sm:$0xff]  }
 0x115   :  { %1971 = vmatpush2.bf16.msra.mxu1 %v7581_v5  ;;  %1929 = vmatprep.subr.bf16.mxu0 %v7586_v6  ;;  %v7679_v5 = vld [vmem:[#allocation7 + $0x7cc] ss:$16 sps:$4 sm:$0xff]   ;;  %v7674_v6 = vld [vmem:[#allocation7 + $0x5c8] ss:$16 sps:$4 sm:$0xff]  }
 0x116   :  { %1972 = vmatprep.subr.bf16.mxu1 %v7589_v7  ;;  %v7677_v7 = vld [vmem:[#allocation7 + $0x7c8] ss:$16 sps:$4 sm:$0xff]  }
 0x118   :  { %1930 = vmatpush2.bf16.msra.mxu0 %v7584_v8  ;;  %v7682_v8 = vld [vmem:[#allocation7 + $0x5ac] ss:$16 sps:$4 sm:$0xff]  }
 0x119   :  { %1973 = vmatpush2.bf16.msra.mxu1 %v7587_v9  ;;  %1931 = vmatprep.subr.bf16.mxu0 %v7592_v10  ;;  %v7685_v9 = vld [vmem:[#allocation7 + $0x7ac] ss:$16 sps:$4 sm:$0xff]   ;;  %v7680_v10 = vld [vmem:[#allocation7 + $0x5a8] ss:$16 sps:$4 sm:$0xff]  }
 0x11a   :  { %1974 = vmatprep.subr.bf16.mxu1 %v7595_v11  ;;  %v7683_v11 = vld [vmem:[#allocation7 + $0x7a8] ss:$16 sps:$4 sm:$0xff]  }
 0x11c   :  { %1932 = vmatpush2.bf16.msra.mxu0 %v7590_v14  ;;  %v7688_v14 = vld [vmem:[#allocation7 + $0x58c] ss:$16 sps:$4 sm:$0xff]  }
 0x11d   :  { %1975 = vmatpush2.bf16.msra.mxu1 %v7593_v15  ;;  %1933 = vmatprep.subr.bf16.mxu0 %v7598_v16  ;;  %v7691_v15 = vld [vmem:[#allocation7 + $0x78c] ss:$16 sps:$4 sm:$0xff]   ;;  %v7686_v16 = vld [vmem:[#allocation7 + $0x588] ss:$16 sps:$4 sm:$0xff]  }
 0x11e   :  { %1976 = vmatprep.subr.bf16.mxu1 %v7601_v17  ;;  %v7689_v17 = vld [vmem:[#allocation7 + $0x788] ss:$16 sps:$4 sm:$0xff]  }
 0x120   :  { %1934 = vmatpush2.bf16.msra.mxu0 %v7596_v18  ;;  %v7694_v18 = vld [vmem:[#allocation7 + $0x56c] ss:$16 sps:$4 sm:$0xff]  }
 0x121   :  { %1977 = vmatpush2.bf16.msra.mxu1 %v7599_v19  ;;  %1935 = vmatprep.subr.bf16.mxu0 %v7604_v20  ;;  %v7697_v19 = vld [vmem:[#allocation7 + $0x76c] ss:$16 sps:$4 sm:$0xff]   ;;  %v7692_v20 = vld [vmem:[#allocation7 + $0x568] ss:$16 sps:$4 sm:$0xff]  }
 0x122   :  { %1978 = vmatprep.subr.bf16.mxu1 %v7607_v21  ;;  %v7695_v21 = vld [vmem:[#allocation7 + $0x768] ss:$16 sps:$4 sm:$0xff]  }
 0x124   :  { %1936 = vmatpush2.bf16.msra.mxu0 %v7602_v22  ;;  %v7700_v22 = vld [vmem:[#allocation7 + $0x54c] ss:$16 sps:$4 sm:$0xff]  }
 0x125   :  { %1979 = vmatpush2.bf16.msra.mxu1 %v7605_v23  ;;  %1937 = vmatprep.subr.bf16.mxu0 %v7610_v24  ;;  %v7703_v23 = vld [vmem:[#allocation7 + $0x74c] ss:$16 sps:$4 sm:$0xff]   ;;  %v7698_v24 = vld [vmem:[#allocation7 + $0x548] ss:$16 sps:$4 sm:$0xff]  }
 0x126   :  { %1980 = vmatprep.subr.bf16.mxu1 %v7613_v25  ;;  %v7701_v25 = vld [vmem:[#allocation7 + $0x748] ss:$16 sps:$4 sm:$0xff]  }
 0x128   :  { %1938 = vmatpush2.bf16.msra.mxu0 %v7608_v26  ;;  %v7706_v26 = vld [vmem:[#allocation7 + $0x52c] ss:$16 sps:$4 sm:$0xff]  }
 0x129   :  { %1981 = vmatpush2.bf16.msra.mxu1 %v7611_v27  ;;  %1939 = vmatprep.subr.bf16.mxu0 %v7616_v30  ;;  %v7709_v27 = vld [vmem:[#allocation7 + $0x72c] ss:$16 sps:$4 sm:$0xff]   ;;  %v7704_v30 = vld [vmem:[#allocation7 + $0x528] ss:$16 sps:$4 sm:$0xff]  }
 0x12a   :  { %1982 = vmatprep.subr.bf16.mxu1 %v7619_v31  ;;  %v7707_v31 = vld [vmem:[#allocation7 + $0x728] ss:$16 sps:$4 sm:$0xff]  }
 0x12c   :  { %1940 = vmatpush2.bf16.msra.mxu0 %v7614_v32  ;;  %v7712_v32 = vld [vmem:[#allocation7 + $0x50c] ss:$16 sps:$4 sm:$0xff]  }
 0x12d   :  { %1983 = vmatpush2.bf16.msra.mxu1 %v7617_v33  ;;  %1995 = vmatprep.subr.bf16.mxu0 %v7622_v34  ;;  %v7715_v33 = vld [vmem:[#allocation7 + $0x70c] ss:$16 sps:$4 sm:$0xff]   ;;  %v7710_v34 = vld [vmem:[#allocation7 + $0x508] ss:$16 sps:$4 sm:$0xff]  }
 0x12e   :  { %2038 = vmatprep.subr.bf16.mxu1 %v7625_v35  ;;  %v7713_v35 = vld [vmem:[#allocation7 + $0x708] ss:$16 sps:$4 sm:$0xff]  }
 0x12f   :  { %1942 = vmatmul.mubr.bf16.vlgmr.msra.gmra.mxu0 %v8796_v12  ;;  %v7643_v12 = vld [vmem:[#allocation7 + $0x68c] ss:$16 sps:$4 sm:$0xff]  }
 0x130   :  { %1985 = vmatmul.mubr.bf16.vlgmr.msra.gmra.mxu1 %v8798_v13  ;;  %1996 = vmatpush1.bf16.msra.mxu0 %v7620_v36  ;;  %v7641_v13 = vld [vmem:[#allocation7 + $0x688] ss:$16 sps:$4 sm:$0xff]   ;;  %v7718_v36 = vld [vmem:[#allocation8 + $0xe4] ss:$16 sps:$4 sm:$0xff]  }
 0x131   :  { %2039 = vmatpush1.bf16.msra.mxu1 %v7623_v37  ;;  %1997 = vmatprep.subr.bf16.mxu0 %v7628_v38  ;;  %v7716_v37 = vld [vmem:[#allocation8 + $0xe0] ss:$16 sps:$4 sm:$0xff]   ;;  %v7721_v38 = vld [vmem:[#allocation8 + $0xc4] ss:$16 sps:$4 sm:$0xff]  }
 0x132   :  { %2040 = vmatprep.subr.bf16.mxu1 %v7631_v39  ;;  %2027 = vmatprep.mubr.bf16.mxu0 %v8802_v45  ;;  %v7652_v45 = vld [vmem:[#allocation7 + $0x44c] ss:$16 sps:$4 sm:$0xff]   ;;  %v7719_v39 = vld [vmem:[#allocation8 + $0xc0] ss:$16 sps:$4 sm:$0xff]  }
 0x133   :  { %2070 = vmatprep.mubr.bf16.mxu1 %v8804_v47  ;;  %v7655_v47 = vld [vmem:[#allocation7 + $0x64c] ss:$16 sps:$4 sm:$0xff]  }
 0x134   :  { %1998 = vmatpush1.bf16.msra.mxu0 %v7626_v40  ;;  %v7724_v40 = vld [vmem:[#allocation8 + $0xa4] ss:$16 sps:$4 sm:$0xff]  }
 0x135   :  { %2041 = vmatpush1.bf16.msra.mxu1 %v7629_v41  ;;  %1999 = vmatprep.subr.bf16.mxu0 %v7634_v42  ;;  %v7722_v41 = vld [vmem:[#allocation8 + $0xa0] ss:$16 sps:$4 sm:$0xff]   ;;  %v7727_v42 = vld [vmem:[#allocation8 + $0x84] ss:$16 sps:$4 sm:$0xff]  }
 0x136   :  { %2042 = vmatprep.subr.bf16.mxu1 %v7637_v43  ;;  %v7725_v43 = vld [vmem:[#allocation8 + $0x80] ss:$16 sps:$4 sm:$0xff]  }
 0x138   :  { %2000 = vmatpush1.bf16.msra.mxu0 %v7632_v44  ;;  %v7730_v44 = vld [vmem:[#allocation8 + $0x64] ss:$16 sps:$4 sm:$0xff]  }
 0x139   :  { %2043 = vmatpush1.bf16.msra.mxu1 %v7635_v46  ;;  %2001 = vmatprep.subr.bf16.mxu0 %v7640_v48  ;;  %v7728_v46 = vld [vmem:[#allocation8 + $0x60] ss:$16 sps:$4 sm:$0xff]   ;;  %v7733_v48 = vld [vmem:[#allocation8 + $0x44] ss:$16 sps:$4 sm:$0xff]  }
 0x13a   :  { %2044 = vmatprep.subr.bf16.mxu1 %v7643_v12  ;;  %v7812_v12 = vld [vmem:[#allocation8 + $0x2e0] ss:$16 sps:$4 sm:$0xff]  }
 0x13c   :  { %2002 = vmatpush1.bf16.msra.mxu0 %v7638_v53  ;;  %v7814_v53 = vld [vmem:[#allocation8 + $0x2e4] ss:$16 sps:$4 sm:$0xff]  }
 0x13d   :  { %2045 = vmatpush1.bf16.msra.mxu1 %v7641_v13  ;;  %2003 = vmatprep.subr.bf16.mxu0 %v7646_v54  ;;  %v7731_v13 = vld [vmem:[#allocation8 + $0x40] ss:$16 sps:$4 sm:$0xff]   ;;  %v7820_v54 = vld [vmem:[#allocation8 + $0x2a4] ss:$16 sps:$4 sm:$0xff]  }
 0x13e   :  { %2046 = vmatprep.subr.bf16.mxu1 %v7649_v49  ;;  %v7736_v49 = vld [vmem:[#allocation8 + $0x24] ss:$16 sps:$4 sm:$0xff]  }
 0x140   :  { %2004 = vmatpush1.bf16.msra.mxu0 %v7644_v50  ;;  %v7818_v50 = vld [vmem:[#allocation8 + $0x2a0] ss:$16 sps:$4 sm:$0xff]  }
 0x141   :  { %2047 = vmatpush1.bf16.msra.mxu1 %v7647_v51  ;;  %2005 = vmatprep.subr.bf16.mxu0 %v7652_v45  ;;  %v7734_v51 = vld [vmem:[#allocation8 + $0x20] ss:$16 sps:$4 sm:$0xff]   ;;  %v7823_v45 = vld [vmem:[#allocation8 + $0x284] ss:$16 sps:$4 sm:$0xff]  }
 0x142   :  { %2048 = vmatprep.subr.bf16.mxu1 %v7655_v47  ;;  %v7739_v47 = vld [vmem:[#allocation8 + $0x4] ss:$16 sps:$4 sm:$0xff]  }
 0x144   :  { %2006 = vmatpush1.bf16.msra.mxu0 %v7650_v52  ;;  %v7737_v52 = vld [vmem:[#allocation8] ss:$16 sps:$4 sm:$0xff]  }
 0x145   :  { %2049 = vmatpush1.bf16.msra.mxu1 %v7653_v55  ;;  %2007 = vmatprep.subr.bf16.mxu0 %v7658_v56  ;;  %v7821_v55 = vld [vmem:[#allocation8 + $0x280] ss:$16 sps:$4 sm:$0xff]   ;;  %v7826_v56 = vld [vmem:[#allocation8 + $0x264] ss:$16 sps:$4 sm:$0xff]  }
 0x146   :  { %2050 = vmatprep.subr.bf16.mxu1 %v7661_v57  ;;  %v7742_v57 = vld [vmem:[#allocation8 + $0x1e4] ss:$16 sps:$4 sm:$0xff]  }
 0x148   :  { %2008 = vmatpush1.bf16.msra.mxu0 %v7656_v58  ;;  %v7824_v58 = vld [vmem:[#allocation8 + $0x260] ss:$16 sps:$4 sm:$0xff]  }
 0x149   :  { %2051 = vmatpush1.bf16.msra.mxu1 %v7659_v59  ;;  %2009 = vmatprep.subr.bf16.mxu0 %v7664_v60  ;;  %v7740_v59 = vld [vmem:[#allocation8 + $0x1e0] ss:$16 sps:$4 sm:$0xff]   ;;  %v7829_v60 = vld [vmem:[#allocation8 + $0x244] ss:$16 sps:$4 sm:$0xff]  }
 0x14a   :  { %2052 = vmatprep.subr.bf16.mxu1 %v7667_v61  ;;  %v7745_v61 = vld [vmem:[#allocation8 + $0x1c4] ss:$16 sps:$4 sm:$0xff]  }
 0x14c   :  { %2010 = vmatpush1.bf16.msra.mxu0 %v7662_v62  ;;  %v7827_v62 = vld [vmem:[#allocation8 + $0x240] ss:$16 sps:$4 sm:$0xff]  }
 0x14d   :  { %2053 = vmatpush1.bf16.msra.mxu1 %v7665_v63  ;;  %2011 = vmatprep.subr.bf16.mxu0 %v7670_v0  ;;  %v7743_v63 = vld [vmem:[#allocation8 + $0x1c0] ss:$16 sps:$4 sm:$0xff]   ;;  %v7832_v0 = vld [vmem:[#allocation8 + $0x224] ss:$16 sps:$4 sm:$0xff]  }
 0x14e   :  { %2054 = vmatprep.subr.bf16.mxu1 %v7673_v1  ;;  %v7748_v1 = vld [vmem:[#allocation8 + $0x1a4] ss:$16 sps:$4 sm:$0xff]  }
 0x150   :  { %2012 = vmatpush2.bf16.msra.mxu0 %v7668_v2  ;;  %v7830_v2 = vld [vmem:[#allocation8 + $0x220] ss:$16 sps:$4 sm:$0xff]  }
 0x151   :  { %2055 = vmatpush2.bf16.msra.mxu1 %v7671_v3  ;;  %2013 = vmatprep.subr.bf16.mxu0 %v7676_v4  ;;  %v7746_v3 = vld [vmem:[#allocation8 + $0x1a0] ss:$16 sps:$4 sm:$0xff]   ;;  %v7835_v4 = vld [vmem:[#allocation8 + $0x204] ss:$16 sps:$4 sm:$0xff]  }
 0x152   :  { %2056 = vmatprep.subr.bf16.mxu1 %v7679_v5  ;;  %v7751_v5 = vld [vmem:[#allocation8 + $0x184] ss:$16 sps:$4 sm:$0xff]  }
 0x154   :  { %2014 = vmatpush2.bf16.msra.mxu0 %v7674_v6  ;;  %v7833_v6 = vld [vmem:[#allocation8 + $0x200] ss:$16 sps:$4 sm:$0xff]  }
 0x155   :  { %2057 = vmatpush2.bf16.msra.mxu1 %v7677_v7  ;;  %2015 = vmatprep.subr.bf16.mxu0 %v7682_v8  ;;  %v7749_v7 = vld [vmem:[#allocation8 + $0x180] ss:$16 sps:$4 sm:$0xff]   ;;  %v7838_v8 = vld [vmem:[#allocation8 + $0x3e4] ss:$16 sps:$4 sm:$0xff]  }
 0x156   :  { %2058 = vmatprep.subr.bf16.mxu1 %v7685_v9  ;;  %v7754_v9 = vld [vmem:[#allocation8 + $0x164] ss:$16 sps:$4 sm:$0xff]  }
 0x158   :  { %2016 = vmatpush2.bf16.msra.mxu0 %v7680_v10  ;;  %v7836_v10 = vld [vmem:[#allocation8 + $0x3e0] ss:$16 sps:$4 sm:$0xff]  }
 0x159   :  { %2059 = vmatpush2.bf16.msra.mxu1 %v7683_v11  ;;  %2017 = vmatprep.subr.bf16.mxu0 %v7688_v14  ;;  %v7752_v11 = vld [vmem:[#allocation8 + $0x160] ss:$16 sps:$4 sm:$0xff]   ;;  %v7841_v14 = vld [vmem:[#allocation8 + $0x3c4] ss:$16 sps:$4 sm:$0xff]  }
 0x15a   :  { %2060 = vmatprep.subr.bf16.mxu1 %v7691_v15  ;;  %v7757_v15 = vld [vmem:[#allocation8 + $0x144] ss:$16 sps:$4 sm:$0xff]  }
 0x15c   :  { %2018 = vmatpush2.bf16.msra.mxu0 %v7686_v16  ;;  %v441_v16 = vlaneseq }
 0x15d   :  { %2061 = vmatpush2.bf16.msra.mxu1 %v7689_v17  ;;  %2019 = vmatprep.subr.bf16.mxu0 %v7694_v18  ;;  %v7839_v17 = vld [vmem:[#allocation8 + $0x3c0] ss:$16 sps:$4 sm:$0xff]  }
 0x15e   :  { %2062 = vmatprep.subr.bf16.mxu1 %v7697_v19  ;;  %v7755_v18 = vld [vmem:[#allocation8 + $0x140] ss:$16 sps:$4 sm:$0xff]   ;;  %v7844_v19 = vld [vmem:[#allocation8 + $0x3a4] ss:$16 sps:$4 sm:$0xff]  }
 0x160   :  { %2020 = vmatpush2.bf16.msra.mxu0 %v7692_v20  ;;  %v7760_v20 = vld [vmem:[#allocation8 + $0x124] ss:$16 sps:$4 sm:$0xff]  }
 0x161   :  { %2063 = vmatpush2.bf16.msra.mxu1 %v7695_v21  ;;  %2021 = vmatprep.subr.bf16.mxu0 %v7700_v22  ;;  %v8822_v21 = vshrl.u32 %v441_v16, 7 }
 0x162   :  { %2064 = vmatprep.subr.bf16.mxu1 %v7703_v23 }
 0x164   :  { %2022 = vmatpush2.bf16.msra.mxu0 %v7698_v24  ;;  %v7842_v24 = vld [vmem:[#allocation8 + $0x3a0] ss:$16 sps:$4 sm:$0xff]  }
 0x165   :  { %2065 = vmatpush2.bf16.msra.mxu1 %v7701_v25  ;;  %2023 = vmatprep.subr.bf16.mxu0 %v7706_v26  ;;  %v7758_v25 = vld [vmem:[#allocation8 + $0x120] ss:$16 sps:$4 sm:$0xff]   ;;  %v7847_v26 = vld [vmem:[#allocation8 + $0x384] ss:$16 sps:$4 sm:$0xff]  }
 0x166   :  { %2066 = vmatprep.subr.bf16.mxu1 %v7709_v27  ;;  %v157_v27 = vld [vmem:[#allocation16 + $0x8] sm:$0xff] }
 0x168   :  { %2024 = vmatpush2.bf16.msra.mxu0 %v7704_v30  ;;  %v7763_v30 = vld [vmem:[#allocation8 + $0x104] ss:$16 sps:$4 sm:$0xff]  }
 0x169   :  { %2067 = vmatpush2.bf16.msra.mxu1 %v7707_v31  ;;  %2025 = vmatprep.subr.bf16.mxu0 %v7712_v32  ;;  %v156_v31 = vld [vmem:[#allocation16] sm:$0xff]  ;;  %v8825_v32 = vsub.s32 0, %v8822_v21 }
 0x16a   :  { %2068 = vmatprep.subr.bf16.mxu1 %v7715_v33 }
 0x16c   :  { %2026 = vmatpush2.bf16.msra.mxu0 %v7710_v34 }
 0x16d   :  { %2069 = vmatpush2.bf16.msra.mxu1 %v7713_v35  ;;  %2861 = vmatprep.subr.bf16.mxu0 %v7718_v36  ;;  %v7845_v35 = vld [vmem:[#allocation8 + $0x380] ss:$16 sps:$4 sm:$0xff]  }
 0x16e   :  { %2904 = vmatprep.subr.bf16.mxu1 %v7814_v53  ;;  %v7761_v36 = vld [vmem:[#allocation8 + $0x100] ss:$16 sps:$4 sm:$0xff]  }
 0x16f   :  { %2028 = vmatmul.mubr.bf16.vlgmr.msra.gmra.mxu0 %v8808_v28  ;;  %v7815_v28 = vld [vmem:[#allocation8 + $0x2c0] ss:$16 sps:$4 sm:$0xff]   ;;  %v1771_v22 = vpop.f32.mrf.mxu0 }
 0x170   :  { %2071 = vmatmul.mubr.bf16.vlgmr.msra.gmra.mxu1 %v8810_v29  ;;  %2862 = vmatpush1.bf16.msra.mxu0 %v7716_v37  ;;  %v7817_v29 = vld [vmem:[#allocation8 + $0x2c4] ss:$16 sps:$4 sm:$0xff]   ;;  %v1814_v23 = vpop.f32.mrf.mxu1 }
 0x171   :  { %2863 = vmatprep.subr.bf16.mxu0 %v7721_v38  ;;  %2905 = vmatpush1.bf16.msra.mxu1 %v7812_v12  ;;  %v1773_v33 = vpop.f32.mrf.mxu0  ;;  %v7850_v37 = vld [vmem:[#allocation8 + $0x364] ss:$16 sps:$4 sm:$0xff]   ;;  %v7766_v38 = vld [vmem:[#allocation8 + $0xec] ss:$16 sps:$4 sm:$0xff]  }
 0x172   :  { %2906 = vmatprep.subr.bf16.mxu1 %v7817_v29  ;;  %v1816_v34 = vpop.f32.mrf.mxu1 }
 0x174   :  { %2864 = vmatpush1.bf16.msra.mxu0 %v7719_v39  ;;  %v448_v39 = vrot.slane %v157_v27, %v8825_v32  ;;  %v7781_v27 = vld [vmem:[#allocation8 + $0x4c] ss:$16 sps:$4 sm:$0xff]  }
 0x175   :  { %2865 = vmatprep.subr.bf16.mxu0 %v7724_v40  ;;  %2907 = vmatpush1.bf16.msra.mxu1 %v7815_v28  ;;  %v444_v40 = vrot.slane %v156_v31, %v8825_v32  ;;  %v7784_v31 = vld [vmem:[#allocation8 + $0x2c] ss:$16 sps:$4 sm:$0xff]  }
 0x176   :  { %2908 = vmatprep.subr.bf16.mxu1 %v7820_v54 }
 0x178   :  { %2866 = vmatpush1.bf16.msra.mxu0 %v7722_v41  ;;  %v1775_v41 = vpop.f32.mrf.mxu0 }
 0x179   :  { %2867 = vmatprep.subr.bf16.mxu0 %v7727_v42  ;;  %2909 = vmatpush1.bf16.msra.mxu1 %v7818_v50  ;;  %v1818_v42 = vpop.f32.mrf.mxu1  ;;  %v1776_v53 = vadd.f32 %v1775_v41, %v444_v40  ;;  %v7794_v41 = vld [vmem:[#allocation8 + $0x1a8] ss:$16 sps:$4 sm:$0xff]  }
 0x17a   :  { %2910 = vmatprep.subr.bf16.mxu1 %v7823_v45  ;;  %v7853_v45 = vld [vmem:[#allocation8 + $0x344] ss:$16 sps:$4 sm:$0xff]  }
 0x17b   :  { %v1820_v12 = vpop.f32.mrf.mxu1 }
 0x17c   :  { %2868 = vmatpush1.bf16.msra.mxu0 %v7725_v43  ;;  %v7848_v43 = vld [vmem:[#allocation8 + $0x360] ss:$16 sps:$4 sm:$0xff]  }
 0x17d   :  { %2869 = vmatprep.subr.bf16.mxu0 %v7730_v44  ;;  %2911 = vmatpush1.bf16.msra.mxu1 %v7821_v55  ;;  %v1774_v44 = vadd.f32 %v1773_v33, %v448_v39  ;;  %v7851_v55 = vld [vmem:[#allocation8 + $0x340] ss:$16 sps:$4 sm:$0xff]   ;;  %v7782_v33 = vld [vmem:[#allocation8 + $0x28] ss:$16 sps:$4 sm:$0xff]  }
 0x17e   :  { %2912 = vmatprep.subr.bf16.mxu1 %v7826_v56 }
 0x180   :  { %2870 = vmatpush1.bf16.msra.mxu0 %v7728_v46  ;;  %v1772_v46 = vadd.f32 %v1771_v22, %v444_v40  ;;  %v7770_v22 = vld [vmem:[#allocation8 + $0xa8] ss:$16 sps:$4 sm:$0xff]   ;;  %v7796_v40 = vld [vmem:[#allocation8 + $0x1ac] ss:$16 sps:$4 sm:$0xff]  }
 0x181   :  { %2871 = vmatprep.subr.bf16.mxu0 %v7733_v48  ;;  %2913 = vmatpush1.bf16.msra.mxu1 %v7824_v58  ;;  %v1777_v48 = vpop.f32.mrf.mxu0 }
 0x182   :  { %2914 = vmatprep.subr.bf16.mxu1 %v7829_v60  ;;  %v1778_v54 = vadd.f32 %v1777_v48, %v448_v39  ;;  %v7791_v39 = vld [vmem:[#allocation8 + $0x1c8] ss:$16 sps:$4 sm:$0xff]   ;;  %v7805_v48 = vld [vmem:[#allocation8 + $0x14c] ss:$16 sps:$4 sm:$0xff]  }
 0x184   :  { %2872 = vmatpush1.bf16.msra.mxu0 %v7731_v13  ;;  %v1817_v13 = vadd.f32 %v1816_v34, %v1774_v44  ;;  %v7787_v34 = vld [vmem:[#allocation8 + $0xc] ss:$16 sps:$4 sm:$0xff]  }
 0x185   :  { %2873 = vmatprep.subr.bf16.mxu0 %v7736_v49  ;;  %2915 = vmatpush1.bf16.msra.mxu1 %v7827_v62  ;;  %v1815_v49 = vadd.f32 %v1814_v23, %v1772_v46  ;;  %v7856_v62 = vld [vmem:[#allocation8 + $0x324] ss:$16 sps:$4 sm:$0xff]   ;;  %v7775_v23 = vld [vmem:[#allocation8 + $0x8c] ss:$16 sps:$4 sm:$0xff]   ;;  %v7800_v46 = vld [vmem:[#allocation8 + $0x168] ss:$16 sps:$4 sm:$0xff]  }
 0x186   :  { %2916 = vmatprep.subr.bf16.mxu1 %v7832_v0  ;;  %v7802_v44 = vld [vmem:[#allocation8 + $0x16c] ss:$16 sps:$4 sm:$0xff]  }
 0x188   :  { %2874 = vmatpush1.bf16.msra.mxu0 %v7734_v51 }
 0x189   :  { %2875 = vmatprep.subr.bf16.mxu0 %v7739_v47  ;;  %2917 = vmatpush1.bf16.msra.mxu1 %v7830_v2  ;;  %v1819_v47 = vadd.f32 %v1818_v42, %v1776_v53  ;;  %v7854_v2 = vld [vmem:[#allocation8 + $0x320] ss:$16 sps:$4 sm:$0xff]   ;;  %v7799_v42 = vld [vmem:[#allocation8 + $0x18c] ss:$16 sps:$4 sm:$0xff]  }
 0x18a   :  { %2918 = vmatprep.subr.bf16.mxu1 %v7835_v4  ;;  %v7808_v53 = vld [vmem:[#allocation8 + $0x12c] ss:$16 sps:$4 sm:$0xff]  }
 0x18c   :  { %2876 = vmatpush1.bf16.msra.mxu0 %v7737_v52 }
 0x18d   :  { %2877 = vmatprep.subr.bf16.mxu0 %v7742_v57  ;;  %2919 = vmatpush1.bf16.msra.mxu1 %v7833_v6 }
 0x18e   :  { %2920 = vmatprep.subr.bf16.mxu1 %v7838_v8 }
 0x190   :  { %2878 = vmatpush2.bf16.msra.mxu0 %v7740_v59  ;;  %v1821_v59 = vadd.f32 %v1820_v12, %v1778_v54  ;;  %v7803_v12 = vld [vmem:[#allocation8 + $0x148] ss:$16 sps:$4 sm:$0xff]  }
 0x191   :  { %2879 = vmatprep.subr.bf16.mxu0 %v7745_v61  ;;  %2921 = vmatpush2.bf16.msra.mxu1 %v7836_v10  ;;  %v7764_v10 = vld [vmem:[#allocation8 + $0xe8] ss:$16 sps:$4 sm:$0xff]  }
 0x192   :  { %2922 = vmatprep.subr.bf16.mxu1 %v7841_v14 }
 0x194   :  { %2880 = vmatpush2.bf16.msra.mxu0 %v7743_v63 }
 0x195   :  { %2881 = vmatprep.subr.bf16.mxu0 %v7748_v1  ;;  %2923 = vmatpush2.bf16.msra.mxu1 %v7839_v17 }
 0x196   :  { %2924 = vmatprep.subr.bf16.mxu1 %v7844_v19  ;;  %v7767_v19 = vld [vmem:[#allocation8 + $0xc8] ss:$16 sps:$4 sm:$0xff]  }
 0x198   :  { %2882 = vmatpush2.bf16.msra.mxu0 %v7746_v3 }
 0x199   :  { %2883 = vmatprep.subr.bf16.mxu0 %v7751_v5  ;;  %2925 = vmatpush2.bf16.msra.mxu1 %v7842_v24  ;;  %v7773_v24 = vld [vmem:[#allocation8 + $0x88] ss:$16 sps:$4 sm:$0xff]  }
 0x19a   :  { %2926 = vmatprep.subr.bf16.mxu1 %v7847_v26  ;;  %v7776_v26 = vld [vmem:[#allocation8 + $0x68] ss:$16 sps:$4 sm:$0xff]  }
 0x19c   :  { %2884 = vmatpush2.bf16.msra.mxu0 %v7749_v7  ;;  %v7859_v7 = vld [vmem:[#allocation8 + $0x304] ss:$16 sps:$4 sm:$0xff]  }
 0x19d   :  { %2885 = vmatprep.subr.bf16.mxu0 %v7754_v9  ;;  %2927 = vmatpush2.bf16.msra.mxu1 %v7845_v35  ;;  %v7785_v35 = vld [vmem:[#allocation8 + $0x8] ss:$16 sps:$4 sm:$0xff]  }
 0x19e   :  { %2928 = vmatprep.subr.bf16.mxu1 %v7850_v37  ;;  %v7788_v37 = vld [vmem:[#allocation8 + $0x1e8] ss:$16 sps:$4 sm:$0xff]  }
 0x1a0   :  { %2886 = vmatpush2.bf16.msra.mxu0 %v7752_v11  ;;  %v7857_v11 = vld [vmem:[#allocation8 + $0x300] ss:$16 sps:$4 sm:$0xff]  }
 0x1a1   :  { %2887 = vmatprep.subr.bf16.mxu0 %v7757_v15  ;;  %2929 = vmatpush2.bf16.msra.mxu1 %v7848_v43  ;;  %v7769_v15 = vld [vmem:[#allocation8 + $0xcc] ss:$16 sps:$4 sm:$0xff]   ;;  %v7797_v43 = vld [vmem:[#allocation8 + $0x188] ss:$16 sps:$4 sm:$0xff]  }
 0x1a2   :  { %2930 = vmatprep.subr.bf16.mxu1 %v7853_v45 }
 0x1a4   :  { %2888 = vmatpush2.bf16.msra.mxu0 %v7755_v18  ;;  %v7862_v18 = vld [vmem:[#allocation8 + $0x2ec] ss:$16 sps:$4 sm:$0xff]  }
 0x1a5   :  { %2889 = vmatprep.subr.bf16.mxu0 %v7760_v20  ;;  %2931 = vmatpush2.bf16.msra.mxu1 %v7851_v55  ;;  %v7772_v20 = vld [vmem:[#allocation8 + $0xac] ss:$16 sps:$4 sm:$0xff]  }
 0x1a6   :  { %2932 = vmatprep.subr.bf16.mxu1 %v7856_v62 }
 0x1a8   :  { %2890 = vmatpush2.bf16.msra.mxu0 %v7758_v25  ;;  %v7778_v25 = vld [vmem:[#allocation8 + $0x6c] ss:$16 sps:$4 sm:$0xff]  }
 0x1a9   :  { %2891 = vmatprep.subr.bf16.mxu0 %v7763_v30  ;;  %2933 = vmatpush2.bf16.msra.mxu1 %v7854_v2  ;;  %v7779_v30 = vld [vmem:[#allocation8 + $0x48] ss:$16 sps:$4 sm:$0xff]  }
 0x1aa   :  { %2934 = vmatprep.subr.bf16.mxu1 %v7859_v7 }
 0x1ac   :  { %2892 = vmatpush2.bf16.msra.mxu0 %v7761_v36  ;;  %v7790_v36 = vld [vmem:[#allocation8 + $0x1ec] ss:$16 sps:$4 sm:$0xff]  }
 0x1ad   :  { %2947 = vmatprep.subr.bf16.mxu0 %v7766_v38  ;;  %2935 = vmatpush2.bf16.msra.mxu1 %v7857_v11  ;;  %v7793_v38 = vld [vmem:[#allocation8 + $0x1cc] ss:$16 sps:$4 sm:$0xff]  }
 0x1ae   :  { %2990 = vmatprep.subr.bf16.mxu1 %v7862_v18 }
 0x1af   :  { %v1857_v28 = vpop.f32.mrf.mxu0 }
 0x1b0   :  { %v1900_v29 = vpop.f32.mrf.mxu1  ;;  %v1858_v56 = vadd.f32 %v1857_v28, %v1815_v49  ;;  %v7806_v28 = vld [vmem:[#allocation8 + $0x128] ss:$16 sps:$4 sm:$0xff]  }
 0x1b1   :  { %v1859_v50 = vpop.f32.mrf.mxu0 }
 0x1b2   :  { %v1902_v51 = vpop.f32.mrf.mxu1  ;;  %v1860_v52 = vadd.f32 %v1859_v50, %v1817_v13  ;;  %v1901_v3 = vadd.f32 %v1900_v29, %v1858_v56  ;;  %v7811_v29 = vld [vmem:[#allocation8 + $0x10c] ss:$16 sps:$4 sm:$0xff]   ;;  %v7809_v13 = vld [vmem:[#allocation8 + $0x108] ss:$16 sps:$4 sm:$0xff]  }
 0x1b3   :  { %v1861_v57 = vpop.f32.mrf.mxu0  ;;  %v159_v50 = vld [vmem:[#allocation16 + $0x18] sm:$0xff] }
 0x1b4   :  { %v1904_v58 = vpop.f32.mrf.mxu1  ;;  %v1862_v60 = vadd.f32 %v1861_v57, %v1819_v47  ;;  %v1903_v63 = vadd.f32 %v1902_v51, %v1860_v52  ;;  %v2081_v14 = vmax.f32 %v1901_v3, 0.0  ;;  %v8833_v47 = vld [vmem:[#allocation16 + $0x10] sm:$0xff]  ;;  %v456_v52 = vrot.slane %v159_v50, %v8825_v32  ;;  %v7890_v50 = vld [vmem:[#allocation8 + $0x3a8] ss:$16 sps:$4 sm:$0xff]  }
 0x1b5   :  { %v1863_v61 = vpop.f32.mrf.mxu0  ;;  %v452_v55 = vrot.slane %v8833_v47, %v8825_v32 }
 0x1b6   :  { %v1905_v0 = vadd.f32 %v1904_v58, %v1862_v60  ;;  %v1864_v1 = vadd.f32 %v1863_v61, %v1821_v59  ;;  %v1906_v4 = vpop.f32.mrf.mxu1  ;;  %v2082_v8 = vmax.f32 %v1903_v63, 0.0 }
 0x1b8   :  { %v1907_v5 = vadd.f32 %v1906_v4, %v1864_v1  ;;  %v2085_v6 = vmax.f32 %v1905_v0, 0.0 }
 0x1ba   :  { %v2086_v9 = vmax.f32 %v1907_v5, 0.0  ;;  %v8829_v17 = vpack.c.bf16 %v2085_v6, %v2081_v14 }
 0x1bc   :  { %v2090_v16 = vpack.c.bf16 %v2086_v9, %v2082_v8 }
 0x1be   :  { %2893 = vmatprep.mubr.bf16.mxu0 %v2090_v16 }
 0x1bf   :  { %2894 = vmatmul.mubr.bf16.vlgmr.msra.gmra.mxu0 %v8829_v17 }
 0x1c0   :  { %2948 = vmatpush1.bf16.msra.mxu0 %v7764_v10  ;;  %2979 = vmatprep.mubr.bf16.mxu0 %v2090_v16 }
 0x1c1   :  { %2949 = vmatprep.subr.bf16.mxu0 %v7769_v15 }
 0x1c4   :  { %2950 = vmatpush1.bf16.msra.mxu0 %v7767_v19 }
 0x1c5   :  { %2951 = vmatprep.subr.bf16.mxu0 %v7772_v20 }
 0x1c8   :  { %2952 = vmatpush1.bf16.msra.mxu0 %v7770_v22 }
 0x1c9   :  { %2953 = vmatprep.subr.bf16.mxu0 %v7775_v23 }
 0x1cc   :  { %2954 = vmatpush1.bf16.msra.mxu0 %v7773_v24 }
 0x1cd   :  { %2955 = vmatprep.subr.bf16.mxu0 %v7778_v25 }
 0x1d0   :  { %2956 = vmatpush1.bf16.msra.mxu0 %v7776_v26 }
 0x1d1   :  { %2957 = vmatprep.subr.bf16.mxu0 %v7781_v27 }
 0x1d4   :  { %2958 = vmatpush1.bf16.msra.mxu0 %v7779_v30  ;;  %v7860_v30 = vld [vmem:[#allocation8 + $0x2e8] ss:$16 sps:$4 sm:$0xff]  }
 0x1d5   :  { %2959 = vmatprep.subr.bf16.mxu0 %v7784_v31 }
 0x1d8   :  { %2960 = vmatpush1.bf16.msra.mxu0 %v7782_v33  ;;  %v7865_v33 = vld [vmem:[#allocation8 + $0x2cc] ss:$16 sps:$4 sm:$0xff]  }
 0x1d9   :  { %2961 = vmatprep.subr.bf16.mxu0 %v7787_v34  ;;  %v7863_v34 = vld [vmem:[#allocation8 + $0x2c8] ss:$16 sps:$4 sm:$0xff]  }
 0x1dc   :  { %2962 = vmatpush1.bf16.msra.mxu0 %v7785_v35  ;;  %v7868_v35 = vld [vmem:[#allocation8 + $0x2ac] ss:$16 sps:$4 sm:$0xff]  }
 0x1dd   :  { %2963 = vmatprep.subr.bf16.mxu0 %v7790_v36  ;;  %v7866_v36 = vld [vmem:[#allocation8 + $0x2a8] ss:$16 sps:$4 sm:$0xff]  }
 0x1e0   :  { %2964 = vmatpush2.bf16.msra.mxu0 %v7788_v37  ;;  %v7871_v37 = vld [vmem:[#allocation8 + $0x28c] ss:$16 sps:$4 sm:$0xff]  }
 0x1e1   :  { %2965 = vmatprep.subr.bf16.mxu0 %v7793_v38  ;;  %v7908_v38 = vld [vmem:[#allocation10 + $0xe0] ss:$16 sps:$4 sm:$0xff]  }
 0x1e4   :  { %2966 = vmatpush2.bf16.msra.mxu0 %v7791_v39  ;;  %v7910_v39 = vld [vmem:[#allocation10 + $0xe4] ss:$16 sps:$4 sm:$0xff]  }
 0x1e5   :  { %2967 = vmatprep.subr.bf16.mxu0 %v7796_v40  ;;  %v7869_v40 = vld [vmem:[#allocation8 + $0x288] ss:$16 sps:$4 sm:$0xff]  }
 0x1e8   :  { %2968 = vmatpush2.bf16.msra.mxu0 %v7794_v41  ;;  %v7874_v41 = vld [vmem:[#allocation8 + $0x26c] ss:$16 sps:$4 sm:$0xff]  }
 0x1e9   :  { %2969 = vmatprep.subr.bf16.mxu0 %v7799_v42  ;;  %v7872_v42 = vld [vmem:[#allocation8 + $0x268] ss:$16 sps:$4 sm:$0xff]  }
 0x1ec   :  { %2970 = vmatpush2.bf16.msra.mxu0 %v7797_v43  ;;  %v7877_v43 = vld [vmem:[#allocation8 + $0x24c] ss:$16 sps:$4 sm:$0xff]  }
 0x1ed   :  { %2971 = vmatprep.subr.bf16.mxu0 %v7802_v44  ;;  %v7875_v44 = vld [vmem:[#allocation8 + $0x248] ss:$16 sps:$4 sm:$0xff]  }
 0x1ef   :  { %v1943_v54 = vpop.f32.mrf.mxu0 }
 0x1f0   :  { %2972 = vmatpush2.bf16.msra.mxu0 %v7800_v46  ;;  %v1986_v49 = vpop.f32.mrf.mxu1  ;;  %v1944_v59 = vadd.f32 %v1943_v54, %v452_v55  ;;  %v7880_v46 = vld [vmem:[#allocation8 + $0x22c] ss:$16 sps:$4 sm:$0xff]   ;;  %v7887_v54 = vld [vmem:[#allocation8 + $0x3c8] ss:$16 sps:$4 sm:$0xff]  }
 0x1f1   :  { %2973 = vmatprep.subr.bf16.mxu0 %v7805_v48  ;;  %v1945_v51 = vpop.f32.mrf.mxu0  ;;  %v7878_v48 = vld [vmem:[#allocation8 + $0x228] ss:$16 sps:$4 sm:$0xff]  }
 0x1f2   :  { %v1988_v45 = vpop.f32.mrf.mxu1  ;;  %v1946_v58 = vadd.f32 %v1945_v51, %v456_v52  ;;  %v1987_v3 = vadd.f32 %v1986_v49, %v1944_v59  ;;  %v7892_v49 = vld [vmem:[#allocation8 + $0x3ac] ss:$16 sps:$4 sm:$0xff]   ;;  %v7902_v59 = vld [vmem:[#allocation8 + $0x328] ss:$16 sps:$4 sm:$0xff]  }
 0x1f3   :  { %v1947_v56 = vpop.f32.mrf.mxu0  ;;  %v7895_v51 = vld [vmem:[#allocation8 + $0x38c] ss:$16 sps:$4 sm:$0xff]  }
 0x1f4   :  { %2974 = vmatpush2.bf16.msra.mxu0 %v7803_v12  ;;  %v1990_v57 = vpop.f32.mrf.mxu1  ;;  %v1948_v62 = vadd.f32 %v1947_v56, %v452_v55  ;;  %v1989_v1 = vadd.f32 %v1988_v45, %v1946_v58  ;;  %v7883_v12 = vld [vmem:[#allocation8 + $0x20c] ss:$16 sps:$4 sm:$0xff]   ;;  %v7893_v45 = vld [vmem:[#allocation8 + $0x388] ss:$16 sps:$4 sm:$0xff]  }
 0x1f5   :  { %2975 = vmatprep.subr.bf16.mxu0 %v7808_v53  ;;  %v1949_v60 = vpop.f32.mrf.mxu0  ;;  %v7881_v53 = vld [vmem:[#allocation8 + $0x208] ss:$16 sps:$4 sm:$0xff]   ;;  %v7901_v56 = vld [vmem:[#allocation8 + $0x34c] ss:$16 sps:$4 sm:$0xff]  }
 0x1f6   :  { %v1992_v61 = vpop.f32.mrf.mxu1  ;;  %v1950_v2 = vadd.f32 %v1949_v60, %v456_v52  ;;  %v1991_v6 = vadd.f32 %v1990_v57, %v1948_v62  ;;  %v7898_v52 = vld [vmem:[#allocation8 + $0x36c] ss:$16 sps:$4 sm:$0xff]   ;;  %v7896_v55 = vld [vmem:[#allocation8 + $0x368] ss:$16 sps:$4 sm:$0xff]   ;;  %v7913_v62 = vld [vmem:[#allocation10 + $0xc4] ss:$16 sps:$4 sm:$0xff]  }
 0x1f7   :  { %v7899_v57 = vld [vmem:[#allocation8 + $0x348] ss:$16 sps:$4 sm:$0xff]   ;;  %v7904_v58 = vld [vmem:[#allocation8 + $0x32c] ss:$16 sps:$4 sm:$0xff]  }
 0x1f8   :  { %2976 = vmatpush2.bf16.msra.mxu0 %v7806_v28  ;;  %v1993_v11 = vadd.f32 %v1992_v61, %v1950_v2  ;;  %v7886_v28 = vld [vmem:[#allocation8 + $0x3ec] ss:$16 sps:$4 sm:$0xff]   ;;  %v7905_v61 = vld [vmem:[#allocation8 + $0x308] ss:$16 sps:$4 sm:$0xff]   ;;  %v7919_v2 = vld [vmem:[#allocation10 + $0x84] ss:$16 sps:$4 sm:$0xff]  }
 0x1f9   :  { %2977 = vmatprep.subr.bf16.mxu0 %v7811_v29  ;;  %v7884_v29 = vld [vmem:[#allocation8 + $0x3e8] ss:$16 sps:$4 sm:$0xff]   ;;  %v7907_v60 = vld [vmem:[#allocation8 + $0x30c] ss:$16 sps:$4 sm:$0xff]  }
 0x1fc   :  { %2978 = vmatpush2.bf16.msra.mxu0 %v7809_v13  ;;  %v7889_v13 = vld [vmem:[#allocation8 + $0x3cc] ss:$16 sps:$4 sm:$0xff]  }
 0x1fd   :  { %4102 = vmatprep.subr.bf16.mxu0 %v7910_v39  ;;  %v7970_v39 = vld [vmem:[#allocation10 + $0x2a4] ss:$16 sps:$4 sm:$0xff]  }
 0x1ff   :  { %2980 = vmatmul.mubr.bf16.vlgmr.msra.gmra.mxu0 %v8829_v17 }
 0x200   :  { %4103 = vmatpush1.bf16.msra.mxu0 %v7908_v38  ;;  %v7962_v38 = vld [vmem:[#allocation10 + $0x2c0] ss:$16 sps:$4 sm:$0xff]  }
 0x201   :  { %4104 = vmatprep.subr.bf16.mxu0 %v7913_v62  ;;  %v8046_v62 = vld [vmem:[#allocation10 + $0x300] ss:$16 sps:$4 sm:$0xff]  }
 0x22f   :  { %v2029_v63 = vpop.f32.mrf.mxu0 }
 0x230   :  { %v2072_v0 = vpop.f32.mrf.mxu1  ;;  %v2030_v8 = vadd.f32 %v2029_v63, %v1987_v3  ;;  %v7911_v63 = vld [vmem:[#allocation10 + $0xc0] ss:$16 sps:$4 sm:$0xff]  }
 0x231   :  { %v2031_v4 = vpop.f32.mrf.mxu0  ;;  %4105 = vmatpush1.bf16.msra.mxu0 %v7911_v63  ;;  %v7917_v3 = vld [vmem:[#allocation10 + $0x80] ss:$16 sps:$4 sm:$0xff]   ;;  %v8048_v63 = vld [vmem:[#allocation10 + $0x304] ss:$16 sps:$4 sm:$0xff]  }
 0x232   :  { %v2074_v5 = vpop.f32.mrf.mxu1  ;;  %v2032_v7 = vadd.f32 %v2031_v4, %v1989_v1  ;;  %v2073_v19 = vadd.f32 %v2072_v0, %v2030_v8  ;;  %v7916_v0 = vld [vmem:[#allocation10 + $0xa4] ss:$16 sps:$4 sm:$0xff]   ;;  %v7914_v1 = vld [vmem:[#allocation10 + $0xa0] ss:$16 sps:$4 sm:$0xff]  }
 0x233   :  { %v2033_v9 = vpop.f32.mrf.mxu0  ;;  %4106 = vmatprep.subr.bf16.mxu0 %v7916_v0  ;;  %v7922_v4 = vld [vmem:[#allocation10 + $0x64] ss:$16 sps:$4 sm:$0xff]  }
 0x234   :  { %v2076_v10 = vpop.f32.mrf.mxu1  ;;  %v2034_v14 = vadd.f32 %v2033_v9, %v1991_v6  ;;  %v2075_v16 = vadd.f32 %v2074_v5, %v2032_v7  ;;  %v2083_v26 = vmax.f32 %v2073_v19, 0.0  ;;  %v7920_v5 = vld [vmem:[#allocation10 + $0x60] ss:$16 sps:$4 sm:$0xff]   ;;  %v7925_v6 = vld [vmem:[#allocation10 + $0x44] ss:$16 sps:$4 sm:$0xff]  }
 0x235   :  { %v2035_v15 = vpop.f32.mrf.mxu0  ;;  %4107 = vmatpush1.bf16.msra.mxu0 %v7914_v1  ;;  %v7923_v7 = vld [vmem:[#allocation10 + $0x40] ss:$16 sps:$4 sm:$0xff]   ;;  %v7928_v8 = vld [vmem:[#allocation10 + $0x24] ss:$16 sps:$4 sm:$0xff]   ;;  %v8054_v1 = vld [vmem:[#allocation10 + $0x2ec] ss:$16 sps:$4 sm:$0xff]  }
 0x236   :  { %v2077_v17 = vadd.f32 %v2076_v10, %v2034_v14  ;;  %v2036_v18 = vadd.f32 %v2035_v15, %v1993_v11  ;;  %v2078_v20 = vpop.f32.mrf.mxu1  ;;  %v2084_v24 = vmax.f32 %v2075_v16, 0.0  ;;  %4108 = vmatprep.subr.bf16.mxu0 %v7919_v2  ;;  %v7926_v9 = vld [vmem:[#allocation10 + $0x20] ss:$16 sps:$4 sm:$0xff]   ;;  %v7931_v10 = vld [vmem:[#allocation10 + $0x4] ss:$16 sps:$4 sm:$0xff]  }
 0x237   :  { %v7929_v11 = vld [vmem:[#allocation10] ss:$16 sps:$4 sm:$0xff]   ;;  %v7934_v14 = vld [vmem:[#allocation10 + $0x1e4] ss:$16 sps:$4 sm:$0xff]  }
 0x238   :  { %v2079_v22 = vadd.f32 %v2078_v20, %v2036_v18  ;;  %v2087_v23 = vmax.f32 %v2077_v17, 0.0  ;;  %v7932_v15 = vld [vmem:[#allocation10 + $0x1e0] ss:$16 sps:$4 sm:$0xff]   ;;  %v7937_v16 = vld [vmem:[#allocation10 + $0x1c4] ss:$16 sps:$4 sm:$0xff]  }
 0x239   :  { %4109 = vmatpush1.bf16.msra.mxu0 %v7917_v3  ;;  %v7935_v17 = vld [vmem:[#allocation10 + $0x1c0] ss:$16 sps:$4 sm:$0xff]   ;;  %v7940_v18 = vld [vmem:[#allocation10 + $0x1a4] ss:$16 sps:$4 sm:$0xff]  }
 0x23a   :  { %v2088_v25 = vmax.f32 %v2079_v22, 0.0  ;;  %v8838_v31 = vpack.c.bf16 %v2087_v23, %v2083_v26  ;;  %4110 = vmatprep.subr.bf16.mxu0 %v7922_v4  ;;  %v7938_v19 = vld [vmem:[#allocation10 + $0x1a0] ss:$16 sps:$4 sm:$0xff]   ;;  %v7943_v20 = vld [vmem:[#allocation10 + $0x184] ss:$16 sps:$4 sm:$0xff]  }
 0x23b   :  { %v7941_v22 = vld [vmem:[#allocation10 + $0x180] ss:$16 sps:$4 sm:$0xff]   ;;  %v7946_v23 = vld [vmem:[#allocation10 + $0x164] ss:$16 sps:$4 sm:$0xff]  }
 0x23c   :  { %v2092_v27 = vpack.c.bf16 %v2088_v25, %v2084_v24  ;;  %v7944_v24 = vld [vmem:[#allocation10 + $0x160] ss:$16 sps:$4 sm:$0xff]   ;;  %v7949_v26 = vld [vmem:[#allocation10 + $0x144] ss:$16 sps:$4 sm:$0xff]  }
 0x23d   :  { %4111 = vmatpush1.bf16.msra.mxu0 %v7920_v5  ;;  %v7947_v25 = vld [vmem:[#allocation10 + $0x140] ss:$16 sps:$4 sm:$0xff]  }
 0x23e   :  { %2936 = vmatprep.mubr.bf16.mxu1 %v2092_v27  ;;  %4112 = vmatprep.subr.bf16.mxu0 %v7925_v6 }
 0x23f   :  { %2937 = vmatmul.mubr.bf16.vlgmr.msra.gmra.mxu1 %v8838_v31 }
 0x240   :  { %2991 = vmatpush1.bf16.msra.mxu1 %v7860_v30  ;;  %3022 = vmatprep.mubr.bf16.mxu1 %v2092_v27  ;;  %v7952_v27 = vld [vmem:[#allocation10 + $0x124] ss:$16 sps:$4 sm:$0xff]   ;;  %v7956_v30 = vld [vmem:[#allocation10 + $0x2e0] ss:$16 sps:$4 sm:$0xff]  }
 0x241   :  { %2992 = vmatprep.subr.bf16.mxu1 %v7865_v33  ;;  %4113 = vmatpush1.bf16.msra.mxu0 %v7923_v7  ;;  %v7950_v33 = vld [vmem:[#allocation10 + $0x120] ss:$16 sps:$4 sm:$0xff]  }
 0x242   :  { %4114 = vmatprep.subr.bf16.mxu0 %v7928_v8 }
 0x244   :  { %2993 = vmatpush1.bf16.msra.mxu1 %v7863_v34  ;;  %v7955_v34 = vld [vmem:[#allocation10 + $0x104] ss:$16 sps:$4 sm:$0xff]  }
 0x245   :  { %2994 = vmatprep.subr.bf16.mxu1 %v7868_v35  ;;  %4115 = vmatpush1.bf16.msra.mxu0 %v7926_v9  ;;  %v7953_v35 = vld [vmem:[#allocation10 + $0x100] ss:$16 sps:$4 sm:$0xff]  }
 0x246   :  { %4116 = vmatprep.subr.bf16.mxu0 %v7931_v10 }
 0x248   :  { %2995 = vmatpush1.bf16.msra.mxu1 %v7866_v36  ;;  %v7961_v36 = vld [vmem:[#allocation10 + $0xec] ss:$16 sps:$4 sm:$0xff]  }
 0x249   :  { %2996 = vmatprep.subr.bf16.mxu1 %v7871_v37  ;;  %4117 = vmatpush1.bf16.msra.mxu0 %v7929_v11  ;;  %v7964_v37 = vld [vmem:[#allocation10 + $0x2c4] ss:$16 sps:$4 sm:$0xff]  }
 0x24a   :  { %4118 = vmatprep.subr.bf16.mxu0 %v7934_v14 }
 0x24c   :  { %2997 = vmatpush1.bf16.msra.mxu1 %v7869_v40  ;;  %v7968_v40 = vld [vmem:[#allocation10 + $0x2a0] ss:$16 sps:$4 sm:$0xff]  }
 0x24d   :  { %2998 = vmatprep.subr.bf16.mxu1 %v7874_v41  ;;  %4119 = vmatpush2.bf16.msra.mxu0 %v7932_v15  ;;  %v7976_v41 = vld [vmem:[#allocation10 + $0x284] ss:$16 sps:$4 sm:$0xff]  }
 0x24e   :  { %4120 = vmatprep.subr.bf16.mxu0 %v7937_v16 }
 0x250   :  { %2999 = vmatpush1.bf16.msra.mxu1 %v7872_v42  ;;  %v7974_v42 = vld [vmem:[#allocation10 + $0x280] ss:$16 sps:$4 sm:$0xff]  }
 0x251   :  { %3000 = vmatprep.subr.bf16.mxu1 %v7877_v43  ;;  %4121 = vmatpush2.bf16.msra.mxu0 %v7935_v17  ;;  %v7982_v43 = vld [vmem:[#allocation10 + $0x264] ss:$16 sps:$4 sm:$0xff]  }
 0x252   :  { %4122 = vmatprep.subr.bf16.mxu0 %v7940_v18 }
 0x254   :  { %3001 = vmatpush1.bf16.msra.mxu1 %v7875_v44  ;;  %v7980_v44 = vld [vmem:[#allocation10 + $0x260] ss:$16 sps:$4 sm:$0xff]  }
 0x255   :  { %3002 = vmatprep.subr.bf16.mxu1 %v7880_v46  ;;  %4123 = vmatpush2.bf16.msra.mxu0 %v7938_v19  ;;  %v7988_v46 = vld [vmem:[#allocation10 + $0x244] ss:$16 sps:$4 sm:$0xff]  }
 0x256   :  { %4124 = vmatprep.subr.bf16.mxu0 %v7943_v20 }
 0x258   :  { %3003 = vmatpush1.bf16.msra.mxu1 %v7878_v48  ;;  %v7986_v48 = vld [vmem:[#allocation10 + $0x240] ss:$16 sps:$4 sm:$0xff]  }
 0x259   :  { %3004 = vmatprep.subr.bf16.mxu1 %v7883_v12  ;;  %4125 = vmatpush2.bf16.msra.mxu0 %v7941_v22  ;;  %v7994_v12 = vld [vmem:[#allocation10 + $0x224] ss:$16 sps:$4 sm:$0xff]  }
 0x25a   :  { %4126 = vmatprep.subr.bf16.mxu0 %v7946_v23 }
 0x25c   :  { %3005 = vmatpush1.bf16.msra.mxu1 %v7881_v53  ;;  %v7992_v53 = vld [vmem:[#allocation10 + $0x220] ss:$16 sps:$4 sm:$0xff]  }
 0x25d   :  { %3006 = vmatprep.subr.bf16.mxu1 %v7886_v28  ;;  %4127 = vmatpush2.bf16.msra.mxu0 %v7944_v24  ;;  %v8000_v28 = vld [vmem:[#allocation10 + $0x204] ss:$16 sps:$4 sm:$0xff]  }
 0x25e   :  { %4128 = vmatprep.subr.bf16.mxu0 %v7949_v26 }
 0x260   :  { %3007 = vmatpush2.bf16.msra.mxu1 %v7884_v29  ;;  %v7998_v29 = vld [vmem:[#allocation10 + $0x200] ss:$16 sps:$4 sm:$0xff]  }
 0x261   :  { %3008 = vmatprep.subr.bf16.mxu1 %v7889_v13  ;;  %4129 = vmatpush2.bf16.msra.mxu0 %v7947_v25  ;;  %v8006_v13 = vld [vmem:[#allocation10 + $0x3e4] ss:$16 sps:$4 sm:$0xff]  }
 0x262   :  { %4130 = vmatprep.subr.bf16.mxu0 %v7952_v27 }
 0x264   :  { %3009 = vmatpush2.bf16.msra.mxu1 %v7887_v54  ;;  %v8004_v54 = vld [vmem:[#allocation10 + $0x3e0] ss:$16 sps:$4 sm:$0xff]  }
 0x265   :  { %3010 = vmatprep.subr.bf16.mxu1 %v7892_v49  ;;  %4131 = vmatpush2.bf16.msra.mxu0 %v7950_v33  ;;  %v8012_v49 = vld [vmem:[#allocation10 + $0x3c4] ss:$16 sps:$4 sm:$0xff]  }
 0x266   :  { %4132 = vmatprep.subr.bf16.mxu0 %v7955_v34 }
 0x268   :  { %3011 = vmatpush2.bf16.msra.mxu1 %v7890_v50  ;;  %v8010_v50 = vld [vmem:[#allocation10 + $0x3c0] ss:$16 sps:$4 sm:$0xff]  }
 0x269   :  { %3012 = vmatprep.subr.bf16.mxu1 %v7895_v51  ;;  %4133 = vmatpush2.bf16.msra.mxu0 %v7953_v35  ;;  %v8018_v51 = vld [vmem:[#allocation10 + $0x3a4] ss:$16 sps:$4 sm:$0xff]  }
 0x26a   :  { %4188 = vmatprep.subr.bf16.mxu0 %v7961_v36 }
 0x26c   :  { %3013 = vmatpush2.bf16.msra.mxu1 %v7893_v45  ;;  %v8016_v45 = vld [vmem:[#allocation10 + $0x3a0] ss:$16 sps:$4 sm:$0xff]  }
 0x26d   :  { %3014 = vmatprep.subr.bf16.mxu1 %v7898_v52  ;;  %v8024_v52 = vld [vmem:[#allocation10 + $0x384] ss:$16 sps:$4 sm:$0xff]  }
 0x270   :  { %3015 = vmatpush2.bf16.msra.mxu1 %v7896_v55  ;;  %v8022_v55 = vld [vmem:[#allocation10 + $0x380] ss:$16 sps:$4 sm:$0xff]  }
 0x271   :  { %3016 = vmatprep.subr.bf16.mxu1 %v7901_v56  ;;  %v8030_v56 = vld [vmem:[#allocation10 + $0x364] ss:$16 sps:$4 sm:$0xff]  }
 0x274   :  { %3017 = vmatpush2.bf16.msra.mxu1 %v7899_v57  ;;  %v8028_v57 = vld [vmem:[#allocation10 + $0x360] ss:$16 sps:$4 sm:$0xff]  }
 0x275   :  { %3018 = vmatprep.subr.bf16.mxu1 %v7904_v58  ;;  %v8034_v58 = vld [vmem:[#allocation10 + $0x340] ss:$16 sps:$4 sm:$0xff]  }
 0x278   :  { %3019 = vmatpush2.bf16.msra.mxu1 %v7902_v59  ;;  %v8036_v59 = vld [vmem:[#allocation10 + $0x344] ss:$16 sps:$4 sm:$0xff]  }
 0x279   :  { %3020 = vmatprep.subr.bf16.mxu1 %v7907_v60  ;;  %v8040_v60 = vld [vmem:[#allocation10 + $0x320] ss:$16 sps:$4 sm:$0xff]  }
 0x27c   :  { %3021 = vmatpush2.bf16.msra.mxu1 %v7905_v61  ;;  %v8042_v61 = vld [vmem:[#allocation10 + $0x324] ss:$16 sps:$4 sm:$0xff]  }
 0x27f   :  { %3023 = vmatmul.mubr.bf16.vlgmr.msra.gmra.mxu1 %v8838_v31  ;;  %v7958_v31 = vld [vmem:[#allocation10 + $0x2e4] ss:$16 sps:$4 sm:$0xff]   ;;  %v2895_v0 = vpop.f32.mrf.mxu0 }
 0x280   :  { %4145 = vmatprep.subr.bf16.mxu1 %v7958_v31 }
 0x281   :  { %4146 = vmatpush1.bf16.msra.mxu1 %v7956_v30  ;;  %v2897_v2 = vpop.f32.mrf.mxu0 }
 0x282   :  { %4147 = vmatprep.subr.bf16.mxu1 %v7964_v37 }
 0x283   :  { %v2899_v6 = vpop.f32.mrf.mxu0 }
 0x285   :  { %4148 = vmatpush1.bf16.msra.mxu1 %v7962_v38  ;;  %v2901_v19 = vpop.f32.mrf.mxu0 }
 0x286   :  { %4149 = vmatprep.subr.bf16.mxu1 %v7970_v39 }
 0x289   :  { %4150 = vmatpush1.bf16.msra.mxu1 %v7968_v40 }
 0x28a   :  { %4151 = vmatprep.subr.bf16.mxu1 %v7976_v41 }
 0x28d   :  { %4152 = vmatpush1.bf16.msra.mxu1 %v7974_v42 }
 0x28e   :  { %4153 = vmatprep.subr.bf16.mxu1 %v7982_v43 }
 0x291   :  { %4154 = vmatpush1.bf16.msra.mxu1 %v7980_v44 }
 0x292   :  { %4155 = vmatprep.subr.bf16.mxu1 %v7988_v46 }
 0x295   :  { %4156 = vmatpush1.bf16.msra.mxu1 %v7986_v48 }
 0x296   :  { %4157 = vmatprep.subr.bf16.mxu1 %v7994_v12 }
 0x299   :  { %4158 = vmatpush1.bf16.msra.mxu1 %v7992_v53 }
 0x29a   :  { %4159 = vmatprep.subr.bf16.mxu1 %v8000_v28 }
 0x29d   :  { %4160 = vmatpush1.bf16.msra.mxu1 %v7998_v29 }
 0x29e   :  { %4161 = vmatprep.subr.bf16.mxu1 %v8006_v13 }
 0x2a1   :  { %4162 = vmatpush2.bf16.msra.mxu1 %v8004_v54 }
 0x2a2   :  { %4163 = vmatprep.subr.bf16.mxu1 %v8012_v49 }
 0x2a5   :  { %4164 = vmatpush2.bf16.msra.mxu1 %v8010_v50 }
 0x2a6   :  { %4165 = vmatprep.subr.bf16.mxu1 %v8018_v51 }
 0x2a9   :  { %4166 = vmatpush2.bf16.msra.mxu1 %v8016_v45 }
 0x2aa   :  { %4167 = vmatprep.subr.bf16.mxu1 %v8024_v52 }
 0x2ad   :  { %4168 = vmatpush2.bf16.msra.mxu1 %v8022_v55 }
 0x2ae   :  { %4169 = vmatprep.subr.bf16.mxu1 %v8030_v56 }
 0x2b1   :  { %4170 = vmatpush2.bf16.msra.mxu1 %v8028_v57 }
 0x2b2   :  { %4171 = vmatprep.subr.bf16.mxu1 %v8036_v59 }
 0x2b5   :  { %4172 = vmatpush2.bf16.msra.mxu1 %v8034_v58 }
 0x2b6   :  { %4173 = vmatprep.subr.bf16.mxu1 %v8042_v61 }
 0x2b9   :  { %4174 = vmatpush2.bf16.msra.mxu1 %v8040_v60 }
 0x2ba   :  { %4175 = vmatprep.subr.bf16.mxu1 %v8048_v63 }
 0x2bd   :  { %4176 = vmatpush2.bf16.msra.mxu1 %v8046_v62 }
 0x2be   :  { %4231 = vmatprep.subr.bf16.mxu1 %v8054_v1 }
 0x2ff   :  { %v2938_v3 = vpop.f32.mrf.mxu1 }
 0x300   :  { %v8842_v4 = vadd.f32 %v2938_v3, %v2895_v0 }
 0x301   :  { %v2940_v5 = vpop.f32.mrf.mxu1 }
 0x302   :  { %v3033_v7 = vrot.slane %v8842_v4, 4  ;;  %v3062_v8 = vmul.f32 %v8842_v4, %v8842_v4  ;;  %v8847_v9 = vadd.f32 %v2940_v5, %v2897_v2 }
 0x303   :  { %v2942_v10 = vpop.f32.mrf.mxu1 }
 0x304   :  { %v3034_v11 = vadd.f32 %v3033_v7, %v8842_v4  ;;  %v3066_v14 = vrot.slane %v3062_v8, 4  ;;  %v3039_v15 = vrot.slane %v8847_v9, 4  ;;  %v3063_v16 = vmul.f32 %v8847_v9, %v8847_v9 }
 0x305   :  { %v8853_v17 = vadd.f32 %v2942_v10, %v2899_v6  ;;  %v2944_v18 = vpop.f32.mrf.mxu1 }
 0x306   :  { %v3035_v20 = vrot.slane %v3034_v11, 2  ;;  %v3067_v22 = vadd.f32 %v3066_v14, %v3062_v8  ;;  %v3040_v23 = vadd.f32 %v3039_v15, %v8847_v9  ;;  %v3072_v24 = vrot.slane %v3063_v16, 4 }
 0x307   :  { %v3182_v25 = vrot.slane %v8853_v17, 4  ;;  %v3210_v26 = vmul.f32 %v8853_v17, %v8853_v17  ;;  %v8859_v27 = vadd.f32 %v2944_v18, %v2901_v19 }
 0x308   :  { %v3036_v30 = vadd.f32 %v3035_v20, %v3034_v11  ;;  %v3068_v31 = vrot.slane %v3067_v22, 2  ;;  %v3041_v33 = vrot.slane %v3040_v23, 2  ;;  %v3073_v34 = vadd.f32 %v3072_v24, %v3063_v16 }
 0x309   :  { %v3183_v35 = vadd.f32 %v3182_v25, %v8853_v17  ;;  %v3214_v36 = vrot.slane %v3210_v26, 4  ;;  %v3188_v37 = vrot.slane %v8859_v27, 4  ;;  %v3211_v38 = vmul.f32 %v8859_v27, %v8859_v27 }
 0x30a   :  { %v3037_v39 = vrot.slane %v3036_v30, 1  ;;  %v3069_v40 = vadd.f32 %v3068_v31, %v3067_v22  ;;  %v3042_v41 = vadd.f32 %v3041_v33, %v3040_v23  ;;  %v3074_v42 = vrot.slane %v3073_v34, 2 }
 0x30b   :  { %v3184_v43 = vrot.slane %v3183_v35, 2  ;;  %v3215_v44 = vadd.f32 %v3214_v36, %v3210_v26  ;;  %v3189_v46 = vadd.f32 %v3188_v37, %v8859_v27  ;;  %v3220_v48 = vrot.slane %v3211_v38, 4 }
 0x30c   :  { %v3038_v12 = vadd.f32 %v3037_v39, %v3036_v30  ;;  %v3070_v53 = vrot.slane %v3069_v40, 1  ;;  %v3043_v28 = vrot.slane %v3042_v41, 1  ;;  %v3075_v29 = vadd.f32 %v3074_v42, %v3073_v34  ;;  %v8424_v39 = vld [vmem:[#allocation16] sm:$0xff] }
 0x30d   :  { %v3185_v13 = vadd.f32 %v3184_v43, %v3183_v35  ;;  %v3216_v54 = vrot.slane %v3215_v44, 2  ;;  %v3190_v49 = vrot.slane %v3189_v46, 2  ;;  %v3221_v50 = vadd.f32 %v3220_v48, %v3211_v38  ;;  %v8425_v43 = vld [vmem:[#allocation16 + $0x8] sm:$0xff] }
 0x30e   :  { %v3058_v51 = vmul.f32 0.125, %v3038_v12  ;;  %v3071_v45 = vadd.f32 %v3070_v53, %v3069_v40  ;;  %v3044_v52 = vadd.f32 %v3043_v28, %v3042_v41  ;;  %v3076_v55 = vrot.slane %v3075_v29, 1 }
 0x30f   :  { %v3186_v56 = vrot.slane %v3185_v13, 1  ;;  %v3217_v57 = vadd.f32 %v3216_v54, %v3215_v44  ;;  %v3191_v58 = vadd.f32 %v3190_v49, %v3189_v46  ;;  %v3222_v59 = vrot.slane %v3221_v50, 2 }
 0x310   :  { %v3090_v60 = vmul.f32 0.125, %v3071_v45  ;;  %v3094_v61 = vmul.f32 %v3058_v51, %v3058_v51  ;;  %v3059_v62 = vmul.f32 0.125, %v3044_v52  ;;  %v3077_v63 = vadd.f32 %v3076_v55, %v3075_v29 }
 0x311   :  { %v3187_v0 = vadd.f32 %v3186_v56, %v3185_v13  ;;  %v3218_v1 = vrot.slane %v3217_v57, 1  ;;  %v3192_v2 = vrot.slane %v3191_v58, 1  ;;  %v3223_v3 = vadd.f32 %v3222_v59, %v3221_v50 }
 0x312   :  { %v3098_v5 = vsub.f32 %v3090_v60, %v3094_v61  ;;  %v3091_v6 = vmul.f32 0.125, %v3077_v63  ;;  %v3095_v7 = vmul.f32 %v3059_v62, %v3059_v62  ;;  %v8867_v29 = vsub.s32 1, %v8822_v21 }
 0x313   :  { %v3206_v8 = vmul.f32 0.125, %v3187_v0  ;;  %v3219_v10 = vadd.f32 %v3218_v1, %v3217_v57  ;;  %v3193_v11 = vadd.f32 %v3192_v2, %v3191_v58  ;;  %v3224_v14 = vrot.slane %v3223_v3, 1 }
 0x314   :  { %v3102_v15 = vmax.f32 %v3098_v5, 0.0  ;;  %v3099_v16 = vsub.f32 %v3091_v6, %v3095_v7  ;;  %v8870_v45 = vsub.s32 2, %v8822_v21 }
 0x315   :  { %v3238_v18 = vmul.f32 0.125, %v3219_v10  ;;  %v3242_v19 = vmul.f32 %v3206_v8, %v3206_v8  ;;  %v3207_v20 = vmul.f32 0.125, %v3193_v11  ;;  %v3225_v22 = vadd.f32 %v3224_v14, %v3223_v3 }
 0x316   :  { %v3106_v23 = vadd.f32 1e-05, %v3102_v15  ;;  %v3103_v24 = vmax.f32 %v3099_v16, 0.0 }
 0x317   :  { %v3246_v25 = vsub.f32 %v3238_v18, %v3242_v19  ;;  %v3239_v26 = vmul.f32 0.125, %v3225_v22  ;;  %v3243_v30 = vmul.f32 %v3207_v20, %v3207_v20  ;;  %v2981_v19 = vpop.f32.mrf.mxu0 }
 0x318   :  { %8372 = vrsqrt.f32 %v3106_v23  ;;  %v3107_v31 = vadd.f32 1e-05, %v3103_v24  ;;  %v7967_v23 = vld [vmem:[#allocation10 + $0xcc] ss:$16 sps:$4 sm:$0xff]   ;;  %v7965_v24 = vld [vmem:[#allocation10 + $0xc8] ss:$16 sps:$4 sm:$0xff]  }
 0x319   :  { %v3250_v33 = vmax.f32 %v3246_v25, 0.0  ;;  %v3247_v34 = vsub.f32 %v3239_v26, %v3243_v30  ;;  %v7973_v26 = vld [vmem:[#allocation10 + $0xac] ss:$16 sps:$4 sm:$0xff]  }
 0x31a   :  { %8374 = vrsqrt.f32 %v3107_v31 }
 0x31b   :  { %v3254_v35 = vadd.f32 1e-05, %v3250_v33  ;;  %v3251_v36 = vmax.f32 %v3247_v34, 0.0 }
 0x31d   :  { %8376 = vrsqrt.f32 %v3254_v35  ;;  %v3255_v37 = vadd.f32 1e-05, %v3251_v36 }
 0x31f   :  { %8378 = vrsqrt.f32 %v3255_v37  ;;  %v7971_v37 = vld [vmem:[#allocation10 + $0xa8] ss:$16 sps:$4 sm:$0xff]  }
 0x325   :  { %v8373_v38 = vpop.eup %8372 }
 0x326   :  { %v3114_v40 = vmul.f32 %v8424_v39, %v8373_v38 }
 0x327   :  { %v8375_v41 = vpop.eup %8374 }
 0x328   :  { %v3118_v42 = vmul.f32 %v3114_v40, %v3058_v51  ;;  %v3115_v44 = vmul.f32 %v8425_v43, %v8375_v41  ;;  %v3141_v58 = vrot.slane %v3114_v40, %v8867_v29 }
 0x32a   :  { %v8377_v46 = vpop.eup %8376  ;;  %v3126_v48 = vrot.slane %v3118_v42, 7  ;;  %v3119_v12 = vmul.f32 %v3115_v44, %v3059_v62  ;;  %v3145_v56 = vrot.slane %v3115_v44, %v8867_v29  ;;  %v3154_v5 = vmul.f32 %v3141_v58, %v8842_v4  ;;  %v2983_v4 = vpop.f32.mrf.mxu0  ;;  %v7979_v42 = vld [vmem:[#allocation10 + $0x8c] ss:$16 sps:$4 sm:$0xff]  }
 0x32b   :  { %v3262_v53 = vmul.f32 %v8424_v39, %v8377_v46 }
 0x32c   :  { %v8379_v28 = vpop.eup %8378  ;;  %v3127_v13 = vrot.slane %v3119_v12, 7  ;;  %v3134_v52 = vsub.f32 %v8424_v39, %v3126_v48  ;;  %v3155_v1 = vmul.f32 %v3145_v56, %v8847_v9  ;;  %v7959_v9 = vld [vmem:[#allocation10 + $0xe8] ss:$16 sps:$4 sm:$0xff]   ;;  %v2985_v31 = vpop.f32.mrf.mxu0 }
 0x32d   :  { %v3266_v54 = vmul.f32 %v3262_v53, %v3206_v8  ;;  %v3263_v49 = vmul.f32 %v8425_v43, %v8379_v28  ;;  %v3289_v51 = vrot.slane %v3262_v53, %v8867_v29 }
 0x32e   :  { %v3135_v50 = vsub.f32 %v8425_v43, %v3127_v13  ;;  %v3161_v63 = vrot.slane %v3134_v52, %v8870_v45  ;;  %v2987_v46 = vpop.f32.mrf.mxu0 }
 0x32f   :  { %v3274_v55 = vrot.slane %v3266_v54, 7  ;;  %v3267_v57 = vmul.f32 %v3263_v49, %v3207_v20  ;;  %v3293_v61 = vrot.slane %v3263_v49, %v8867_v29  ;;  %v3302_v0 = vmul.f32 %v3289_v51, %v8853_v17 }
 0x330   :  { %v3165_v59 = vrot.slane %v3135_v50, %v8870_v45  ;;  %v3174_v11 = vadd.f32 %v3161_v63, %v3154_v5  ;;  %v7977_v50 = vld [vmem:[#allocation10 + $0x88] ss:$16 sps:$4 sm:$0xff]  }
 0x331   :  { %v3275_v60 = vrot.slane %v3267_v57, 7  ;;  %v3282_v62 = vsub.f32 %v8424_v39, %v3274_v55  ;;  %v3303_v7 = vmul.f32 %v3293_v61, %v8859_v27  ;;  %v7985_v57 = vld [vmem:[#allocation10 + $0x6c] ss:$16 sps:$4 sm:$0xff]  }
 0x332   :  { %v3175_v6 = vadd.f32 %v3165_v59, %v3155_v1  ;;  %v3178_v17 = vmax.f32 %v3174_v11, 0.0 }
 0x333   :  { %v3283_v2 = vsub.f32 %v8425_v43, %v3275_v60  ;;  %v3309_v3 = vrot.slane %v3282_v62, %v8870_v45 }
 0x334   :  { %v3179_v16 = vmax.f32 %v3175_v6, 0.0 }
 0x335   :  { %v3313_v8 = vrot.slane %v3283_v2, %v8870_v45  ;;  %v3322_v10 = vadd.f32 %v3309_v3, %v3302_v0 }
 0x337   :  { %v3323_v14 = vadd.f32 %v3313_v8, %v3303_v7  ;;  %v3326_v15 = vmax.f32 %v3322_v10, 0.0  ;;  %v7983_v7 = vld [vmem:[#allocation10 + $0x68] ss:$16 sps:$4 sm:$0xff]  }
 0x339   :  { %v3327_v18 = vmax.f32 %v3323_v14, 0.0  ;;  %v8884_v22 = vpack.c.bf16 %v3326_v15, %v3178_v17  ;;  %v7991_v15 = vld [vmem:[#allocation10 + $0x4c] ss:$16 sps:$4 sm:$0xff]  }
 0x33b   :  { %v3331_v20 = vpack.c.bf16 %v3327_v18, %v3179_v16 }
 0x33d   :  { %4134 = vmatprep.mubr.bf16.mxu0 %v3331_v20 }
 0x33e   :  { %4135 = vmatmul.mubr.bf16.vlgmr.msra.gmra.mxu0 %v8884_v22 }
 0x33f   :  { %4189 = vmatpush1.bf16.msra.mxu0 %v7959_v9  ;;  %v3024_v27 = vpop.f32.mrf.mxu1  ;;  %4220 = vmatprep.mubr.bf16.mxu0 %v3331_v20 }
 0x340   :  { %v8887_v25 = vadd.f32 %v3024_v27, %v2981_v19  ;;  %4190 = vmatprep.subr.bf16.mxu0 %v7967_v23 }
 0x341   :  { %v3026_v30 = vpop.f32.mrf.mxu1 }
 0x342   :  { %v3045_v33 = vrot.slane %v8887_v25, 4  ;;  %v3064_v34 = vmul.f32 %v8887_v25, %v8887_v25  ;;  %v8892_v35 = vadd.f32 %v3026_v30, %v2983_v4 }
 0x343   :  { %4191 = vmatpush1.bf16.msra.mxu0 %v7965_v24  ;;  %v3028_v36 = vpop.f32.mrf.mxu1 }
 0x344   :  { %v3046_v38 = vadd.f32 %v3045_v33, %v8887_v25  ;;  %v3078_v39 = vrot.slane %v3064_v34, 4  ;;  %v3051_v40 = vrot.slane %v8892_v35, 4  ;;  %v3065_v41 = vmul.f32 %v8892_v35, %v8892_v35  ;;  %4192 = vmatprep.subr.bf16.mxu0 %v7973_v26 }
 0x345   :  { %v8898_v43 = vadd.f32 %v3028_v36, %v2985_v31  ;;  %v3030_v44 = vpop.f32.mrf.mxu1  ;;  %v7989_v31 = vld [vmem:[#allocation10 + $0x48] ss:$16 sps:$4 sm:$0xff]  }
 0x346   :  { %v3047_v48 = vrot.slane %v3046_v38, 2  ;;  %v3079_v12 = vadd.f32 %v3078_v39, %v3064_v34  ;;  %v3052_v53 = vadd.f32 %v3051_v40, %v8892_v35  ;;  %v3084_v28 = vrot.slane %v3065_v41, 4 }
 0x347   :  { %v3194_v13 = vrot.slane %v8898_v43, 4  ;;  %v3212_v54 = vmul.f32 %v8898_v43, %v8898_v43  ;;  %v8904_v49 = vadd.f32 %v3030_v44, %v2987_v46  ;;  %4193 = vmatpush1.bf16.msra.mxu0 %v7971_v37 }
 0x348   :  { %v3048_v52 = vadd.f32 %v3047_v48, %v3046_v38  ;;  %v3080_v55 = vrot.slane %v3079_v12, 2  ;;  %v3053_v51 = vrot.slane %v3052_v53, 2  ;;  %v3085_v56 = vadd.f32 %v3084_v28, %v3065_v41  ;;  %4194 = vmatprep.subr.bf16.mxu0 %v7979_v42  ;;  %v7997_v38 = vld [vmem:[#allocation10 + $0x2c] ss:$16 sps:$4 sm:$0xff]  }
 0x349   :  { %v3195_v58 = vadd.f32 %v3194_v13, %v8898_v43  ;;  %v3226_v59 = vrot.slane %v3212_v54, 4  ;;  %v3200_v60 = vrot.slane %v8904_v49, 4  ;;  %v3213_v61 = vmul.f32 %v8904_v49, %v8904_v49 }
 0x34a   :  { %v3049_v62 = vrot.slane %v3048_v52, 1  ;;  %v3081_v63 = vadd.f32 %v3080_v55, %v3079_v12  ;;  %v3054_v0 = vadd.f32 %v3053_v51, %v3052_v53  ;;  %v3086_v1 = vrot.slane %v3085_v56, 2  ;;  %v8003_v55 = vld [vmem:[#allocation10 + $0xc] ss:$16 sps:$4 sm:$0xff]  }
 0x34b   :  { %v3196_v2 = vrot.slane %v3195_v58, 2  ;;  %v3227_v3 = vadd.f32 %v3226_v59, %v3212_v54  ;;  %v3201_v5 = vadd.f32 %v3200_v60, %v8904_v49  ;;  %v3232_v6 = vrot.slane %v3213_v61, 4  ;;  %4195 = vmatpush1.bf16.msra.mxu0 %v7977_v50  ;;  %v7995_v54 = vld [vmem:[#allocation10 + $0x28] ss:$16 sps:$4 sm:$0xff]  }
 0x34c   :  { %v3050_v8 = vadd.f32 %v3049_v62, %v3048_v52  ;;  %v3082_v10 = vrot.slane %v3081_v63, 1  ;;  %v3055_v11 = vrot.slane %v3054_v0, 1  ;;  %v3087_v14 = vadd.f32 %v3086_v1, %v3085_v56  ;;  %4196 = vmatprep.subr.bf16.mxu0 %v7985_v57 }
 0x34d   :  { %v3197_v16 = vadd.f32 %v3196_v2, %v3195_v58  ;;  %v3228_v18 = vrot.slane %v3227_v3, 2  ;;  %v3202_v19 = vrot.slane %v3201_v5, 2  ;;  %v3233_v17 = vadd.f32 %v3232_v6, %v3213_v61  ;;  %v8009_v2 = vld [vmem:[#allocation10 + $0x1ec] ss:$16 sps:$4 sm:$0xff]  }
 0x34e   :  { %v8911_v20 = vmul.f32 0.125, %v3050_v8  ;;  %v3083_v9 = vadd.f32 %v3082_v10, %v3081_v63  ;;  %v3056_v23 = vadd.f32 %v3055_v11, %v3054_v0  ;;  %v3088_v4 = vrot.slane %v3087_v14, 1  ;;  %v8001_v0 = vld [vmem:[#allocation10 + $0x8] ss:$16 sps:$4 sm:$0xff]   ;;  %v8015_v10 = vld [vmem:[#allocation10 + $0x1cc] ss:$16 sps:$4 sm:$0xff]  }
 0x34f   :  { %v3198_v27 = vrot.slane %v3197_v16, 1  ;;  %v3229_v24 = vadd.f32 %v3228_v18, %v3227_v3  ;;  %v3203_v26 = vadd.f32 %v3202_v19, %v3201_v5  ;;  %v3234_v30 = vrot.slane %v3233_v17, 2  ;;  %4197 = vmatpush1.bf16.msra.mxu0 %v7983_v7  ;;  %v8007_v8 = vld [vmem:[#allocation10 + $0x1e8] ss:$16 sps:$4 sm:$0xff]   ;;  %v8027_v18 = vld [vmem:[#allocation10 + $0x18c] ss:$16 sps:$4 sm:$0xff]  }
 0x350   :  { %v3092_v33 = vmul.f32 0.125, %v3083_v9  ;;  %v3096_v34 = vmul.f32 %v8911_v20, %v8911_v20  ;;  %v8915_v36 = vmul.f32 0.125, %v3056_v23  ;;  %v3089_v37 = vadd.f32 %v3088_v4, %v3087_v14  ;;  %4198 = vmatprep.subr.bf16.mxu0 %v7991_v15  ;;  %v8013_v14 = vld [vmem:[#allocation10 + $0x1c8] ss:$16 sps:$4 sm:$0xff]   ;;  %v8021_v15 = vld [vmem:[#allocation10 + $0x1ac] ss:$16 sps:$4 sm:$0xff]  }
 0x351   :  { %v3199_v39 = vadd.f32 %v3198_v27, %v3197_v16  ;;  %v3230_v40 = vrot.slane %v3229_v24, 1  ;;  %v3204_v41 = vrot.slane %v3203_v26, 1  ;;  %v3235_v42 = vadd.f32 %v3234_v30, %v3233_v17  ;;  %v8019_v16 = vld [vmem:[#allocation10 + $0x1a8] ss:$16 sps:$4 sm:$0xff]   ;;  %v8033_v27 = vld [vmem:[#allocation10 + $0x16c] ss:$16 sps:$4 sm:$0xff]  }
 0x352   :  { %v3100_v44 = vsub.f32 %v3092_v33, %v3096_v34  ;;  %v3093_v46 = vmul.f32 0.125, %v3089_v37  ;;  %v3097_v48 = vmul.f32 %v8915_v36, %v8915_v36  ;;  %v8025_v23 = vld [vmem:[#allocation10 + $0x188] ss:$16 sps:$4 sm:$0xff]   ;;  %v8427_v34 = vld [vmem:[#allocation16 + $0x10] sm:$0xff] }
 0x353   :  { %v8919_v12 = vmul.f32 0.125, %v3199_v39  ;;  %v3231_v53 = vadd.f32 %v3230_v40, %v3229_v24  ;;  %v3205_v28 = vadd.f32 %v3204_v41, %v3203_v26  ;;  %v3236_v13 = vrot.slane %v3235_v42, 1  ;;  %4199 = vmatpush1.bf16.msra.mxu0 %v7989_v31  ;;  %v8426_v24 = vld [vmem:[#allocation16 + $0x18] sm:$0xff] }
 0x354   :  { %v3104_v50 = vmax.f32 %v3100_v44, 0.0  ;;  %v3101_v52 = vsub.f32 %v3093_v46, %v3097_v48  ;;  %4200 = vmatprep.subr.bf16.mxu0 %v7997_v38  ;;  %v8031_v38 = vld [vmem:[#allocation10 + $0x168] ss:$16 sps:$4 sm:$0xff]  }
 0x355   :  { %v3240_v51 = vmul.f32 0.125, %v3231_v53  ;;  %v3244_v56 = vmul.f32 %v8919_v12, %v8919_v12  ;;  %v8923_v57 = vmul.f32 0.125, %v3205_v28  ;;  %v3237_v58 = vadd.f32 %v3236_v13, %v3235_v42  ;;  %v8037_v53 = vld [vmem:[#allocation10 + $0x148] ss:$16 sps:$4 sm:$0xff]  }
 0x356   :  { %v3108_v59 = vadd.f32 1e-05, %v3104_v50  ;;  %v3105_v60 = vmax.f32 %v3101_v52, 0.0 }
 0x357   :  { %v3248_v61 = vsub.f32 %v3240_v51, %v3244_v56  ;;  %v3241_v62 = vmul.f32 0.125, %v3237_v58  ;;  %v3245_v63 = vmul.f32 %v8923_v57, %v8923_v57  ;;  %4201 = vmatpush1.bf16.msra.mxu0 %v7995_v54  ;;  %v8045_v54 = vld [vmem:[#allocation10 + $0x12c] ss:$16 sps:$4 sm:$0xff]   ;;  %v8043_v58 = vld [vmem:[#allocation10 + $0x128] ss:$16 sps:$4 sm:$0xff]  }
 0x358   :  { %8380 = vrsqrt.f32 %v3108_v59  ;;  %v3109_v1 = vadd.f32 1e-05, %v3105_v60  ;;  %4202 = vmatprep.subr.bf16.mxu0 %v8003_v55 }
 0x359   :  { %v3252_v3 = vmax.f32 %v3248_v61, 0.0  ;;  %v3249_v5 = vsub.f32 %v3241_v62, %v3245_v63  ;;  %v8051_v62 = vld [vmem:[#allocation10 + $0x10c] ss:$16 sps:$4 sm:$0xff]  }
 0x35a   :  { %8382 = vrsqrt.f32 %v3109_v1 }
 0x35b   :  { %v3256_v6 = vadd.f32 1e-05, %v3252_v3  ;;  %v3253_v7 = vmax.f32 %v3249_v5, 0.0  ;;  %4203 = vmatpush1.bf16.msra.mxu0 %v8001_v0 }
 0x35c   :  { %4204 = vmatprep.subr.bf16.mxu0 %v8009_v2 }
 0x35d   :  { %8384 = vrsqrt.f32 %v3256_v6  ;;  %v3257_v11 = vadd.f32 1e-05, %v3253_v7 }
 0x35f   :  { %8386 = vrsqrt.f32 %v3257_v11  ;;  %4205 = vmatpush2.bf16.msra.mxu0 %v8007_v8 }
 0x360   :  { %4206 = vmatprep.subr.bf16.mxu0 %v8015_v10 }
 0x363   :  { %4207 = vmatpush2.bf16.msra.mxu0 %v8013_v14  ;;  %v8057_v14 = vld [vmem:[#allocation10 + $0x2cc] ss:$16 sps:$4 sm:$0xff]  }
 0x364   :  { %4208 = vmatprep.subr.bf16.mxu0 %v8021_v15  ;;  %v8058_v15 = vld [vmem:[#allocation10 + $0x2a8] ss:$16 sps:$4 sm:$0xff]  }
 0x365   :  { %v8381_v19 = vpop.eup %8380 }
 0x366   :  { %v3116_v17 = vmul.f32 %v8381_v19, %v8833_v47  ;;  %v8039_v47 = vld [vmem:[#allocation10 + $0x14c] ss:$16 sps:$4 sm:$0xff]   ;;  %v8102_v19 = vld [vmem:[#allocation11 + $0xe4] ss:$16 sps:$4 sm:$0xff]  }
 0x367   :  { %v8383_v9 = vpop.eup %8382  ;;  %4209 = vmatpush2.bf16.msra.mxu0 %v8019_v16  ;;  %v8063_v16 = vld [vmem:[#allocation10 + $0x28c] ss:$16 sps:$4 sm:$0xff]  }
 0x368   :  { %v3120_v4 = vmul.f32 %v3116_v17, %v8911_v20  ;;  %4210 = vmatprep.subr.bf16.mxu0 %v8027_v18  ;;  %v3117_v26 = vmul.f32 %v8426_v24, %v8383_v9  ;;  %v3149_v13 = vrot.slane %v3116_v17, %v8867_v29  ;;  %v8100_v18 = vld [vmem:[#allocation11 + $0xe0] ss:$16 sps:$4 sm:$0xff]   ;;  %v8061_v17 = vld [vmem:[#allocation10 + $0x288] ss:$16 sps:$4 sm:$0xff]   ;;  %v8066_v9 = vld [vmem:[#allocation10 + $0x26c] ss:$16 sps:$4 sm:$0xff]  }
 0x36a   :  { %v8385_v30 = vpop.eup %8384  ;;  %v3128_v31 = vrot.slane %v3120_v4, 7  ;;  %v3121_v33 = vmul.f32 %v3117_v26, %v8915_v36  ;;  %v3153_v36 = vrot.slane %v3117_v26, %v8867_v29  ;;  %v3156_v61 = vmul.f32 %v3149_v13, %v8887_v25  ;;  %v8052_v25 = vld [vmem:[#allocation10 + $0x2e8] ss:$16 sps:$4 sm:$0xff]   ;;  %v8075_v26 = vld [vmem:[#allocation10 + $0x20c] ss:$16 sps:$4 sm:$0xff]  }
 0x36b   :  { %v3264_v37 = vmul.f32 %v8427_v34, %v8385_v30  ;;  %4211 = vmatpush2.bf16.msra.mxu0 %v8025_v23  ;;  %v8064_v23 = vld [vmem:[#allocation10 + $0x268] ss:$16 sps:$4 sm:$0xff]   ;;  %v8103_v13 = vld [vmem:[#allocation11 + $0xc0] ss:$16 sps:$4 sm:$0xff]  }
 0x36c   :  { %v8387_v39 = vpop.eup %8386  ;;  %4212 = vmatprep.subr.bf16.mxu0 %v8033_v27  ;;  %v3129_v40 = vrot.slane %v3121_v33, 7  ;;  %v3136_v44 = vsub.f32 %v8427_v34, %v3128_v31  ;;  %v3157_v59 = vmul.f32 %v3153_v36, %v8892_v35  ;;  %v8067_v4 = vld [vmem:[#allocation10 + $0x248] ss:$16 sps:$4 sm:$0xff]   ;;  %v8072_v27 = vld [vmem:[#allocation10 + $0x22c] ss:$16 sps:$4 sm:$0xff]  }
 0x36d   :  { %v3268_v41 = vmul.f32 %v3264_v37, %v8919_v12  ;;  %v3265_v42 = vmul.f32 %v8426_v24, %v8387_v39  ;;  %v3297_v48 = vrot.slane %v3264_v37, %v8867_v29  ;;  %v8073_v30 = vld [vmem:[#allocation10 + $0x208] ss:$16 sps:$4 sm:$0xff]   ;;  %v8078_v31 = vld [vmem:[#allocation10 + $0x3ec] ss:$16 sps:$4 sm:$0xff]  }
 0x36e   :  { %v3137_v20 = vsub.f32 %v8426_v24, %v3129_v40  ;;  %v3169_v51 = vrot.slane %v3136_v44, %v8870_v45  ;;  %v8076_v33 = vld [vmem:[#allocation10 + $0x3e8] ss:$16 sps:$4 sm:$0xff]  }
 0x36f   :  { %v3276_v46 = vrot.slane %v3268_v41, 7  ;;  %4213 = vmatpush2.bf16.msra.mxu0 %v8031_v38  ;;  %v3269_v28 = vmul.f32 %v3265_v42, %v8923_v57  ;;  %v3301_v12 = vrot.slane %v3265_v42, %v8867_v29  ;;  %v3304_v56 = vmul.f32 %v3297_v48, %v8898_v43  ;;  %v8049_v43 = vld [vmem:[#allocation10 + $0x108] ss:$16 sps:$4 sm:$0xff]   ;;  %v8084_v38 = vld [vmem:[#allocation10 + $0x3ac] ss:$16 sps:$4 sm:$0xff]  }
 0x370   :  { %4214 = vmatprep.subr.bf16.mxu0 %v8039_v47  ;;  %v3173_v50 = vrot.slane %v3137_v20, %v8870_v45  ;;  %v3176_v3 = vadd.f32 %v3169_v51, %v3156_v61  ;;  %v8079_v37 = vld [vmem:[#allocation10 + $0x3c8] ss:$16 sps:$4 sm:$0xff]   ;;  %v8087_v47 = vld [vmem:[#allocation10 + $0x38c] ss:$16 sps:$4 sm:$0xff]   ;;  %v8112_v51 = vld [vmem:[#allocation11 + $0x60] ss:$16 sps:$4 sm:$0xff]  }
 0x371   :  { %v3277_v52 = vrot.slane %v3269_v28, 7  ;;  %v3284_v55 = vsub.f32 %v8427_v34, %v3276_v46  ;;  %v3305_v0 = vmul.f32 %v3301_v12, %v8904_v49  ;;  %v8060_v49 = vld [vmem:[#allocation10 + $0x2ac] ss:$16 sps:$4 sm:$0xff]   ;;  %v8082_v39 = vld [vmem:[#allocation10 + $0x3a8] ss:$16 sps:$4 sm:$0xff]  }
 0x372   :  { %v3177_v63 = vadd.f32 %v3173_v50, %v3157_v59  ;;  %v3180_v8 = vmax.f32 %v3176_v3, 0.0  ;;  %v8081_v34 = vld [vmem:[#allocation10 + $0x3cc] ss:$16 sps:$4 sm:$0xff]   ;;  %v8085_v40 = vld [vmem:[#allocation10 + $0x388] ss:$16 sps:$4 sm:$0xff]  }
 0x373   :  { %4215 = vmatpush2.bf16.msra.mxu0 %v8037_v53  ;;  %v3285_v60 = vsub.f32 %v8426_v24, %v3277_v52  ;;  %v3317_v57 = vrot.slane %v3284_v55, %v8870_v45  ;;  %v8070_v24 = vld [vmem:[#allocation10 + $0x228] ss:$16 sps:$4 sm:$0xff]   ;;  %v8090_v41 = vld [vmem:[#allocation10 + $0x36c] ss:$16 sps:$4 sm:$0xff]   ;;  %v8105_v28 = vld [vmem:[#allocation11 + $0xc4] ss:$16 sps:$4 sm:$0xff]  }
 0x374   :  { %4216 = vmatprep.subr.bf16.mxu0 %v8045_v54  ;;  %v3181_v35 = vmax.f32 %v3177_v63, 0.0  ;;  %v8088_v42 = vld [vmem:[#allocation10 + $0x368] ss:$16 sps:$4 sm:$0xff]   ;;  %v8093_v20 = vld [vmem:[#allocation10 + $0x34c] ss:$16 sps:$4 sm:$0xff]  }
 0x375   :  { %v3321_v1 = vrot.slane %v3285_v60, %v8870_v45  ;;  %v3324_v2 = vadd.f32 %v3317_v57, %v3304_v56  ;;  %v8055_v45 = vld [vmem:[#allocation10 + $0x2c8] ss:$16 sps:$4 sm:$0xff]   ;;  %v8096_v46 = vld [vmem:[#allocation10 + $0x32c] ss:$16 sps:$4 sm:$0xff]   ;;  %v8108_v54 = vld [vmem:[#allocation11 + $0xa4] ss:$16 sps:$4 sm:$0xff]  }
 0x376   :  { %v8091_v44 = vld [vmem:[#allocation10 + $0x348] ss:$16 sps:$4 sm:$0xff]   ;;  %v8099_v53 = vld [vmem:[#allocation10 + $0x30c] ss:$16 sps:$4 sm:$0xff]   ;;  %v8106_v50 = vld [vmem:[#allocation11 + $0xa0] ss:$16 sps:$4 sm:$0xff]  }
 0x377   :  { %4217 = vmatpush2.bf16.msra.mxu0 %v8043_v58  ;;  %v3325_v5 = vadd.f32 %v3321_v1, %v3305_v0  ;;  %v3328_v6 = vmax.f32 %v3324_v2, 0.0  ;;  %v8094_v48 = vld [vmem:[#allocation10 + $0x328] ss:$16 sps:$4 sm:$0xff]   ;;  %v8111_v52 = vld [vmem:[#allocation11 + $0x84] ss:$16 sps:$4 sm:$0xff]  }
 0x378   :  { %4218 = vmatprep.subr.bf16.mxu0 %v8051_v62  ;;  %v8097_v36 = vld [vmem:[#allocation10 + $0x308] ss:$16 sps:$4 sm:$0xff]   ;;  %v8109_v12 = vld [vmem:[#allocation11 + $0x80] ss:$16 sps:$4 sm:$0xff]   ;;  %v8114_v55 = vld [vmem:[#allocation11 + $0x64] ss:$16 sps:$4 sm:$0xff]  }
 0x379   :  { %v3329_v7 = vmax.f32 %v3325_v5, 0.0  ;;  %v8944_v11 = vpack.c.bf16 %v3328_v6, %v3180_v8  ;;  %v8117_v56 = vld [vmem:[#allocation11 + $0x44] ss:$16 sps:$4 sm:$0xff]   ;;  %v8115_v58 = vld [vmem:[#allocation11 + $0x40] ss:$16 sps:$4 sm:$0xff]  }
 0x37a   :  { %v8120_v59 = vld [vmem:[#allocation11 + $0x24] ss:$16 sps:$4 sm:$0xff]   ;;  %v8118_v60 = vld [vmem:[#allocation11 + $0x20] ss:$16 sps:$4 sm:$0xff]  }
 0x37b   :  { %4219 = vmatpush2.bf16.msra.mxu0 %v8049_v43  ;;  %v3333_v10 = vpack.c.bf16 %v3329_v7, %v3181_v35  ;;  %v8123_v57 = vld [vmem:[#allocation11 + $0x4] ss:$16 sps:$4 sm:$0xff]   ;;  %v8121_v61 = vld [vmem:[#allocation11] ss:$16 sps:$4 sm:$0xff]  }
 0x37c   :  { %5342 = vmatprep.subr.bf16.mxu0 %v8102_v19  ;;  %v8126_v62 = vld [vmem:[#allocation11 + $0x1e4] ss:$16 sps:$4 sm:$0xff]   ;;  %v8124_v63 = vld [vmem:[#allocation11 + $0x1e0] ss:$16 sps:$4 sm:$0xff]  }
 0x37d   :  { %4177 = vmatprep.mubr.bf16.mxu1 %v3333_v10  ;;  %v8129_v0 = vld [vmem:[#allocation11 + $0x1c4] ss:$16 sps:$4 sm:$0xff]   ;;  %v8127_v1 = vld [vmem:[#allocation11 + $0x1c0] ss:$16 sps:$4 sm:$0xff]  }
 0x37e   :  { %4178 = vmatmul.mubr.bf16.vlgmr.msra.gmra.mxu1 %v8944_v11  ;;  %4221 = vmatmul.mubr.bf16.vlgmr.msra.gmra.mxu0 %v8884_v22  ;;  %v8069_v22 = vld [vmem:[#allocation10 + $0x24c] ss:$16 sps:$4 sm:$0xff]   ;;  %v8132_v2 = vld [vmem:[#allocation11 + $0x1a4] ss:$16 sps:$4 sm:$0xff]   ;;  %v8130_v3 = vld [vmem:[#allocation11 + $0x1a0] ss:$16 sps:$4 sm:$0xff]  }
 0x37f   :  { %4232 = vmatpush1.bf16.msra.mxu1 %v8052_v25  ;;  %4263 = vmatprep.mubr.bf16.mxu1 %v3333_v10  ;;  %v8135_v43 = vld [vmem:[#allocation11 + $0x184] ss:$16 sps:$4 sm:$0xff]   ;;  %v8133_v5 = vld [vmem:[#allocation11 + $0x180] ss:$16 sps:$4 sm:$0xff]  }
 0x380   :  { %4233 = vmatprep.subr.bf16.mxu1 %v8057_v14  ;;  %5343 = vmatpush1.bf16.msra.mxu0 %v8100_v18  ;;  %v8138_v6 = vld [vmem:[#allocation11 + $0x164] ss:$16 sps:$4 sm:$0xff]   ;;  %v8136_v35 = vld [vmem:[#allocation11 + $0x160] ss:$16 sps:$4 sm:$0xff]  }
 0x381   :  { %5344 = vmatprep.subr.bf16.mxu0 %v8105_v28  ;;  %v8139_v7 = vld [vmem:[#allocation11 + $0x140] ss:$16 sps:$4 sm:$0xff]   ;;  %v8141_v8 = vld [vmem:[#allocation11 + $0x144] ss:$16 sps:$4 sm:$0xff]  }
 0x382   :  { %v8144_v10 = vld [vmem:[#allocation11 + $0x124] ss:$16 sps:$4 sm:$0xff]   ;;  %v8148_v25 = vld [vmem:[#allocation11 + $0x2e0] ss:$16 sps:$4 sm:$0xff]  }
 0x383   :  { %4234 = vmatpush1.bf16.msra.mxu1 %v8055_v45  ;;  %v8142_v14 = vld [vmem:[#allocation11 + $0x120] ss:$16 sps:$4 sm:$0xff]   ;;  %v8147_v45 = vld [vmem:[#allocation11 + $0x104] ss:$16 sps:$4 sm:$0xff]  }
 0x384   :  { %4235 = vmatprep.subr.bf16.mxu1 %v8060_v49  ;;  %5345 = vmatpush1.bf16.msra.mxu0 %v8103_v13  ;;  %v8145_v49 = vld [vmem:[#allocation11 + $0x100] ss:$16 sps:$4 sm:$0xff]   ;;  %v8162_v19 = vld [vmem:[#allocation11 + $0x2a4] ss:$16 sps:$4 sm:$0xff]  }
 0x385   :  { %5346 = vmatprep.subr.bf16.mxu0 %v8108_v54  ;;  %v8154_v18 = vld [vmem:[#allocation11 + $0x2c0] ss:$16 sps:$4 sm:$0xff]   ;;  %v8240_v13 = vld [vmem:[#allocation11 + $0x304] ss:$16 sps:$4 sm:$0xff]  }
 0x386   :  { %v8238_v28 = vld [vmem:[#allocation11 + $0x300] ss:$16 sps:$4 sm:$0xff]  }
 0x387   :  { %4236 = vmatpush1.bf16.msra.mxu1 %v8058_v15  ;;  %v8153_v15 = vld [vmem:[#allocation11 + $0xec] ss:$16 sps:$4 sm:$0xff]  }
 0x388   :  { %4237 = vmatprep.subr.bf16.mxu1 %v8063_v16  ;;  %5347 = vmatpush1.bf16.msra.mxu0 %v8106_v50  ;;  %v8156_v16 = vld [vmem:[#allocation11 + $0x2c4] ss:$16 sps:$4 sm:$0xff]   ;;  %v8246_v50 = vld [vmem:[#allocation11 + $0x2ec] ss:$16 sps:$4 sm:$0xff]  }
 0x389   :  { %5348 = vmatprep.subr.bf16.mxu0 %v8111_v52 }
 0x38b   :  { %4238 = vmatpush1.bf16.msra.mxu1 %v8061_v17  ;;  %v8160_v17 = vld [vmem:[#allocation11 + $0x2a0] ss:$16 sps:$4 sm:$0xff]  }
 0x38c   :  { %4239 = vmatprep.subr.bf16.mxu1 %v8066_v9  ;;  %5349 = vmatpush1.bf16.msra.mxu0 %v8109_v12  ;;  %v8168_v9 = vld [vmem:[#allocation11 + $0x284] ss:$16 sps:$4 sm:$0xff]  }
 0x38d   :  { %5350 = vmatprep.subr.bf16.mxu0 %v8114_v55 }
 0x38f   :  { %4240 = vmatpush1.bf16.msra.mxu1 %v8064_v23  ;;  %v8166_v23 = vld [vmem:[#allocation11 + $0x280] ss:$16 sps:$4 sm:$0xff]  }
 0x390   :  { %4241 = vmatprep.subr.bf16.mxu1 %v8069_v22  ;;  %5351 = vmatpush1.bf16.msra.mxu0 %v8112_v51  ;;  %v8174_v22 = vld [vmem:[#allocation11 + $0x264] ss:$16 sps:$4 sm:$0xff]  }
 0x391   :  { %5352 = vmatprep.subr.bf16.mxu0 %v8117_v56 }
 0x393   :  { %4242 = vmatpush1.bf16.msra.mxu1 %v8067_v4  ;;  %v8172_v4 = vld [vmem:[#allocation11 + $0x260] ss:$16 sps:$4 sm:$0xff]  }
 0x394   :  { %4243 = vmatprep.subr.bf16.mxu1 %v8072_v27  ;;  %5353 = vmatpush1.bf16.msra.mxu0 %v8115_v58  ;;  %v8180_v27 = vld [vmem:[#allocation11 + $0x244] ss:$16 sps:$4 sm:$0xff]  }
 0x395   :  { %5354 = vmatprep.subr.bf16.mxu0 %v8120_v59 }
 0x397   :  { %4244 = vmatpush1.bf16.msra.mxu1 %v8070_v24  ;;  %v8178_v24 = vld [vmem:[#allocation11 + $0x240] ss:$16 sps:$4 sm:$0xff]  }
 0x398   :  { %4245 = vmatprep.subr.bf16.mxu1 %v8075_v26  ;;  %5355 = vmatpush1.bf16.msra.mxu0 %v8118_v60  ;;  %v8186_v26 = vld [vmem:[#allocation11 + $0x224] ss:$16 sps:$4 sm:$0xff]  }
 0x399   :  { %5356 = vmatprep.subr.bf16.mxu0 %v8123_v57 }
 0x39b   :  { %4246 = vmatpush1.bf16.msra.mxu1 %v8073_v30  ;;  %v8184_v30 = vld [vmem:[#allocation11 + $0x220] ss:$16 sps:$4 sm:$0xff]  }
 0x39c   :  { %4247 = vmatprep.subr.bf16.mxu1 %v8078_v31  ;;  %5357 = vmatpush1.bf16.msra.mxu0 %v8121_v61  ;;  %v8192_v31 = vld [vmem:[#allocation11 + $0x204] ss:$16 sps:$4 sm:$0xff]  }
 0x39d   :  { %5358 = vmatprep.subr.bf16.mxu0 %v8126_v62 }
 0x39f   :  { %4248 = vmatpush2.bf16.msra.mxu1 %v8076_v33  ;;  %v8190_v33 = vld [vmem:[#allocation11 + $0x200] ss:$16 sps:$4 sm:$0xff]  }
 0x3a0   :  { %4249 = vmatprep.subr.bf16.mxu1 %v8081_v34  ;;  %5359 = vmatpush2.bf16.msra.mxu0 %v8124_v63  ;;  %v8198_v34 = vld [vmem:[#allocation11 + $0x3e4] ss:$16 sps:$4 sm:$0xff]  }
 0x3a1   :  { %5360 = vmatprep.subr.bf16.mxu0 %v8129_v0 }
 0x3a3   :  { %4250 = vmatpush2.bf16.msra.mxu1 %v8079_v37  ;;  %v8196_v37 = vld [vmem:[#allocation11 + $0x3e0] ss:$16 sps:$4 sm:$0xff]  }
 0x3a4   :  { %4251 = vmatprep.subr.bf16.mxu1 %v8084_v38  ;;  %5361 = vmatpush2.bf16.msra.mxu0 %v8127_v1  ;;  %v8204_v38 = vld [vmem:[#allocation11 + $0x3c4] ss:$16 sps:$4 sm:$0xff]  }
 0x3a5   :  { %5362 = vmatprep.subr.bf16.mxu0 %v8132_v2 }
 0x3a7   :  { %4252 = vmatpush2.bf16.msra.mxu1 %v8082_v39  ;;  %v8202_v39 = vld [vmem:[#allocation11 + $0x3c0] ss:$16 sps:$4 sm:$0xff]  }
 0x3a8   :  { %4253 = vmatprep.subr.bf16.mxu1 %v8087_v47  ;;  %5363 = vmatpush2.bf16.msra.mxu0 %v8130_v3  ;;  %v8210_v47 = vld [vmem:[#allocation11 + $0x3a4] ss:$16 sps:$4 sm:$0xff]  }
 0x3a9   :  { %5364 = vmatprep.subr.bf16.mxu0 %v8135_v43 }
 0x3ab   :  { %4254 = vmatpush2.bf16.msra.mxu1 %v8085_v40  ;;  %v8208_v40 = vld [vmem:[#allocation11 + $0x3a0] ss:$16 sps:$4 sm:$0xff]  }
 0x3ac   :  { %4255 = vmatprep.subr.bf16.mxu1 %v8090_v41  ;;  %5365 = vmatpush2.bf16.msra.mxu0 %v8133_v5  ;;  %v8216_v41 = vld [vmem:[#allocation11 + $0x384] ss:$16 sps:$4 sm:$0xff]  }
 0x3ad   :  { %5366 = vmatprep.subr.bf16.mxu0 %v8138_v6 }
 0x3af   :  { %4256 = vmatpush2.bf16.msra.mxu1 %v8088_v42  ;;  %v8214_v42 = vld [vmem:[#allocation11 + $0x380] ss:$16 sps:$4 sm:$0xff]  }
 0x3b0   :  { %4257 = vmatprep.subr.bf16.mxu1 %v8093_v20  ;;  %5367 = vmatpush2.bf16.msra.mxu0 %v8136_v35  ;;  %v8222_v20 = vld [vmem:[#allocation11 + $0x364] ss:$16 sps:$4 sm:$0xff]  }
 0x3b1   :  { %5368 = vmatprep.subr.bf16.mxu0 %v8141_v8 }
 0x3b3   :  { %4258 = vmatpush2.bf16.msra.mxu1 %v8091_v44  ;;  %v8220_v44 = vld [vmem:[#allocation11 + $0x360] ss:$16 sps:$4 sm:$0xff]  }
 0x3b4   :  { %4259 = vmatprep.subr.bf16.mxu1 %v8096_v46  ;;  %5369 = vmatpush2.bf16.msra.mxu0 %v8139_v7  ;;  %v8226_v46 = vld [vmem:[#allocation11 + $0x340] ss:$16 sps:$4 sm:$0xff]  }
 0x3b5   :  { %5370 = vmatprep.subr.bf16.mxu0 %v8144_v10 }
 0x3b7   :  { %4260 = vmatpush2.bf16.msra.mxu1 %v8094_v48  ;;  %v8228_v48 = vld [vmem:[#allocation11 + $0x344] ss:$16 sps:$4 sm:$0xff]  }
 0x3b8   :  { %4261 = vmatprep.subr.bf16.mxu1 %v8099_v53  ;;  %5371 = vmatpush2.bf16.msra.mxu0 %v8142_v14  ;;  %v8232_v53 = vld [vmem:[#allocation11 + $0x320] ss:$16 sps:$4 sm:$0xff]  }
 0x3b9   :  { %5372 = vmatprep.subr.bf16.mxu0 %v8147_v45 }
 0x3bb   :  { %4262 = vmatpush2.bf16.msra.mxu1 %v8097_v36  ;;  %v8234_v36 = vld [vmem:[#allocation11 + $0x324] ss:$16 sps:$4 sm:$0xff]  }
 0x3bc   :  { %5373 = vmatpush2.bf16.msra.mxu0 %v8145_v49 }
 0x3bd   :  { %5428 = vmatprep.subr.bf16.mxu0 %v8153_v15 }
 0x3be   :  { %4264 = vmatmul.mubr.bf16.vlgmr.msra.gmra.mxu1 %v8944_v11  ;;  %v8150_v11 = vld [vmem:[#allocation11 + $0x2e4] ss:$16 sps:$4 sm:$0xff]  }
 0x3bf   :  { %5385 = vmatprep.subr.bf16.mxu1 %v8150_v11 }
 0x3c0   :  { %5386 = vmatpush1.bf16.msra.mxu1 %v8148_v25 }
 0x3c1   :  { %5387 = vmatprep.subr.bf16.mxu1 %v8156_v16 }
 0x3c4   :  { %5388 = vmatpush1.bf16.msra.mxu1 %v8154_v18 }
 0x3c5   :  { %5389 = vmatprep.subr.bf16.mxu1 %v8162_v19 }
 0x3c8   :  { %5390 = vmatpush1.bf16.msra.mxu1 %v8160_v17 }
 0x3c9   :  { %5391 = vmatprep.subr.bf16.mxu1 %v8168_v9 }
 0x3cc   :  { %5392 = vmatpush1.bf16.msra.mxu1 %v8166_v23 }
 0x3cd   :  { %5393 = vmatprep.subr.bf16.mxu1 %v8174_v22 }
 0x3d0   :  { %5394 = vmatpush1.bf16.msra.mxu1 %v8172_v4 }
 0x3d1   :  { %5395 = vmatprep.subr.bf16.mxu1 %v8180_v27 }
 0x3d4   :  { %5396 = vmatpush1.bf16.msra.mxu1 %v8178_v24 }
 0x3d5   :  { %5397 = vmatprep.subr.bf16.mxu1 %v8186_v26 }
 0x3d8   :  { %5398 = vmatpush1.bf16.msra.mxu1 %v8184_v30 }
 0x3d9   :  { %5399 = vmatprep.subr.bf16.mxu1 %v8192_v31 }
 0x3dc   :  { %5400 = vmatpush1.bf16.msra.mxu1 %v8190_v33 }
 0x3dd   :  { %5401 = vmatprep.subr.bf16.mxu1 %v8198_v34 }
 0x3e0   :  { %5402 = vmatpush2.bf16.msra.mxu1 %v8196_v37 }
 0x3e1   :  { %5403 = vmatprep.subr.bf16.mxu1 %v8204_v38 }
 0x3e4   :  { %5404 = vmatpush2.bf16.msra.mxu1 %v8202_v39 }
 0x3e5   :  { %5405 = vmatprep.subr.bf16.mxu1 %v8210_v47 }
 0x3e8   :  { %5406 = vmatpush2.bf16.msra.mxu1 %v8208_v40 }
 0x3e9   :  { %5407 = vmatprep.subr.bf16.mxu1 %v8216_v41 }
 0x3ec   :  { %5408 = vmatpush2.bf16.msra.mxu1 %v8214_v42 }
 0x3ed   :  { %5409 = vmatprep.subr.bf16.mxu1 %v8222_v20 }
 0x3f0   :  { %5410 = vmatpush2.bf16.msra.mxu1 %v8220_v44 }
 0x3f1   :  { %5411 = vmatprep.subr.bf16.mxu1 %v8228_v48 }
 0x3f4   :  { %5412 = vmatpush2.bf16.msra.mxu1 %v8226_v46 }
 0x3f5   :  { %5413 = vmatprep.subr.bf16.mxu1 %v8234_v36 }
 0x3f8   :  { %5414 = vmatpush2.bf16.msra.mxu1 %v8232_v53 }
 0x3f9   :  { %5415 = vmatprep.subr.bf16.mxu1 %v8240_v13 }
 0x3fc   :  { %5416 = vmatpush2.bf16.msra.mxu1 %v8238_v28 }
 0x3fd   :  { %5471 = vmatprep.subr.bf16.mxu1 %v8246_v50 }
 0x3fe   :  { %v4136_v54 = vpop.f32.mrf.mxu0 }
 0x400   :  { %v4138_v52 = vpop.f32.mrf.mxu0 }
 0x402   :  { %v4140_v56 = vpop.f32.mrf.mxu0 }
 0x404   :  { %v4142_v3 = vpop.f32.mrf.mxu0 }
 0x43e   :  { %v4179_v12 = vpop.f32.mrf.mxu1 }
 0x43f   :  { %v8949_v55 = vadd.f32 %v4179_v12, %v4136_v54 }
 0x440   :  { %v4181_v51 = vpop.f32.mrf.mxu1 }
 0x441   :  { %v4274_v58 = vrot.slane %v8949_v55, 4  ;;  %v4302_v59 = vmul.f32 %v8949_v55, %v8949_v55  ;;  %v8954_v60 = vadd.f32 %v4181_v51, %v4138_v52 }
 0x442   :  { %v4183_v57 = vpop.f32.mrf.mxu1 }
 0x443   :  { %v4275_v61 = vadd.f32 %v4274_v58, %v8949_v55  ;;  %v4306_v62 = vrot.slane %v4302_v59, 4  ;;  %v4280_v63 = vrot.slane %v8954_v60, 4  ;;  %v4303_v0 = vmul.f32 %v8954_v60, %v8954_v60 }
 0x444   :  { %v8960_v1 = vadd.f32 %v4183_v57, %v4140_v56  ;;  %v4185_v2 = vpop.f32.mrf.mxu1 }
 0x445   :  { %v4276_v43 = vrot.slane %v4275_v61, 2  ;;  %v4307_v5 = vadd.f32 %v4306_v62, %v4302_v59  ;;  %v4281_v6 = vadd.f32 %v4280_v63, %v8954_v60  ;;  %v4312_v35 = vrot.slane %v4303_v0, 4 }
 0x446   :  { %v4422_v7 = vrot.slane %v8960_v1, 4  ;;  %v4450_v8 = vmul.f32 %v8960_v1, %v8960_v1  ;;  %v8966_v10 = vadd.f32 %v4185_v2, %v4142_v3 }
 0x447   :  { %v4277_v25 = vadd.f32 %v4276_v43, %v4275_v61  ;;  %v4308_v11 = vrot.slane %v4307_v5, 2  ;;  %v4282_v14 = vrot.slane %v4281_v6, 2  ;;  %v4313_v45 = vadd.f32 %v4312_v35, %v4303_v0 }
 0x448   :  { %v4423_v49 = vadd.f32 %v4422_v7, %v8960_v1  ;;  %v4454_v15 = vrot.slane %v4450_v8, 4  ;;  %v4428_v16 = vrot.slane %v8966_v10, 4  ;;  %v4451_v18 = vmul.f32 %v8966_v10, %v8966_v10 }
 0x449   :  { %v4278_v19 = vrot.slane %v4277_v25, 1  ;;  %v4309_v17 = vadd.f32 %v4308_v11, %v4307_v5  ;;  %v4283_v9 = vadd.f32 %v4282_v14, %v4281_v6  ;;  %v4314_v23 = vrot.slane %v4313_v45, 2 }
 0x44a   :  { %v4424_v22 = vrot.slane %v4423_v49, 2  ;;  %v4455_v4 = vadd.f32 %v4454_v15, %v4450_v8  ;;  %v4429_v27 = vadd.f32 %v4428_v16, %v8966_v10  ;;  %v4460_v24 = vrot.slane %v4451_v18, 4 }
 0x44b   :  { %v4279_v26 = vadd.f32 %v4278_v19, %v4277_v25  ;;  %v4310_v30 = vrot.slane %v4309_v17, 1  ;;  %v4284_v31 = vrot.slane %v4283_v9, 1  ;;  %v4315_v33 = vadd.f32 %v4314_v23, %v4313_v45  ;;  %v8973_v19 = vld [vmem:[#allocation16] sm:$0xff] }
 0x44c   :  { %v4425_v34 = vadd.f32 %v4424_v22, %v4423_v49  ;;  %v4456_v37 = vrot.slane %v4455_v4, 2  ;;  %v4430_v38 = vrot.slane %v4429_v27, 2  ;;  %v4461_v39 = vadd.f32 %v4460_v24, %v4451_v18  ;;  %v8976_v22 = vld [vmem:[#allocation16 + $0x8] sm:$0xff] }
 0x44d   :  { %v4298_v47 = vmul.f32 0.125, %v4279_v26  ;;  %v4311_v40 = vadd.f32 %v4310_v30, %v4309_v17  ;;  %v4285_v41 = vadd.f32 %v4284_v31, %v4283_v9  ;;  %v4316_v42 = vrot.slane %v4315_v33, 1 }
 0x44e   :  { %v4426_v20 = vrot.slane %v4425_v34, 1  ;;  %v4457_v44 = vadd.f32 %v4456_v37, %v4455_v4  ;;  %v4431_v46 = vadd.f32 %v4430_v38, %v4429_v27  ;;  %v4462_v48 = vrot.slane %v4461_v39, 2 }
 0x44f   :  { %v4330_v53 = vmul.f32 0.125, %v4311_v40  ;;  %v4334_v36 = vmul.f32 %v4298_v47, %v4298_v47  ;;  %v4299_v28 = vmul.f32 0.125, %v4285_v41  ;;  %v4317_v13 = vadd.f32 %v4316_v42, %v4315_v33 }
 0x450   :  { %v4427_v54 = vadd.f32 %v4426_v20, %v4425_v34  ;;  %v4458_v50 = vrot.slane %v4457_v44, 1  ;;  %v4432_v52 = vrot.slane %v4431_v46, 1  ;;  %v4463_v12 = vadd.f32 %v4462_v48, %v4461_v39 }
 0x451   :  { %v4338_v51 = vsub.f32 %v4330_v53, %v4334_v36  ;;  %v4331_v56 = vmul.f32 0.125, %v4317_v13  ;;  %v4335_v58 = vmul.f32 %v4299_v28, %v4299_v28  ;;  %v8981_v33 = vsub.s32 3, %v8822_v21 }
 0x452   :  { %v4446_v59 = vmul.f32 0.125, %v4427_v54  ;;  %v4459_v57 = vadd.f32 %v4458_v50, %v4457_v44  ;;  %v4433_v61 = vadd.f32 %v4432_v52, %v4431_v46  ;;  %v4464_v62 = vrot.slane %v4463_v12, 1 }
 0x453   :  { %v4342_v63 = vmax.f32 %v4338_v51, 0.0  ;;  %v4339_v0 = vsub.f32 %v4331_v56, %v4335_v58 }
 0x454   :  { %v4478_v2 = vmul.f32 0.125, %v4459_v57  ;;  %v4482_v3 = vmul.f32 %v4446_v59, %v4446_v59  ;;  %v4447_v43 = vmul.f32 0.125, %v4433_v61  ;;  %v4465_v5 = vadd.f32 %v4464_v62, %v4463_v12 }
 0x455   :  { %v4346_v6 = vadd.f32 1e-05, %v4342_v63  ;;  %v4343_v35 = vmax.f32 %v4339_v0, 0.0 }
 0x456   :  { %v4486_v7 = vsub.f32 %v4478_v2, %v4482_v3  ;;  %v4479_v8 = vmul.f32 0.125, %v4465_v5  ;;  %v4483_v25 = vmul.f32 %v4447_v43, %v4447_v43 }
 0x457   :  { %8388 = vrsqrt.f32 %v4346_v6  ;;  %v4347_v11 = vadd.f32 1e-05, %v4343_v35  ;;  %v8159_v6 = vld [vmem:[#allocation11 + $0xcc] ss:$16 sps:$4 sm:$0xff]   ;;  %v8157_v35 = vld [vmem:[#allocation11 + $0xc8] ss:$16 sps:$4 sm:$0xff]  }
 0x458   :  { %v4490_v14 = vmax.f32 %v4486_v7, 0.0  ;;  %v4487_v45 = vsub.f32 %v4479_v8, %v4483_v25  ;;  %v8165_v8 = vld [vmem:[#allocation11 + $0xac] ss:$16 sps:$4 sm:$0xff]  }
 0x459   :  { %8390 = vrsqrt.f32 %v4347_v11 }
 0x45a   :  { %v4494_v49 = vadd.f32 1e-05, %v4490_v14  ;;  %v4491_v15 = vmax.f32 %v4487_v45, 0.0 }
 0x45c   :  { %8392 = vrsqrt.f32 %v4494_v49  ;;  %v4495_v16 = vadd.f32 1e-05, %v4491_v15 }
 0x45e   :  { %8394 = vrsqrt.f32 %v4495_v16  ;;  %v8163_v16 = vld [vmem:[#allocation11 + $0xa8] ss:$16 sps:$4 sm:$0xff]  }
 0x464   :  { %v8389_v18 = vpop.eup %8388 }
 0x465   :  { %v4354_v17 = vmul.f32 %v8973_v19, %v8389_v18 }
 0x466   :  { %v8391_v9 = vpop.eup %8390 }
 0x467   :  { %v4358_v23 = vmul.f32 %v4354_v17, %v4298_v47  ;;  %v4355_v4 = vmul.f32 %v8976_v22, %v8391_v9  ;;  %v8986_v47 = vsub.s32 4, %v8822_v21  ;;  %v4381_v46 = vrot.slane %v4354_v17, %v8981_v33 }
 0x469   :  { %v8393_v27 = vpop.eup %8392  ;;  %v4366_v24 = vrot.slane %v4358_v23, 7  ;;  %v4359_v26 = vmul.f32 %v4355_v4, %v4299_v28  ;;  %v4385_v20 = vrot.slane %v4355_v4, %v8981_v33  ;;  %v4394_v51 = vmul.f32 %v4381_v46, %v8949_v55  ;;  %v8171_v4 = vld [vmem:[#allocation11 + $0x8c] ss:$16 sps:$4 sm:$0xff]  }
 0x46a   :  { %v4502_v30 = vmul.f32 %v8973_v19, %v8393_v27 }
 0x46b   :  { %v8395_v31 = vpop.eup %8394  ;;  %v4367_v34 = vrot.slane %v4359_v26, 7  ;;  %v4374_v40 = vsub.f32 %v8973_v19, %v4366_v24  ;;  %v4395_v50 = vmul.f32 %v4385_v20, %v8954_v60 }
 0x46c   :  { %v4506_v37 = vmul.f32 %v4502_v30, %v4446_v59  ;;  %v4503_v38 = vmul.f32 %v8976_v22, %v8395_v31  ;;  %v4529_v42 = vrot.slane %v4502_v30, %v8981_v33 }
 0x46d   :  { %v4375_v39 = vsub.f32 %v8976_v22, %v4367_v34  ;;  %v4401_v13 = vrot.slane %v4374_v40, %v8986_v47 }
 0x46e   :  { %v4514_v41 = vrot.slane %v4506_v37, 7  ;;  %v4507_v44 = vmul.f32 %v4503_v38, %v4447_v43  ;;  %v4533_v36 = vrot.slane %v4503_v38, %v8981_v33  ;;  %v4542_v54 = vmul.f32 %v4529_v42, %v8960_v1  ;;  %v4222_v1 = vpop.f32.mrf.mxu0  ;;  %v8151_v43 = vld [vmem:[#allocation11 + $0xe8] ss:$16 sps:$4 sm:$0xff]  }
 0x46f   :  { %v4405_v48 = vrot.slane %v4375_v39, %v8986_v47  ;;  %v4414_v61 = vadd.f32 %v4401_v13, %v4394_v51 }
 0x470   :  { %v4515_v53 = vrot.slane %v4507_v44, 7  ;;  %v4522_v28 = vsub.f32 %v8973_v19, %v4514_v41  ;;  %v4543_v58 = vmul.f32 %v4533_v36, %v8966_v10  ;;  %v4224_v55 = vpop.f32.mrf.mxu0  ;;  %v8169_v41 = vld [vmem:[#allocation11 + $0x88] ss:$16 sps:$4 sm:$0xff]  }
 0x471   :  { %v4415_v56 = vadd.f32 %v4405_v48, %v4395_v50  ;;  %v4418_v3 = vmax.f32 %v4414_v61, 0.0  ;;  %v8177_v48 = vld [vmem:[#allocation11 + $0x6c] ss:$16 sps:$4 sm:$0xff]  }
 0x472   :  { %v4523_v52 = vsub.f32 %v8976_v22, %v4515_v53  ;;  %v4549_v12 = vrot.slane %v4522_v28, %v8986_v47  ;;  %v4226_v11 = vpop.f32.mrf.mxu0 }
 0x473   :  { %v4419_v0 = vmax.f32 %v4415_v56, 0.0 }
 0x474   :  { %v4553_v59 = vrot.slane %v4523_v52, %v8986_v47  ;;  %v4562_v57 = vadd.f32 %v4549_v12, %v4542_v54  ;;  %v4228_v26 = vpop.f32.mrf.mxu0 }
 0x476   :  { %v4563_v62 = vadd.f32 %v4553_v59, %v4543_v58  ;;  %v4566_v63 = vmax.f32 %v4562_v57, 0.0  ;;  %v8175_v57 = vld [vmem:[#allocation11 + $0x68] ss:$16 sps:$4 sm:$0xff]  }
 0x478   :  { %v4567_v2 = vmax.f32 %v4563_v62, 0.0  ;;  %v9003_v5 = vpack.c.bf16 %v4566_v63, %v4418_v3 }
 0x47a   :  { %v4571_v60 = vpack.c.bf16 %v4567_v2, %v4419_v0  ;;  %v8183_v2 = vld [vmem:[#allocation11 + $0x4c] ss:$16 sps:$4 sm:$0xff]  }
 0x47c   :  { %5374 = vmatprep.mubr.bf16.mxu0 %v4571_v60 }
 0x47d   :  { %5375 = vmatmul.mubr.bf16.vlgmr.msra.gmra.mxu0 %v9003_v5 }
 0x47e   :  { %5429 = vmatpush1.bf16.msra.mxu0 %v8151_v43  ;;  %v4265_v10 = vpop.f32.mrf.mxu1  ;;  %5460 = vmatprep.mubr.bf16.mxu0 %v4571_v60 }
 0x47f   :  { %v9006_v7 = vadd.f32 %v4265_v10, %v4222_v1  ;;  %5430 = vmatprep.subr.bf16.mxu0 %v8159_v6 }
 0x480   :  { %v4267_v25 = vpop.f32.mrf.mxu1 }
 0x481   :  { %v4286_v14 = vrot.slane %v9006_v7, 4  ;;  %v4304_v45 = vmul.f32 %v9006_v7, %v9006_v7  ;;  %v9011_v49 = vadd.f32 %v4267_v25, %v4224_v55 }
 0x482   :  { %5431 = vmatpush1.bf16.msra.mxu0 %v8157_v35  ;;  %v4269_v15 = vpop.f32.mrf.mxu1 }
 0x483   :  { %v4287_v18 = vadd.f32 %v4286_v14, %v9006_v7  ;;  %v4318_v17 = vrot.slane %v4304_v45, 4  ;;  %v4292_v9 = vrot.slane %v9011_v49, 4  ;;  %v4305_v23 = vmul.f32 %v9011_v49, %v9011_v49  ;;  %5432 = vmatprep.subr.bf16.mxu0 %v8165_v8 }
 0x484   :  { %v9017_v27 = vadd.f32 %v4269_v15, %v4226_v11  ;;  %v4271_v24 = vpop.f32.mrf.mxu1 }
 0x485   :  { %v4288_v30 = vrot.slane %v4287_v18, 2  ;;  %v4319_v31 = vadd.f32 %v4318_v17, %v4304_v45  ;;  %v4293_v34 = vadd.f32 %v4292_v9, %v9011_v49  ;;  %v4324_v37 = vrot.slane %v4305_v23, 4  ;;  %v8181_v45 = vld [vmem:[#allocation11 + $0x48] ss:$16 sps:$4 sm:$0xff]   ;;  %v8189_v9 = vld [vmem:[#allocation11 + $0x2c] ss:$16 sps:$4 sm:$0xff]  }
 0x486   :  { %v4434_v38 = vrot.slane %v9017_v27, 4  ;;  %v4452_v39 = vmul.f32 %v9017_v27, %v9017_v27  ;;  %v9023_v40 = vadd.f32 %v4271_v24, %v4228_v26  ;;  %5433 = vmatpush1.bf16.msra.mxu0 %v8163_v16 }
 0x487   :  { %v4289_v42 = vadd.f32 %v4288_v30, %v4287_v18  ;;  %v4320_v20 = vrot.slane %v4319_v31, 2  ;;  %v4294_v44 = vrot.slane %v4293_v34, 2  ;;  %v4325_v46 = vadd.f32 %v4324_v37, %v4305_v23  ;;  %5434 = vmatprep.subr.bf16.mxu0 %v8171_v4 }
 0x488   :  { %v4435_v53 = vadd.f32 %v4434_v38, %v9017_v27  ;;  %v4466_v36 = vrot.slane %v4452_v39, 4  ;;  %v4440_v28 = vrot.slane %v9023_v40, 4  ;;  %v4453_v13 = vmul.f32 %v9023_v40, %v9023_v40 }
 0x489   :  { %v4290_v54 = vrot.slane %v4289_v42, 1  ;;  %v4321_v50 = vadd.f32 %v4320_v20, %v4319_v31  ;;  %v4295_v52 = vadd.f32 %v4294_v44, %v4293_v34  ;;  %v4326_v12 = vrot.slane %v4325_v46, 2 }
 0x48a   :  { %v4436_v51 = vrot.slane %v4435_v53, 2  ;;  %v4467_v56 = vadd.f32 %v4466_v36, %v4452_v39  ;;  %v4441_v58 = vadd.f32 %v4440_v28, %v9023_v40  ;;  %v4472_v59 = vrot.slane %v4453_v13, 4  ;;  %5435 = vmatpush1.bf16.msra.mxu0 %v8169_v41 }
 0x48b   :  { %v4291_v61 = vadd.f32 %v4290_v54, %v4289_v42  ;;  %v4322_v62 = vrot.slane %v4321_v50, 1  ;;  %v4296_v63 = vrot.slane %v4295_v52, 1  ;;  %v4327_v0 = vadd.f32 %v4326_v12, %v4325_v46  ;;  %5436 = vmatprep.subr.bf16.mxu0 %v8177_v48  ;;  %v8187_v42 = vld [vmem:[#allocation11 + $0x28] ss:$16 sps:$4 sm:$0xff]   ;;  %v8195_v46 = vld [vmem:[#allocation11 + $0xc] ss:$16 sps:$4 sm:$0xff]  }
 0x48c   :  { %v4437_v1 = vadd.f32 %v4436_v51, %v4435_v53  ;;  %v4468_v3 = vrot.slane %v4467_v56, 2  ;;  %v4442_v60 = vrot.slane %v4441_v58, 2  ;;  %v4473_v43 = vadd.f32 %v4472_v59, %v4453_v13  ;;  %v8193_v51 = vld [vmem:[#allocation11 + $0x8] ss:$16 sps:$4 sm:$0xff]  }
 0x48d   :  { %v9030_v6 = vmul.f32 0.125, %v4291_v61  ;;  %v4323_v55 = vadd.f32 %v4322_v62, %v4321_v50  ;;  %v4297_v10 = vadd.f32 %v4296_v63, %v4295_v52  ;;  %v4328_v35 = vrot.slane %v4327_v0, 1  ;;  %v8199_v63 = vld [vmem:[#allocation11 + $0x1e8] ss:$16 sps:$4 sm:$0xff]  }
 0x48e   :  { %v4438_v8 = vrot.slane %v4437_v1, 1  ;;  %v4469_v25 = vadd.f32 %v4468_v3, %v4467_v56  ;;  %v4443_v11 = vadd.f32 %v4442_v60, %v4441_v58  ;;  %v4474_v14 = vrot.slane %v4473_v43, 2  ;;  %5437 = vmatpush1.bf16.msra.mxu0 %v8175_v57  ;;  %v8201_v58 = vld [vmem:[#allocation11 + $0x1ec] ss:$16 sps:$4 sm:$0xff]   ;;  %v8211_v60 = vld [vmem:[#allocation11 + $0x1a8] ss:$16 sps:$4 sm:$0xff]  }
 0x48f   :  { %v4332_v15 = vmul.f32 0.125, %v4323_v55  ;;  %v4336_v16 = vmul.f32 %v9030_v6, %v9030_v6  ;;  %v9034_v18 = vmul.f32 0.125, %v4297_v10  ;;  %v4329_v17 = vadd.f32 %v4328_v35, %v4327_v0  ;;  %5438 = vmatprep.subr.bf16.mxu0 %v8183_v2  ;;  %v8207_v0 = vld [vmem:[#allocation11 + $0x1cc] ss:$16 sps:$4 sm:$0xff]   ;;  %v9046_v10 = vld [vmem:[#allocation16 + $0x10] sm:$0xff] }
 0x490   :  { %v4439_v23 = vadd.f32 %v4438_v8, %v4437_v1  ;;  %v4470_v4 = vrot.slane %v4469_v25, 1  ;;  %v4444_v24 = vrot.slane %v4443_v11, 1  ;;  %v4475_v26 = vadd.f32 %v4474_v14, %v4473_v43  ;;  %v8205_v1 = vld [vmem:[#allocation11 + $0x1c8] ss:$16 sps:$4 sm:$0xff]   ;;  %v8213_v3 = vld [vmem:[#allocation11 + $0x1ac] ss:$16 sps:$4 sm:$0xff]  }
 0x491   :  { %v4340_v30 = vsub.f32 %v4332_v15, %v4336_v16  ;;  %v4333_v31 = vmul.f32 0.125, %v4329_v17  ;;  %v4337_v34 = vmul.f32 %v9034_v18, %v9034_v18  ;;  %v8219_v43 = vld [vmem:[#allocation11 + $0x18c] ss:$16 sps:$4 sm:$0xff]  }
 0x492   :  { %v9038_v37 = vmul.f32 0.125, %v4439_v23  ;;  %v4471_v38 = vadd.f32 %v4470_v4, %v4469_v25  ;;  %v4445_v39 = vadd.f32 %v4444_v24, %v4443_v11  ;;  %v4476_v41 = vrot.slane %v4475_v26, 1  ;;  %5439 = vmatpush1.bf16.msra.mxu0 %v8181_v45  ;;  %v8217_v25 = vld [vmem:[#allocation11 + $0x188] ss:$16 sps:$4 sm:$0xff]   ;;  %v8225_v14 = vld [vmem:[#allocation11 + $0x16c] ss:$16 sps:$4 sm:$0xff]  }
 0x493   :  { %v4344_v20 = vmax.f32 %v4340_v30, 0.0  ;;  %v4341_v44 = vsub.f32 %v4333_v31, %v4337_v34  ;;  %5440 = vmatprep.subr.bf16.mxu0 %v8189_v9  ;;  %v9050_v45 = vld [vmem:[#allocation16 + $0x18] sm:$0xff] }
 0x494   :  { %v4480_v48 = vmul.f32 0.125, %v4471_v38  ;;  %v4484_v53 = vmul.f32 %v9038_v37, %v9038_v37  ;;  %v9042_v36 = vmul.f32 0.125, %v4445_v39  ;;  %v4477_v28 = vadd.f32 %v4476_v41, %v4475_v26  ;;  %v8223_v4 = vld [vmem:[#allocation11 + $0x168] ss:$16 sps:$4 sm:$0xff]   ;;  %v8231_v26 = vld [vmem:[#allocation11 + $0x14c] ss:$16 sps:$4 sm:$0xff]  }
 0x495   :  { %v4348_v13 = vadd.f32 1e-05, %v4344_v20  ;;  %v4345_v54 = vmax.f32 %v4341_v44, 0.0 }
 0x496   :  { %v4488_v50 = vsub.f32 %v4480_v48, %v4484_v53  ;;  %v4481_v52 = vmul.f32 0.125, %v4477_v28  ;;  %v4485_v12 = vmul.f32 %v9042_v36, %v9042_v36  ;;  %5441 = vmatpush1.bf16.msra.mxu0 %v8187_v42 }
 0x497   :  { %8396 = vrsqrt.f32 %v4348_v13  ;;  %v4349_v56 = vadd.f32 1e-05, %v4345_v54  ;;  %5442 = vmatprep.subr.bf16.mxu0 %v8195_v46  ;;  %v8237_v46 = vld [vmem:[#allocation11 + $0x12c] ss:$16 sps:$4 sm:$0xff]  }
 0x498   :  { %v4492_v59 = vmax.f32 %v4488_v50, 0.0  ;;  %v4489_v57 = vsub.f32 %v4481_v52, %v4485_v12  ;;  %v8235_v50 = vld [vmem:[#allocation11 + $0x128] ss:$16 sps:$4 sm:$0xff]  }
 0x499   :  { %8398 = vrsqrt.f32 %v4349_v56  ;;  %v8243_v56 = vld [vmem:[#allocation11 + $0x10c] ss:$16 sps:$4 sm:$0xff]  }
 0x49a   :  { %v4496_v61 = vadd.f32 1e-05, %v4492_v59  ;;  %v4493_v62 = vmax.f32 %v4489_v57, 0.0  ;;  %5443 = vmatpush1.bf16.msra.mxu0 %v8193_v51 }
 0x49b   :  { %5444 = vmatprep.subr.bf16.mxu0 %v8201_v58 }
 0x49c   :  { %8400 = vrsqrt.f32 %v4496_v61  ;;  %v4497_v2 = vadd.f32 1e-05, %v4493_v62 }
 0x49e   :  { %8402 = vrsqrt.f32 %v4497_v2  ;;  %5445 = vmatpush2.bf16.msra.mxu0 %v8199_v63 }
 0x49f   :  { %5446 = vmatprep.subr.bf16.mxu0 %v8207_v0 }
 0x4a2   :  { %5447 = vmatpush2.bf16.msra.mxu0 %v8205_v1 }
 0x4a3   :  { %5448 = vmatprep.subr.bf16.mxu0 %v8213_v3 }
 0x4a4   :  { %v8397_v55 = vpop.eup %8396 }
 0x4a5   :  { %v4356_v35 = vmul.f32 %v9046_v10, %v8397_v55  ;;  %v8255_v55 = vld [vmem:[#allocation11 + $0x28c] ss:$16 sps:$4 sm:$0xff]  }
 0x4a6   :  { %v8399_v8 = vpop.eup %8398  ;;  %5449 = vmatpush2.bf16.msra.mxu0 %v8211_v60  ;;  %v8249_v60 = vld [vmem:[#allocation11 + $0x2cc] ss:$16 sps:$4 sm:$0xff]  }
 0x4a7   :  { %v4360_v11 = vmul.f32 %v4356_v35, %v9030_v6  ;;  %5450 = vmatprep.subr.bf16.mxu0 %v8219_v43  ;;  %v4357_v15 = vmul.f32 %v9050_v45, %v8399_v8  ;;  %v4389_v44 = vrot.slane %v4356_v35, %v8981_v33  ;;  %v8250_v43 = vld [vmem:[#allocation11 + $0x2a8] ss:$16 sps:$4 sm:$0xff]   ;;  %v8258_v8 = vld [vmem:[#allocation11 + $0x26c] ss:$16 sps:$4 sm:$0xff]  }
 0x4a8   :  { %v8253_v35 = vld [vmem:[#allocation11 + $0x288] ss:$16 sps:$4 sm:$0xff]  }
 0x4a9   :  { %v8401_v16 = vpop.eup %8400  ;;  %v4368_v17 = vrot.slane %v4360_v11, 7  ;;  %v4361_v9 = vmul.f32 %v4357_v15, %v9034_v18  ;;  %v8229_v18 = vld [vmem:[#allocation11 + $0x148] ss:$16 sps:$4 sm:$0xff]   ;;  %v4393_v42 = vrot.slane %v4357_v15, %v8981_v33  ;;  %v4396_v51 = vmul.f32 %v4389_v44, %v9006_v7  ;;  %v8261_v11 = vld [vmem:[#allocation11 + $0x24c] ss:$16 sps:$4 sm:$0xff]  }
 0x4aa   :  { %v4504_v23 = vmul.f32 %v9046_v10, %v8401_v16  ;;  %5451 = vmatpush2.bf16.msra.mxu0 %v8217_v25  ;;  %v8244_v7 = vld [vmem:[#allocation11 + $0x2e8] ss:$16 sps:$4 sm:$0xff]   ;;  %v8267_v16 = vld [vmem:[#allocation11 + $0x20c] ss:$16 sps:$4 sm:$0xff]  }
 0x4ab   :  { %v8403_v24 = vpop.eup %8402  ;;  %5452 = vmatprep.subr.bf16.mxu0 %v8225_v14  ;;  %v4369_v30 = vrot.slane %v4361_v9, 7  ;;  %v4376_v38 = vsub.f32 %v9046_v10, %v4368_v17  ;;  %v4397_v52 = vmul.f32 %v4393_v42, %v9011_v49  ;;  %v8256_v25 = vld [vmem:[#allocation11 + $0x268] ss:$16 sps:$4 sm:$0xff]   ;;  %v8270_v9 = vld [vmem:[#allocation11 + $0x3ec] ss:$16 sps:$4 sm:$0xff]  }
 0x4ac   :  { %v4508_v6 = vmul.f32 %v4504_v23, %v9038_v37  ;;  %v4505_v31 = vmul.f32 %v9050_v45, %v8403_v24  ;;  %v4537_v41 = vrot.slane %v4504_v23, %v8981_v33  ;;  %v8259_v14 = vld [vmem:[#allocation11 + $0x248] ss:$16 sps:$4 sm:$0xff]  }
 0x4ad   :  { %v4377_v34 = vsub.f32 %v9050_v45, %v4369_v30  ;;  %v4409_v13 = vrot.slane %v4376_v38, %v8986_v47  ;;  %v8262_v15 = vld [vmem:[#allocation11 + $0x228] ss:$16 sps:$4 sm:$0xff]  }
 0x4ae   :  { %v4516_v39 = vrot.slane %v4508_v6, 7  ;;  %5453 = vmatpush2.bf16.msra.mxu0 %v8223_v4  ;;  %v4509_v20 = vmul.f32 %v4505_v31, %v9042_v36  ;;  %v4541_v53 = vrot.slane %v4505_v31, %v8981_v33  ;;  %v4544_v54 = vmul.f32 %v4537_v41, %v9017_v27  ;;  %v8241_v27 = vld [vmem:[#allocation11 + $0x108] ss:$16 sps:$4 sm:$0xff]   ;;  %v8273_v4 = vld [vmem:[#allocation11 + $0x3cc] ss:$16 sps:$4 sm:$0xff]  }
 0x4af   :  { %5454 = vmatprep.subr.bf16.mxu0 %v8231_v26  ;;  %v4413_v37 = vrot.slane %v4377_v34, %v8986_v47  ;;  %v4416_v61 = vadd.f32 %v4409_v13, %v4396_v51  ;;  %v8265_v17 = vld [vmem:[#allocation11 + $0x208] ss:$16 sps:$4 sm:$0xff]   ;;  %v8276_v26 = vld [vmem:[#allocation11 + $0x3ac] ss:$16 sps:$4 sm:$0xff]   ;;  %v8303_v51 = vld [vmem:[#allocation13 + $0x10] sm:$0xff]  }
 0x4b0   :  { %v4517_v48 = vrot.slane %v4509_v20, 7  ;;  %v4524_v28 = vsub.f32 %v9046_v10, %v4516_v39  ;;  %v4545_v33 = vmul.f32 %v4541_v53, %v9023_v40  ;;  %v8252_v40 = vld [vmem:[#allocation11 + $0x2ac] ss:$16 sps:$4 sm:$0xff]   ;;  %v8268_v23 = vld [vmem:[#allocation11 + $0x3e8] ss:$16 sps:$4 sm:$0xff]   ;;  %v8295_v53 = vld [vmem:[#allocation13 + $0x30] sm:$0xff]  }
 0x4b1   :  { %v4417_v58 = vadd.f32 %v4413_v37, %v4397_v52  ;;  %v4420_v2 = vmax.f32 %v4416_v61, 0.0  ;;  %v8271_v24 = vld [vmem:[#allocation11 + $0x3c8] ss:$16 sps:$4 sm:$0xff]   ;;  %v8279_v6 = vld [vmem:[#allocation11 + $0x38c] ss:$16 sps:$4 sm:$0xff]  }
 0x4b2   :  { %5455 = vmatpush2.bf16.msra.mxu0 %v8229_v18  ;;  %v4525_v36 = vsub.f32 %v9050_v45, %v4517_v48  ;;  %v4557_v12 = vrot.slane %v4524_v28, %v8986_v47  ;;  %v8274_v30 = vld [vmem:[#allocation11 + $0x3a8] ss:$16 sps:$4 sm:$0xff]   ;;  %v8282_v34 = vld [vmem:[#allocation11 + $0x36c] ss:$16 sps:$4 sm:$0xff]   ;;  %v8294_v48 = vld [vmem:[#allocation13 + $0x70] sm:$0xff]  }
 0x4b3   :  { %5456 = vmatprep.subr.bf16.mxu0 %v8237_v46  ;;  %v4421_v63 = vmax.f32 %v4417_v58, 0.0  ;;  %v8277_v31 = vld [vmem:[#allocation11 + $0x388] ss:$16 sps:$4 sm:$0xff]   ;;  %v8285_v39 = vld [vmem:[#allocation11 + $0x34c] ss:$16 sps:$4 sm:$0xff]  }
 0x4b4   :  { %v4561_v59 = vrot.slane %v4525_v36, %v8986_v47  ;;  %v4564_v57 = vadd.f32 %v4557_v12, %v4544_v54  ;;  %v8247_v47 = vld [vmem:[#allocation11 + $0x2c8] ss:$16 sps:$4 sm:$0xff]   ;;  %v8288_v18 = vld [vmem:[#allocation11 + $0x32c] ss:$16 sps:$4 sm:$0xff]   ;;  %v8298_v54 = vld [vmem:[#allocation13 + $0x60] sm:$0xff]  }
 0x4b5   :  { %v8280_v38 = vld [vmem:[#allocation11 + $0x368] ss:$16 sps:$4 sm:$0xff]   ;;  %v8291_v20 = vld [vmem:[#allocation11 + $0x30c] ss:$16 sps:$4 sm:$0xff]   ;;  %v8302_v12 = vld [vmem:[#allocation13 + $0x50] sm:$0xff]  }
 0x4b6   :  { %5457 = vmatpush2.bf16.msra.mxu0 %v8235_v50  ;;  %v4565_v62 = vadd.f32 %v4561_v59, %v4545_v33  ;;  %v4568_v49 = vmax.f32 %v4564_v57, 0.0  ;;  %v8283_v41 = vld [vmem:[#allocation11 + $0x348] ss:$16 sps:$4 sm:$0xff]   ;;  %v8299_v50 = vld [vmem:[#allocation13 + $0x20] sm:$0xff]  }
 0x4b7   :  { %5458 = vmatprep.subr.bf16.mxu0 %v8243_v56  ;;  %v8286_v42 = vld [vmem:[#allocation11 + $0x328] ss:$16 sps:$4 sm:$0xff]   ;;  %v8306_v33 = vld [vmem:[#allocation13 + $0x40] sm:$0xff]  }
 0x4b8   :  { %v4569_v0 = vmax.f32 %v4565_v62, 0.0  ;;  %v9074_v3 = vpack.c.bf16 %v4568_v49, %v4420_v2  ;;  %v8289_v44 = vld [vmem:[#allocation11 + $0x308] ss:$16 sps:$4 sm:$0xff]   ;;  %v8307_v59 = vld [vmem:[#allocation13] sm:$0xff]   ;;  %v8311_v62 = vld [vmem:[#allocation13 + $0xb0] sm:$0xff]  }
 0x4b9   :  { %v8292_v46 = vld [vmem:[#allocation13 + $0x78] sm:$0xff]   ;;  %v8296_v28 = vld [vmem:[#allocation13 + $0x68] sm:$0xff]   ;;  %v8315_v2 = vld [vmem:[#allocation13 + $0xa0] sm:$0xff]  }
 0x4ba   :  { %5459 = vmatpush2.bf16.msra.mxu0 %v8241_v27  ;;  %v4573_v1 = vpack.c.bf16 %v4569_v0, %v4421_v63  ;;  %v8293_v37 = vld [vmem:[#allocation13 + $0x38] sm:$0xff]   ;;  %v8297_v13 = vld [vmem:[#allocation13 + $0x28] sm:$0xff]   ;;  %v8310_v27 = vld [vmem:[#allocation13 + $0xf0] sm:$0xff]  }
 0x4bb   :  { %7270 = vmatprep.subr.bf16.mxu0 %v8292_v46  ;;  %v8300_v52 = vld [vmem:[#allocation13 + $0x58] sm:$0xff]   ;;  %v8304_v56 = vld [vmem:[#allocation13 + $0x48] sm:$0xff]   ;;  %v8314_v0 = vld [vmem:[#allocation13 + $0xe0] sm:$0xff]  }
 0x4bc   :  { %5417 = vmatprep.mubr.bf16.mxu1 %v4573_v1  ;;  %v8301_v36 = vld [vmem:[#allocation13 + $0x18] sm:$0xff]   ;;  %v8305_v58 = vld [vmem:[#allocation13 + $0x8] sm:$0xff]  }
 0x4bd   :  { %5418 = vmatmul.mubr.bf16.vlgmr.msra.gmra.mxu1 %v9074_v3  ;;  %5461 = vmatmul.mubr.bf16.vlgmr.msra.gmra.mxu0 %v9003_v5  ;;  %v8264_v5 = vld [vmem:[#allocation11 + $0x22c] ss:$16 sps:$4 sm:$0xff]  }
 0x4be   :  { %5472 = vmatpush1.bf16.msra.mxu1 %v8244_v7  ;;  %5503 = vmatprep.mubr.bf16.mxu1 %v4573_v1  ;;  %v8308_v57 = vld [vmem:[#allocation13 + $0xf8] sm:$0xff]   ;;  %v8312_v49 = vld [vmem:[#allocation13 + $0xe8] sm:$0xff]  }
 0x4bf   :  { %5473 = vmatprep.subr.bf16.mxu1 %v8249_v60  ;;  %7271 = vmatpush3.bf16.msra.mxu0 %v8293_v37  ;;  %v8309_v61 = vld [vmem:[#allocation13 + $0xb8] sm:$0xff]   ;;  %v8313_v63 = vld [vmem:[#allocation13 + $0xa8] sm:$0xff]   ;;  %v8319_v60 = vld [vmem:[#allocation13 + $0x90] sm:$0xff]  }
 0x4c0   :  { %7272 = vmatprep.subr.bf16.mxu0 %v8294_v48  ;;  %v8316_v1 = vld [vmem:[#allocation13 + $0xd8] sm:$0xff]  }
 0x4c1   :  { %v8317_v7 = vld [vmem:[#allocation13 + $0x98] sm:$0xff]  }
 0x4c2   :  { %5474 = vmatpush1.bf16.msra.mxu1 %v8247_v47  ;;  %v8320_v47 = vld [vmem:[#allocation13 + $0xc8] sm:$0xff]  }
 0x4c3   :  { %5475 = vmatprep.subr.bf16.mxu1 %v8252_v40  ;;  %7273 = vmatpush3.bf16.msra.mxu0 %v8295_v53  ;;  %v8321_v40 = vld [vmem:[#allocation13 + $0x88] sm:$0xff]  }
 0x4c4   :  { %7274 = vmatprep.subr.bf16.mxu0 %v8296_v28 }
 0x4c6   :  { %5476 = vmatpush1.bf16.msra.mxu1 %v8250_v43  ;;  %v8322_v43 = vld [vmem:[#allocation13 + $0xc0] sm:$0xff]  }
 0x4c7   :  { %5477 = vmatprep.subr.bf16.mxu1 %v8255_v55  ;;  %7275 = vmatpush3.bf16.msra.mxu0 %v8297_v13  ;;  %v8323_v55 = vld [vmem:[#allocation13 + $0x80] sm:$0xff]  }
 0x4c8   :  { %7276 = vmatprep.subr.bf16.mxu0 %v8298_v54 }
 0x4ca   :  { %5478 = vmatpush1.bf16.msra.mxu1 %v8253_v35 }
 0x4cb   :  { %5479 = vmatprep.subr.bf16.mxu1 %v8258_v8  ;;  %7277 = vmatpush3.bf16.msra.mxu0 %v8299_v50 }
 0x4cc   :  { %7278 = vmatprep.subr.bf16.mxu0 %v8300_v52 }
 0x4ce   :  { %5480 = vmatpush1.bf16.msra.mxu1 %v8256_v25 }
 0x4cf   :  { %5481 = vmatprep.subr.bf16.mxu1 %v8261_v11  ;;  %7279 = vmatpush3.bf16.msra.mxu0 %v8301_v36 }
 0x4d0   :  { %7280 = vmatprep.subr.bf16.mxu0 %v8302_v12 }
 0x4d2   :  { %5482 = vmatpush1.bf16.msra.mxu1 %v8259_v14 }
 0x4d3   :  { %5483 = vmatprep.subr.bf16.mxu1 %v8264_v5  ;;  %7281 = vmatpush3.bf16.msra.mxu0 %v8303_v51 }
 0x4d4   :  { %7282 = vmatprep.subr.bf16.mxu0 %v8304_v56 }
 0x4d6   :  { %5484 = vmatpush1.bf16.msra.mxu1 %v8262_v15 }
 0x4d7   :  { %5485 = vmatprep.subr.bf16.mxu1 %v8267_v16  ;;  %7283 = vmatpush3.bf16.msra.mxu0 %v8305_v58 }
 0x4d8   :  { %7284 = vmatprep.subr.bf16.mxu0 %v8306_v33 }
 0x4da   :  { %5486 = vmatpush1.bf16.msra.mxu1 %v8265_v17 }
 0x4db   :  { %5487 = vmatprep.subr.bf16.mxu1 %v8270_v9  ;;  %7285 = vmatpush3.bf16.msra.mxu0 %v8307_v59 }
 0x4de   :  { %5488 = vmatpush2.bf16.msra.mxu1 %v8268_v23 }
 0x4df   :  { %5489 = vmatprep.subr.bf16.mxu1 %v8273_v4 }
 0x4e2   :  { %5490 = vmatpush2.bf16.msra.mxu1 %v8271_v24 }
 0x4e3   :  { %5491 = vmatprep.subr.bf16.mxu1 %v8276_v26 }
 0x4e6   :  { %5492 = vmatpush2.bf16.msra.mxu1 %v8274_v30 }
 0x4e7   :  { %5493 = vmatprep.subr.bf16.mxu1 %v8279_v6 }
 0x4ea   :  { %5494 = vmatpush2.bf16.msra.mxu1 %v8277_v31 }
 0x4eb   :  { %5495 = vmatprep.subr.bf16.mxu1 %v8282_v34 }
 0x4ee   :  { %5496 = vmatpush2.bf16.msra.mxu1 %v8280_v38 }
 0x4ef   :  { %5497 = vmatprep.subr.bf16.mxu1 %v8285_v39 }
 0x4f2   :  { %5498 = vmatpush2.bf16.msra.mxu1 %v8283_v41 }
 0x4f3   :  { %5499 = vmatprep.subr.bf16.mxu1 %v8288_v18 }
 0x4f6   :  { %5500 = vmatpush2.bf16.msra.mxu1 %v8286_v42 }
 0x4f7   :  { %5501 = vmatprep.subr.bf16.mxu1 %v8291_v20 }
 0x4fa   :  { %5502 = vmatpush2.bf16.msra.mxu1 %v8289_v44 }
 0x4fb   :  { %7292 = vmatprep.subr.bf16.mxu1 %v8308_v57 }
 0x4fd   :  { %5504 = vmatmul.mubr.bf16.vlgmr.msra.gmra.mxu1 %v9074_v3  ;;  %v8318_v3 = vld [vmem:[#allocation13 + $0xd0] sm:$0xff]  }
 0x4fe   :  { %7293 = vmatpush3.bf16.msra.mxu1 %v8309_v61 }
 0x4ff   :  { %7294 = vmatprep.subr.bf16.mxu1 %v8310_v27 }
 0x502   :  { %7295 = vmatpush3.bf16.msra.mxu1 %v8311_v62 }
 0x503   :  { %7296 = vmatprep.subr.bf16.mxu1 %v8312_v49 }
 0x506   :  { %7297 = vmatpush3.bf16.msra.mxu1 %v8313_v63 }
 0x507   :  { %7298 = vmatprep.subr.bf16.mxu1 %v8314_v0 }
 0x50a   :  { %7299 = vmatpush3.bf16.msra.mxu1 %v8315_v2 }
 0x50b   :  { %7300 = vmatprep.subr.bf16.mxu1 %v8316_v1 }
 0x50e   :  { %7301 = vmatpush3.bf16.msra.mxu1 %v8317_v7 }
 0x50f   :  { %7302 = vmatprep.subr.bf16.mxu1 %v8318_v3 }
 0x512   :  { %7303 = vmatpush3.bf16.msra.mxu1 %v8319_v60 }
 0x513   :  { %7304 = vmatprep.subr.bf16.mxu1 %v8320_v47 }
 0x516   :  { %7305 = vmatpush3.bf16.msra.mxu1 %v8321_v40 }
 0x517   :  { %7306 = vmatprep.subr.bf16.mxu1 %v8322_v43 }
 0x51a   :  { %7307 = vmatpush3.bf16.msra.mxu1 %v8323_v55 }
 0x53d   :  { %v5376_v35 = vpop.f32.mrf.mxu0 }
 0x53f   :  { %v5378_v8 = vpop.f32.mrf.mxu0 }
 0x541   :  { %v5380_v5 = vpop.f32.mrf.mxu0 }
 0x543   :  { %v5382_v31 = vpop.f32.mrf.mxu0 }
 0x57d   :  { %v5419_v25 = vpop.f32.mrf.mxu1 }
 0x57e   :  { %v9079_v11 = vadd.f32 %v5419_v25, %v5376_v35 }
 0x57f   :  { %v5421_v14 = vpop.f32.mrf.mxu1 }
 0x580   :  { %v5514_v15 = vrot.slane %v9079_v11, 4  ;;  %v5542_v16 = vmul.f32 %v9079_v11, %v9079_v11  ;;  %v9084_v17 = vadd.f32 %v5421_v14, %v5378_v8 }
 0x581   :  { %v5423_v9 = vpop.f32.mrf.mxu1 }
 0x582   :  { %v5515_v23 = vadd.f32 %v5514_v15, %v9079_v11  ;;  %v5546_v4 = vrot.slane %v5542_v16, 4  ;;  %v5520_v24 = vrot.slane %v9084_v17, 4  ;;  %v5543_v26 = vmul.f32 %v9084_v17, %v9084_v17 }
 0x583   :  { %v9090_v30 = vadd.f32 %v5423_v9, %v5380_v5  ;;  %v5425_v6 = vpop.f32.mrf.mxu1 }
 0x584   :  { %v5516_v34 = vrot.slane %v5515_v23, 2  ;;  %v5547_v38 = vadd.f32 %v5546_v4, %v5542_v16  ;;  %v5521_v39 = vadd.f32 %v5520_v24, %v9084_v17  ;;  %v5552_v41 = vrot.slane %v5543_v26, 4 }
 0x585   :  { %v5658_v18 = vrot.slane %v9090_v30, 4  ;;  %v5686_v42 = vmul.f32 %v9090_v30, %v9090_v30  ;;  %v9096_v20 = vadd.f32 %v5425_v6, %v5382_v31 }
 0x586   :  { %v5517_v44 = vadd.f32 %v5516_v34, %v5515_v23  ;;  %v5548_v46 = vrot.slane %v5547_v38, 2  ;;  %v5522_v37 = vrot.slane %v5521_v39, 2  ;;  %v5553_v48 = vadd.f32 %v5552_v41, %v5543_v26 }
 0x587   :  { %v5659_v53 = vadd.f32 %v5658_v18, %v9090_v30  ;;  %v5690_v28 = vrot.slane %v5686_v42, 4  ;;  %v5664_v13 = vrot.slane %v9096_v20, 4  ;;  %v5687_v54 = vmul.f32 %v9096_v20, %v9096_v20 }
 0x588   :  { %v5518_v50 = vrot.slane %v5517_v44, 1  ;;  %v5549_v52 = vadd.f32 %v5548_v46, %v5547_v38  ;;  %v5523_v36 = vadd.f32 %v5522_v37, %v5521_v39  ;;  %v5554_v12 = vrot.slane %v5553_v48, 2 }
 0x589   :  { %v5660_v51 = vrot.slane %v5659_v53, 2  ;;  %v5691_v56 = vadd.f32 %v5690_v28, %v5686_v42  ;;  %v5665_v58 = vadd.f32 %v5664_v13, %v9096_v20  ;;  %v5696_v33 = vrot.slane %v5687_v54, 4 }
 0x58a   :  { %v5519_v59 = vadd.f32 %v5518_v50, %v5517_v44  ;;  %v5550_v57 = vrot.slane %v5549_v52, 1  ;;  %v5524_v61 = vrot.slane %v5523_v36, 1  ;;  %v5555_v27 = vadd.f32 %v5554_v12, %v5553_v48 }
 0x58b   :  { %v5661_v62 = vadd.f32 %v5660_v51, %v5659_v53  ;;  %v5692_v49 = vrot.slane %v5691_v56, 2  ;;  %v5666_v63 = vrot.slane %v5665_v58, 2  ;;  %v5697_v0 = vadd.f32 %v5696_v33, %v5687_v54 }
 0x58c   :  { %v5538_v2 = vmul.f32 0.125, %v5519_v59  ;;  %v5551_v1 = vadd.f32 %v5550_v57, %v5549_v52  ;;  %v5525_v7 = vadd.f32 %v5524_v61, %v5523_v36  ;;  %v5556_v3 = vrot.slane %v5555_v27, 1 }
 0x58d   :  { %v5662_v60 = vrot.slane %v5661_v62, 1  ;;  %v5693_v47 = vadd.f32 %v5692_v49, %v5691_v56  ;;  %v5667_v40 = vadd.f32 %v5666_v63, %v5665_v58  ;;  %v5698_v43 = vrot.slane %v5697_v0, 2 }
 0x58e   :  { %v5570_v55 = vmul.f32 0.125, %v5551_v1  ;;  %v5574_v35 = vmul.f32 %v5538_v2, %v5538_v2  ;;  %v5539_v8 = vmul.f32 0.125, %v5525_v7  ;;  %v5557_v25 = vadd.f32 %v5556_v3, %v5555_v27 }
 0x58f   :  { %v5663_v14 = vadd.f32 %v5662_v60, %v5661_v62  ;;  %v5694_v5 = vrot.slane %v5693_v47, 1  ;;  %v5668_v15 = vrot.slane %v5667_v40, 1  ;;  %v5699_v16 = vadd.f32 %v5698_v43, %v5697_v0 }
 0x590   :  { %v5578_v9 = vsub.f32 %v5570_v55, %v5574_v35  ;;  %v5571_v23 = vmul.f32 0.125, %v5557_v25  ;;  %v5575_v4 = vmul.f32 %v5539_v8, %v5539_v8  ;;  %v9105_v56 = vsub.s32 5, %v8822_v21 }
 0x591   :  { %v5682_v24 = vmul.f32 0.125, %v5663_v14  ;;  %v5695_v26 = vadd.f32 %v5694_v5, %v5693_v47  ;;  %v5669_v6 = vadd.f32 %v5668_v15, %v5667_v40  ;;  %v5700_v31 = vrot.slane %v5699_v16, 1 }
 0x592   :  { %v5582_v34 = vmax.f32 %v5578_v9, 0.0  ;;  %v5579_v38 = vsub.f32 %v5571_v23, %v5575_v4  ;;  %v9110_v49 = vsub.s32 6, %v8822_v21 }
 0x593   :  { %v5714_v39 = vmul.f32 0.125, %v5695_v26  ;;  %v5718_v41 = vmul.f32 %v5682_v24, %v5682_v24  ;;  %v5683_v18 = vmul.f32 0.125, %v5669_v6  ;;  %v5701_v42 = vadd.f32 %v5700_v31, %v5699_v16 }
 0x594   :  { %v5586_v44 = vadd.f32 1e-05, %v5582_v34  ;;  %v5583_v46 = vmax.f32 %v5579_v38, 0.0  ;;  %v5462_v38 = vpop.f32.mrf.mxu0 }
 0x595   :  { %v5722_v37 = vsub.f32 %v5714_v39, %v5718_v41  ;;  %v5715_v48 = vmul.f32 0.125, %v5701_v42  ;;  %v5719_v53 = vmul.f32 %v5683_v18, %v5683_v18 }
 0x596   :  { %8404 = vrsqrt.f32 %v5586_v44  ;;  %v5587_v28 = vadd.f32 1e-05, %v5583_v46  ;;  %v5464_v39 = vpop.f32.mrf.mxu0 }
 0x597   :  { %v5726_v13 = vmax.f32 %v5722_v37, 0.0  ;;  %v5723_v54 = vsub.f32 %v5715_v48, %v5719_v53 }
 0x598   :  { %8406 = vrsqrt.f32 %v5587_v28 }
 0x599   :  { %v5730_v50 = vadd.f32 1e-05, %v5726_v13  ;;  %v5727_v52 = vmax.f32 %v5723_v54, 0.0 }
 0x59b   :  { %8408 = vrsqrt.f32 %v5730_v50  ;;  %v5731_v36 = vadd.f32 1e-05, %v5727_v52 }
 0x59d   :  { %8410 = vrsqrt.f32 %v5731_v36 }
 0x5a3   :  { %v8405_v12 = vpop.eup %8404 }
 0x5a4   :  { %v5594_v51 = vmul.f32 %v8973_v19, %v8405_v12 }
 0x5a5   :  { %v8407_v58 = vpop.eup %8406 }
 0x5a6   :  { %v5598_v33 = vmul.f32 %v5594_v51, %v5538_v2  ;;  %v5595_v59 = vmul.f32 %v8976_v22, %v8407_v58  ;;  %v5621_v27 = vrot.slane %v5594_v51, %v9105_v56 }
 0x5a8   :  { %v8409_v57 = vpop.eup %8408  ;;  %v5606_v61 = vrot.slane %v5598_v33, 7  ;;  %v5599_v62 = vmul.f32 %v5595_v59, %v5539_v8  ;;  %v5625_v7 = vrot.slane %v5595_v59, %v9105_v56  ;;  %v5634_v47 = vmul.f32 %v5621_v27, %v9079_v11 }
 0x5a9   :  { %v5738_v63 = vmul.f32 %v8973_v19, %v8409_v57 }
 0x5aa   :  { %v8411_v0 = vpop.eup %8410  ;;  %v5607_v1 = vrot.slane %v5599_v62, 7  ;;  %v5614_v3 = vsub.f32 %v8973_v19, %v5606_v61  ;;  %v5635_v25 = vmul.f32 %v5625_v7, %v9084_v17 }
 0x5ab   :  { %v5742_v60 = vmul.f32 %v5738_v63, %v5682_v24  ;;  %v5739_v2 = vmul.f32 %v8976_v22, %v8411_v0  ;;  %v5765_v35 = vrot.slane %v5738_v63, %v9105_v56 }
 0x5ac   :  { %v5615_v40 = vsub.f32 %v8976_v22, %v5607_v1  ;;  %v5641_v43 = vrot.slane %v5614_v3, %v9110_v49 }
 0x5ad   :  { %v5750_v55 = vrot.slane %v5742_v60, 7  ;;  %v5743_v8 = vmul.f32 %v5739_v2, %v5683_v18  ;;  %v5769_v16 = vrot.slane %v5739_v2, %v9105_v56  ;;  %v5778_v11 = vmul.f32 %v5765_v35, %v9090_v30  ;;  %v5466_v18 = vpop.f32.mrf.mxu0 }
 0x5ae   :  { %v5645_v14 = vrot.slane %v5615_v40, %v9110_v49  ;;  %v5654_v5 = vadd.f32 %v5641_v43, %v5634_v47 }
 0x5af   :  { %v5751_v15 = vrot.slane %v5743_v8, 7  ;;  %v5758_v9 = vsub.f32 %v8973_v19, %v5750_v55  ;;  %v5779_v26 = vmul.f32 %v5769_v16, %v9096_v20  ;;  %v5468_v50 = vpop.f32.mrf.mxu0 }
 0x5b0   :  { %v5655_v23 = vadd.f32 %v5645_v14, %v5635_v25  ;;  %5802 = vst [vmem:[#allocation18] sm:$0xff] %v5654_v5 }
 0x5b1   :  { %v5759_v4 = vsub.f32 %v8976_v22, %v5751_v15  ;;  %v5785_v24 = vrot.slane %v5758_v9, %v9110_v49 }
 0x5b2   :  { %5803 = vst [vmem:[#allocation18 + $0x8] sm:$0xff] %v5655_v23 }
 0x5b3   :  { %v5789_v17 = vrot.slane %v5759_v4, %v9110_v49  ;;  %v5798_v6 = vadd.f32 %v5785_v24, %v5778_v11 }
 0x5b5   :  { %v5799_v31 = vadd.f32 %v5789_v17, %v5779_v26  ;;  %5806 = vst [vmem:[#allocation18 + $0x20] sm:$0xff] %v5798_v6  ;;  %v5810_v19 = vpack.c.bf16 %v5798_v6, %v5654_v5 }
 0x5b7   :  { %5807 = vst [vmem:[#allocation18 + $0x28] sm:$0xff] %v5799_v31  ;;  %v5811_v34 = vpack.c.bf16 %v5799_v31, %v5655_v23 }
 0x5b9   :  { %6102 = vmatprep.mubr.bf16.mxu0 %v5811_v34 }
 0x5ba   :  { %6103 = vmatmul.mubr.bf16.vlgmr.msra.gmra.mxu0 %v5810_v19 }
 0x5bd   :  { %v5505_v30 = vpop.f32.mrf.mxu1 }
 0x5be   :  { %v9129_v41 = vadd.f32 %v5505_v30, %v5462_v38 }
 0x5bf   :  { %v5507_v22 = vpop.f32.mrf.mxu1 }
 0x5c0   :  { %v5526_v42 = vrot.slane %v9129_v41, 4  ;;  %v5544_v20 = vmul.f32 %v9129_v41, %v9129_v41  ;;  %v9134_v44 = vadd.f32 %v5507_v22, %v5464_v39 }
 0x5c1   :  { %v5509_v46 = vpop.f32.mrf.mxu1 }
 0x5c2   :  { %v5527_v37 = vadd.f32 %v5526_v42, %v9129_v41  ;;  %v5558_v48 = vrot.slane %v5544_v20, 4  ;;  %v5532_v53 = vrot.slane %v9134_v44, 4  ;;  %v5545_v28 = vmul.f32 %v9134_v44, %v9134_v44 }
 0x5c3   :  { %v9140_v13 = vadd.f32 %v5509_v46, %v5466_v18  ;;  %v5511_v54 = vpop.f32.mrf.mxu1 }
 0x5c4   :  { %v5528_v52 = vrot.slane %v5527_v37, 2  ;;  %v5559_v36 = vadd.f32 %v5558_v48, %v5544_v20  ;;  %v5533_v12 = vadd.f32 %v5532_v53, %v9134_v44  ;;  %v5564_v51 = vrot.slane %v5545_v28, 4 }
 0x5c5   :  { %v5670_v58 = vrot.slane %v9140_v13, 4  ;;  %v5688_v33 = vmul.f32 %v9140_v13, %v9140_v13  ;;  %v9146_v59 = vadd.f32 %v5511_v54, %v5468_v50 }
 0x5c6   :  { %v5529_v57 = vadd.f32 %v5528_v52, %v5527_v37  ;;  %v5560_v61 = vrot.slane %v5559_v36, 2  ;;  %v5534_v27 = vrot.slane %v5533_v12, 2  ;;  %v5565_v62 = vadd.f32 %v5564_v51, %v5545_v28 }
 0x5c7   :  { %v5671_v63 = vadd.f32 %v5670_v58, %v9140_v13  ;;  %v5702_v0 = vrot.slane %v5688_v33, 4  ;;  %v5676_v1 = vrot.slane %v9146_v59, 4  ;;  %v5689_v7 = vmul.f32 %v9146_v59, %v9146_v59 }
 0x5c8   :  { %v5530_v3 = vrot.slane %v5529_v57, 1  ;;  %v5561_v60 = vadd.f32 %v5560_v61, %v5559_v36  ;;  %v5535_v2 = vadd.f32 %v5534_v27, %v5533_v12  ;;  %v5566_v47 = vrot.slane %v5565_v62, 2 }
 0x5c9   :  { %v5672_v40 = vrot.slane %v5671_v63, 2  ;;  %v5703_v43 = vadd.f32 %v5702_v0, %v5688_v33  ;;  %v5677_v55 = vadd.f32 %v5676_v1, %v9146_v59  ;;  %v5708_v35 = vrot.slane %v5689_v7, 4 }
 0x5ca   :  { %v5531_v8 = vadd.f32 %v5530_v3, %v5529_v57  ;;  %v5562_v25 = vrot.slane %v5561_v60, 1  ;;  %v5536_v14 = vrot.slane %v5535_v2, 1  ;;  %v5567_v5 = vadd.f32 %v5566_v47, %v5565_v62 }
 0x5cb   :  { %v5673_v15 = vadd.f32 %v5672_v40, %v5671_v63  ;;  %v5704_v16 = vrot.slane %v5703_v43, 2  ;;  %v5678_v9 = vrot.slane %v5677_v55, 2  ;;  %v5709_v23 = vadd.f32 %v5708_v35, %v5689_v7 }
 0x5cc   :  { %v5540_v11 = vmul.f32 0.125, %v5531_v8  ;;  %v5563_v4 = vadd.f32 %v5562_v25, %v5561_v60  ;;  %v5537_v24 = vadd.f32 %v5536_v14, %v5535_v2  ;;  %v5568_v26 = vrot.slane %v5567_v5, 1 }
 0x5cd   :  { %v5674_v17 = vrot.slane %v5673_v15, 1  ;;  %v5705_v6 = vadd.f32 %v5704_v16, %v5703_v43  ;;  %v5679_v31 = vadd.f32 %v5678_v9, %v5677_v55  ;;  %v5710_v34 = vrot.slane %v5709_v23, 2 }
 0x5ce   :  { %v5572_v38 = vmul.f32 0.125, %v5563_v4  ;;  %v5576_v19 = vmul.f32 %v5540_v11, %v5540_v11  ;;  %v5541_v39 = vmul.f32 0.125, %v5537_v24  ;;  %v5569_v30 = vadd.f32 %v5568_v26, %v5567_v5 }
 0x5cf   :  { %v5675_v22 = vadd.f32 %v5674_v17, %v5673_v15  ;;  %v5706_v18 = vrot.slane %v5705_v6, 1  ;;  %v5680_v42 = vrot.slane %v5679_v31, 1  ;;  %v5711_v20 = vadd.f32 %v5710_v34, %v5709_v23 }
 0x5d0   :  { %v5580_v46 = vsub.f32 %v5572_v38, %v5576_v19  ;;  %v5573_v37 = vmul.f32 0.125, %v5569_v30  ;;  %v5577_v48 = vmul.f32 %v5541_v39, %v5541_v39 }
 0x5d1   :  { %v5684_v53 = vmul.f32 0.125, %v5675_v22  ;;  %v5707_v28 = vadd.f32 %v5706_v18, %v5705_v6  ;;  %v5681_v54 = vadd.f32 %v5680_v42, %v5679_v31  ;;  %v5712_v50 = vrot.slane %v5711_v20, 1 }
 0x5d2   :  { %v5584_v52 = vmax.f32 %v5580_v46, 0.0  ;;  %v5581_v36 = vsub.f32 %v5573_v37, %v5577_v48 }
 0x5d3   :  { %v5716_v12 = vmul.f32 0.125, %v5707_v28  ;;  %v5720_v51 = vmul.f32 %v5684_v53, %v5684_v53  ;;  %v5685_v58 = vmul.f32 0.125, %v5681_v54  ;;  %v5713_v33 = vadd.f32 %v5712_v50, %v5711_v20  ;;  %v8329_v50 = vld [vmem:[#allocation14 + $0xec] ss:$16 sps:$4 sm:$0xff]  }
 0x5d4   :  { %v5588_v57 = vadd.f32 1e-05, %v5584_v52  ;;  %v5585_v61 = vmax.f32 %v5581_v36, 0.0  ;;  %v8327_v52 = vld [vmem:[#allocation14 + $0xe8] ss:$16 sps:$4 sm:$0xff]   ;;  %6478 = vmatprep.subr.bf16.mxu1 %v8329_v50 }
 0x5d5   :  { %v5724_v27 = vsub.f32 %v5716_v12, %v5720_v51  ;;  %v5717_v62 = vmul.f32 0.125, %v5713_v33  ;;  %v5721_v63 = vmul.f32 %v5685_v58, %v5685_v58  ;;  %v8330_v36 = vld [vmem:[#allocation14 + $0xc0] ss:$16 sps:$4 sm:$0xff]   ;;  %v8338_v12 = vld [vmem:[#allocation14 + $0xa4] ss:$16 sps:$4 sm:$0xff]  }
 0x5d6   :  { %8412 = vrsqrt.f32 %v5588_v57  ;;  %v5589_v0 = vadd.f32 1e-05, %v5585_v61  ;;  %v8341_v51 = vld [vmem:[#allocation14 + $0xac] ss:$16 sps:$4 sm:$0xff]   ;;  %v8339_v33 = vld [vmem:[#allocation14 + $0xa8] ss:$16 sps:$4 sm:$0xff]  }
 0x5d7   :  { %v5728_v1 = vmax.f32 %v5724_v27, 0.0  ;;  %v5725_v7 = vsub.f32 %v5717_v62, %v5721_v63  ;;  %v8344_v57 = vld [vmem:[#allocation14 + $0x84] ss:$16 sps:$4 sm:$0xff]   ;;  %v8347_v61 = vld [vmem:[#allocation14 + $0x8c] ss:$16 sps:$4 sm:$0xff]  }
 0x5d8   :  { %8414 = vrsqrt.f32 %v5589_v0  ;;  %v8342_v27 = vld [vmem:[#allocation14 + $0x80] ss:$16 sps:$4 sm:$0xff]   ;;  %v8345_v62 = vld [vmem:[#allocation14 + $0x88] ss:$16 sps:$4 sm:$0xff]   ;;  %v8350_v63 = vld [vmem:[#allocation14 + $0x64] ss:$16 sps:$4 sm:$0xff]  }
 0x5d9   :  { %v5732_v3 = vadd.f32 1e-05, %v5728_v1  ;;  %v5729_v60 = vmax.f32 %v5725_v7, 0.0  ;;  %v8353_v0 = vld [vmem:[#allocation14 + $0x6c] ss:$16 sps:$4 sm:$0xff]  }
 0x5da   :  { %v8348_v1 = vld [vmem:[#allocation14 + $0x60] ss:$16 sps:$4 sm:$0xff]   ;;  %v8351_v7 = vld [vmem:[#allocation14 + $0x68] ss:$16 sps:$4 sm:$0xff]  }
 0x5db   :  { %8416 = vrsqrt.f32 %v5732_v3  ;;  %v5733_v2 = vadd.f32 1e-05, %v5729_v60  ;;  %v8356_v3 = vld [vmem:[#allocation14 + $0x44] ss:$16 sps:$4 sm:$0xff]   ;;  %v8359_v60 = vld [vmem:[#allocation14 + $0x4c] ss:$16 sps:$4 sm:$0xff]  }
 0x5dd   :  { %8418 = vrsqrt.f32 %v5733_v2  ;;  %v8354_v2 = vld [vmem:[#allocation14 + $0x40] ss:$16 sps:$4 sm:$0xff]  }
 0x5e3   :  { %v8413_v47 = vpop.eup %8412 }
 0x5e4   :  { %v5596_v40 = vmul.f32 %v9046_v10, %v8413_v47  ;;  %v8357_v47 = vld [vmem:[#allocation14 + $0x48] ss:$16 sps:$4 sm:$0xff]  }
 0x5e5   :  { %v8415_v43 = vpop.eup %8414 }
 0x5e6   :  { %v5600_v55 = vmul.f32 %v5596_v40, %v5540_v11  ;;  %v5597_v35 = vmul.f32 %v9050_v45, %v8415_v43  ;;  %v5629_v14 = vrot.slane %v5596_v40, %v9105_v56  ;;  %v8362_v40 = vld [vmem:[#allocation14 + $0x24] ss:$16 sps:$4 sm:$0xff]   ;;  %v8360_v43 = vld [vmem:[#allocation14 + $0x20] ss:$16 sps:$4 sm:$0xff]  }
 0x5e8   :  { %v8417_v8 = vpop.eup %8416  ;;  %v5608_v25 = vrot.slane %v5600_v55, 7  ;;  %v5601_v5 = vmul.f32 %v5597_v35, %v5541_v39  ;;  %v5633_v23 = vrot.slane %v5597_v35, %v9105_v56  ;;  %v5636_v11 = vmul.f32 %v5629_v14, %v9129_v41  ;;  %v8363_v55 = vld [vmem:[#allocation14 + $0x28] ss:$16 sps:$4 sm:$0xff]   ;;  %v8365_v35 = vld [vmem:[#allocation14 + $0x2c] ss:$16 sps:$4 sm:$0xff]  }
 0x5e9   :  { %v5740_v15 = vmul.f32 %v9046_v10, %v8417_v8  ;;  %v8368_v8 = vld [vmem:[#allocation14 + $0x4] ss:$16 sps:$4 sm:$0xff]   ;;  %v8683_v14 = vmov 0  }
 0x5ea   :  { %v8419_v16 = vpop.eup %8418  ;;  %v5609_v9 = vrot.slane %v5601_v5, 7  ;;  %v5616_v4 = vsub.f32 %v9046_v10, %v5608_v25  ;;  %v5637_v19 = vmul.f32 %v5633_v23, %v9134_v44  ;;  %v8371_v25 = vld [vmem:[#allocation14 + $0xc] ss:$16 sps:$4 sm:$0xff]   ;;  %6467 = vmatprep.mubr.bf16.mxu0 %v8683_v14  ;;  %v8366_v5 = vld [vmem:[#allocation14] ss:$16 sps:$4 sm:$0xff]  }
 0x5eb   :  { %v5744_v24 = vmul.f32 %v5740_v15, %v5684_v53  ;;  %v5741_v26 = vmul.f32 %v9050_v45, %v8419_v16  ;;  %v5773_v34 = vrot.slane %v5740_v15, %v9105_v56  ;;  %v8369_v15 = vld [vmem:[#allocation14 + $0x8] ss:$16 sps:$4 sm:$0xff]  }
 0x5ec   :  { %v5617_v17 = vsub.f32 %v9050_v45, %v5609_v9  ;;  %v5649_v6 = vrot.slane %v5616_v4, %v9110_v49 }
 0x5ed   :  { %v5752_v31 = vrot.slane %v5744_v24, 7  ;;  %v5745_v38 = vmul.f32 %v5741_v26, %v5685_v58  ;;  %v5777_v18 = vrot.slane %v5741_v26, %v9105_v56  ;;  %v5780_v41 = vmul.f32 %v5773_v34, %v9140_v13  ;;  %v8324_v13 = vld [vmem:[#allocation14 + $0xe0] ss:$16 sps:$4 sm:$0xff]  }
 0x5ee   :  { %v5653_v39 = vrot.slane %v5617_v17, %v9110_v49  ;;  %v5656_v30 = vadd.f32 %v5649_v6, %v5636_v11  ;;  %v8336_v58 = vld [vmem:[#allocation14 + $0xa0] ss:$16 sps:$4 sm:$0xff]  }
 0x5ef   :  { %v5753_v22 = vrot.slane %v5745_v38, 7  ;;  %v5760_v42 = vsub.f32 %v9046_v10, %v5752_v31  ;;  %v5781_v48 = vmul.f32 %v5777_v18, %v9146_v59  ;;  %v8326_v10 = vld [vmem:[#allocation14 + $0xe4] ss:$16 sps:$4 sm:$0xff]   ;;  %v8335_v59 = vld [vmem:[#allocation14 + $0xcc] ss:$16 sps:$4 sm:$0xff]  }
 0x5f0   :  { %v5657_v20 = vadd.f32 %v5653_v39, %v5637_v19  ;;  %5804 = vst [vmem:[#allocation18 + $0x10] sm:$0xff] %v5656_v30  ;;  %6435 = vmatprep.subr.bf16.mxu0 %v8326_v10 }
 0x5f1   :  { %v5761_v46 = vsub.f32 %v9050_v45, %v5753_v22  ;;  %v5793_v37 = vrot.slane %v5760_v42, %v9110_v49  ;;  %6436 = vmatpush1.bf16.msra.mxu0 %v8324_v13  ;;  %v8332_v45 = vld [vmem:[#allocation14 + $0xc4] ss:$16 sps:$4 sm:$0xff]  }
 0x5f2   :  { %5805 = vst [vmem:[#allocation18 + $0x18] sm:$0xff] %v5657_v20  ;;  %6437 = vmatprep.subr.bf16.mxu0 %v8332_v45 }
 0x5f3   :  { %v5797_v44 = vrot.slane %v5761_v46, %v9110_v49  ;;  %v5800_v53 = vadd.f32 %v5793_v37, %v5780_v41  ;;  %v8333_v49 = vld [vmem:[#allocation14 + $0xc8] ss:$16 sps:$4 sm:$0xff]  }
 0x5f5   :  { %v5801_v28 = vadd.f32 %v5797_v44, %v5781_v48  ;;  %5808 = vst [vmem:[#allocation18 + $0x30] sm:$0xff] %v5800_v53  ;;  %v5812_v54 = vpack.c.bf16 %v5800_v53, %v5656_v30  ;;  %6438 = vmatpush1.bf16.msra.mxu0 %v8330_v36 }
 0x5f6   :  { %6439 = vmatprep.subr.bf16.mxu0 %v8338_v12 }
 0x5f7   :  { %5809 = vst [vmem:[#allocation18 + $0x38] sm:$0xff] %v5801_v28  ;;  %v5813_v56 = vpack.c.bf16 %v5801_v28, %v5657_v20 }
 0x5f9   :  { %6143 = vmatprep.mubr.bf16.mxu1 %v5813_v56  ;;  %6440 = vmatpush1.bf16.msra.mxu0 %v8336_v58 }
 0x5fa   :  { %6144 = vmatmul.mubr.bf16.vlgmr.msra.gmra.mxu1 %v5812_v54  ;;  %6441 = vmatprep.subr.bf16.mxu0 %v8344_v57 }
 0x5fb   :  { %6479 = vmatpush1.bf16.msra.mxu1 %v8327_v52  ;;  %6510 = vmatprep.mubr.bf16.mxu1 %v8683_v14 }
 0x5fc   :  { %6480 = vmatprep.subr.bf16.mxu1 %v8335_v59 }
 0x5fd   :  { %6442 = vmatpush1.bf16.msra.mxu0 %v8342_v27 }
 0x5fe   :  { %6443 = vmatprep.subr.bf16.mxu0 %v8350_v63 }
 0x5ff   :  { %6481 = vmatpush1.bf16.msra.mxu1 %v8333_v49 }
 0x600   :  { %6482 = vmatprep.subr.bf16.mxu1 %v8341_v51 }
 0x601   :  { %6444 = vmatpush1.bf16.msra.mxu0 %v8348_v1 }
 0x602   :  { %6445 = vmatprep.subr.bf16.mxu0 %v8356_v3 }
 0x603   :  { %6483 = vmatpush1.bf16.msra.mxu1 %v8339_v33 }
 0x604   :  { %6484 = vmatprep.subr.bf16.mxu1 %v8347_v61 }
 0x605   :  { %6446 = vmatpush1.bf16.msra.mxu0 %v8354_v2 }
 0x606   :  { %6447 = vmatprep.subr.bf16.mxu0 %v8362_v40  ;;  %v160_v40 = vld [vmem:[%s9202_s9] sm:$0x3]  ;;  %s8684_s9 = smov [#allocation18]  }
 0x607   :  { %6485 = vmatpush1.bf16.msra.mxu1 %v8345_v62  ;;  %s6546_s19 = sshll.u32 %s8684_s9, 4  ;;  %s6547_s19 = int_to_ptr.vmem [resolvable:$true] %s6546_s19 }
 0x608   :  { %6486 = vmatprep.subr.bf16.mxu1 %v8353_v0  ;;  %s8616_s5 = scalar_lea.vmem %s6547_s19, 1024  ;;  %p8621_p4 = scmp.lt.s32.totalorder %s6547_s19, %s6547_s19 }
 0x609   :  { %6448 = vmatpush1.bf16.msra.mxu0 %v8360_v43  ;;  %p8617_p3 = scmp.ne.s32.totalorder %s6547_s19, %s8616_s5  ;;  %p8622_p5 = scmp.lt.s32.totalorder %s8616_s5, %s8616_s5 }
 0x60a   :  { %6449 = vmatprep.subr.bf16.mxu0 %v8368_v8 }
 0x60b   :  { %6487 = vmatpush1.bf16.msra.mxu1 %v8351_v7  ;;  %p8623_p6 = por %p8622_p5, %p8621_p4 }
 0x60c   :  { %6488 = vmatprep.subr.bf16.mxu1 %v8359_v60 }
 0x60d   :  { %6450 = vmatpush1.bf16.msra.mxu0 %v8366_v5  ;;  %p8624_p7 = pnand %p8623_p6, %p8617_p3 }
 0x60f   :  { %6489 = vmatpush1.bf16.msra.mxu1 %v8357_v47 }
 0x610   :  { %6490 = vmatprep.subr.bf16.mxu1 %v8365_v35 }
 0x613   :  { %6491 = vmatpush1.bf16.msra.mxu1 %v8363_v55 }
 0x614   :  { %6492 = vmatprep.subr.bf16.mxu1 %v8371_v25 }
 0x617   :  { %6493 = vmatpush1.bf16.msra.mxu1 %v8369_v15 }
 0x67a   :  { %v7286_v16 = vpop.f32.mrf.mxu0 }
 0x67c   :  { %v7287_v9 = vpop.f32.mrf.mxu0 }
 0x67d   :  { %v7288_v26 = vadd.f32 %v7287_v9, %v7286_v16 }
 0x67e   :  { %v7289_v23 = vpop.f32.mrf.mxu0 }
 0x680   :  { %v7290_v17 = vpop.f32.mrf.mxu0 }
 0x681   :  { %v7291_v38 = vadd.f32 %v7290_v17, %v7289_v23 }
 0x6ba   :  { %v7308_v4 = vpop.f32.mrf.mxu1 }
 0x6bc   :  { %v7309_v24 = vpop.f32.mrf.mxu1 }
 0x6bd   :  { %v7310_v11 = vadd.f32 %v7309_v24, %v7308_v4 }
 0x6be   :  { %v7311_v6 = vpop.f32.mrf.mxu1 }
 0x6bf   :  { %v6146_v31 = vadd.f32 %v7310_v11, %v7288_v26 }
 0x6c0   :  { %v7312_v34 = vpop.f32.mrf.mxu1 }
 0x6c1   :  { %v6152_v19 = vrot.slane %v6146_v31, 4  ;;  %v6159_v39 = vmul.f32 %v6146_v31, %v6146_v31  ;;  %v7313_v30 = vadd.f32 %v7312_v34, %v7311_v6 }
 0x6c3   :  { %v6153_v22 = vadd.f32 %v6152_v19, %v6146_v31  ;;  %v6160_v18 = vrot.slane %v6159_v39, 4  ;;  %v6149_v42 = vadd.f32 %v7313_v30, %v7291_v38 }
 0x6c5   :  { %v6154_v20 = vrot.slane %v6153_v22, 2  ;;  %v6161_v41 = vadd.f32 %v6160_v18, %v6159_v39  ;;  %v6189_v46 = vrot.slane %v6149_v42, 4  ;;  %v6196_v37 = vmul.f32 %v6149_v42, %v6149_v42 }
 0x6c7   :  { %v6155_v48 = vadd.f32 %v6154_v20, %v6153_v22  ;;  %v6162_v44 = vrot.slane %v6161_v41, 2  ;;  %v6190_v53 = vadd.f32 %v6189_v46, %v6149_v42  ;;  %v6197_v28 = vrot.slane %v6196_v37, 4 }
 0x6c9   :  { %v6156_v56 = vrot.slane %v6155_v48, 1  ;;  %v6163_v54 = vadd.f32 %v6162_v44, %v6161_v41  ;;  %v6191_v10 = vrot.slane %v6190_v53, 2  ;;  %v6198_v50 = vadd.f32 %v6197_v28, %v6196_v37 }
 0x6cb   :  { %v6157_v13 = vadd.f32 %v6156_v56, %v6155_v48  ;;  %v6164_v52 = vrot.slane %v6163_v54, 1  ;;  %v6192_v45 = vadd.f32 %v6191_v10, %v6190_v53  ;;  %v6199_v59 = vrot.slane %v6198_v50, 2 }
 0x6cd   :  { %v6158_v36 = vmul.f32 0.125, %v6157_v13  ;;  %v6165_v49 = vadd.f32 %v6164_v52, %v6163_v54  ;;  %v6193_v12 = vrot.slane %v6192_v45, 1  ;;  %v6200_v51 = vadd.f32 %v6199_v59, %v6198_v50 }
 0x6cf   :  { %v6166_v58 = vmul.f32 0.125, %v6165_v49  ;;  %v6167_v33 = vmul.f32 %v6158_v36, %v6158_v36  ;;  %v6194_v57 = vadd.f32 %v6193_v12, %v6192_v45  ;;  %v6201_v61 = vrot.slane %v6200_v51, 1 }
 0x6d1   :  { %v6168_v27 = vsub.f32 %v6166_v58, %v6167_v33  ;;  %v6195_v62 = vmul.f32 0.125, %v6194_v57  ;;  %v6202_v63 = vadd.f32 %v6201_v61, %v6200_v51 }
 0x6d3   :  { %v6169_v0 = vmax.f32 %v6168_v27, 0.0  ;;  %v6203_v1 = vmul.f32 0.125, %v6202_v63  ;;  %v6204_v7 = vmul.f32 %v6195_v62, %v6195_v62 }
 0x6d5   :  { %v6170_v3 = vadd.f32 1e-05, %v6169_v0  ;;  %v6205_v60 = vsub.f32 %v6203_v1, %v6204_v7 }
 0x6d7   :  { %8420 = vrsqrt.f32 %v6170_v3  ;;  %v6206_v2 = vmax.f32 %v6205_v60, 0.0 }
 0x6d9   :  { %v6207_v47 = vadd.f32 1e-05, %v6206_v2 }
 0x6db   :  { %8422 = vrsqrt.f32 %v6207_v47 }
 0x6e4   :  { %v8421_v43 = vpop.eup %8420 }
 0x6e5   :  { %v6172_v55 = vmul.f32 %v8421_v43, %v160_v40 }
 0x6e7   :  { %v6173_v35 = vmul.f32 %v6172_v55, %v6158_v36  ;;  %v6181_v5 = vrot.slane %v6172_v55, %v8825_v32 }
 0x6e8   :  { %v8423_v8 = vpop.eup %8422 }
 0x6e9   :  { %v6209_v25 = vmul.f32 %v8423_v8, %v160_v40  ;;  %v6175_v14 = vrot.slane %v6173_v35, 7  ;;  %v6182_v24 = vmul.f32 %v6181_v5, %v6146_v31 }
 0x6eb   :  { %v6177_v15 = vsub.f32 %v160_v40, %v6175_v14  ;;  %v6210_v16 = vmul.f32 %v6209_v25, %v6195_v62  ;;  %v6218_v9 = vrot.slane %v6209_v25, %v8825_v32 }
 0x6ed   :  { %v6186_v23 = vrot.slane %v6177_v15, %v8867_v29  ;;  %v6212_v4 = vrot.slane %v6210_v16, 7  ;;  %v6219_v11 = vmul.f32 %v6218_v9, %v6149_v42 }
 0x6ef   :  { %v6214_v26 = vsub.f32 %v160_v40, %v6212_v4  ;;  %v6187_v17 = vadd.f32 %v6186_v23, %v6182_v24 }
 0x6f1   :  { %v6223_v6 = vrot.slane %v6214_v26, %v8867_v29  ;;  %v6188_v38 = vmax.f32 %v6187_v17, 0.0 }
 0x6f3   :  { %v6224_v34 = vadd.f32 %v6223_v6, %v6219_v11 }
 0x6f5   :  { %v6225_v19 = vmax.f32 %v6224_v34, 0.0 }
 0x6f7   :  { %v6226_v39 = vpack.c.bf16 %v6225_v19, %v6188_v38 }
 0x6f9   :  { %6468 = vmatmul.mubr.bf16.vlgmr.msra.gmra.mxu0 %v6226_v39  ;;  %6511 = vmatmul.mubr.bf16.vlgmr.msra.gmra.mxu1 %v6226_v39 }
 0x6fa   :  { %8627 = shalt.err (!%p8624_p7)
}
 0x6fb   :  { %s8685_s20 = smov 512   ;;  %s8686_s21 = smov 32   ;;  %v6261_v32 = vsub.s32 7, %v8822_v21  ;;  %v8432_v29 = vld [vmem:[#allocation16] sm:$0xff]  ;;  %v8433_v30 = vld [vmem:[#allocation16 + $0x10] sm:$0xff]  ;;  %v8434_v18 = vld [vmem:[#allocation16 + $0x8] sm:$0xff] }
 0x6fc   :  { %6552 = dma.vmem_to_hbm [thread:$0]  %s6547_s19, 1024, %s9204_s11, [#allocation19], %s8685_s20, %s8685_s20, %s8686_s21   ;;  %v8435_v20 = vld [vmem:[#allocation16 + $0x18] sm:$0xff] }
 0x6fd   :  { %v6262_v31 = vrot.slane %v8432_v29, %v6261_v32  ;;  %v6270_v22 = vrot.slane %v8433_v30, %v6261_v32  ;;  %v6266_v42 = vrot.slane %v8434_v18, %v6261_v32  ;;  %v6274_v41 = vrot.slane %v8435_v20, %v6261_v32  ;;  %s8687_s11 = smov [#allocation17]  }
 0x6fe   :  { %s6534_s24 = sshll.u32 %s8687_s11, 4  ;;  %s6535_s24 = int_to_ptr.vmem [resolvable:$true] %s6534_s24 }
 0x6ff   :  { %s8636_s25 = scalar_lea.vmem %s6535_s24, 1024  ;;  %p8641_p9 = scmp.lt.s32.totalorder %s6535_s24, %s6535_s24 }
 0x700   :  { %p8637_p8 = scmp.ne.s32.totalorder %s6535_s24, %s8636_s25  ;;  %p8642_p10 = scmp.lt.s32.totalorder %s8636_s25, %s8636_s25 }
 0x702   :  { %p8643_p11 = por %p8642_p10, %p8641_p9 }
 0x704   :  { %p8644_p12 = pnand %p8643_p11, %p8637_p8 }
 0x7b9   :  { %v6469_v46 = vpop.f32.mrf.mxu0  ;;  %v6512_v37 = vpop.f32.mrf.mxu1 }
 0x7ba   :  { %v6470_v48 = vadd.f32 %v6469_v46, %v6262_v31  ;;  %v6513_v44 = vadd.f32 %v6512_v37, %v6270_v22 }
 0x7bb   :  { %v6471_v53 = vpop.f32.mrf.mxu0  ;;  %v6514_v28 = vpop.f32.mrf.mxu1 }
 0x7bc   :  { %6521 = vst [vmem:[#allocation17] sm:$0xff] %v6470_v48  ;;  %6523 = vst [vmem:[#allocation17 + $0x10] sm:$0xff] %v6513_v44  ;;  %v6472_v56 = vadd.f32 %v6471_v53, %v6266_v42  ;;  %v6515_v54 = vadd.f32 %v6514_v28, %v6274_v41 }
 0x7bd   :  { %v6473_v10 = vpop.f32.mrf.mxu0  ;;  %v6516_v21 = vpop.f32.mrf.mxu1 }
 0x7be   :  { %6522 = vst [vmem:[#allocation17 + $0x8] sm:$0xff] %v6472_v56  ;;  %6524 = vst [vmem:[#allocation17 + $0x18] sm:$0xff] %v6515_v54  ;;  %v6474_v50 = vadd.f32 %v6473_v10, %v6262_v31  ;;  %v6517_v13 = vadd.f32 %v6516_v21, %v6270_v22 }
 0x7bf   :  { %v6475_v52 = vpop.f32.mrf.mxu0  ;;  %v6518_v45 = vpop.f32.mrf.mxu1 }
 0x7c0   :  { %6525 = vst [vmem:[#allocation17 + $0x20] sm:$0xff] %v6474_v50  ;;  %6527 = vst [vmem:[#allocation17 + $0x30] sm:$0xff] %v6517_v13  ;;  %v6476_v59 = vadd.f32 %v6475_v52, %v6266_v42  ;;  %v6519_v36 = vadd.f32 %v6518_v45, %v6274_v41 }
 0x7c2   :  { %6526 = vst [vmem:[#allocation17 + $0x28] sm:$0xff] %v6476_v59  ;;  %6528 = vst [vmem:[#allocation17 + $0x38] sm:$0xff] %v6519_v36 }
 0x7c3   :  { %8647 = shalt.err (!%p8644_p12)
}
 0x7c4   :  { %6540 = dma.vmem_to_hbm [thread:$0]  %s6535_s24, 1024, %s9203_s10, [#allocation4], %s8685_s20, %s8685_s20, %s8686_s21  }
 0x7c5   :  { %8666 = dma.done.wait [#allocation4], 1024  }
 0x7c6   :  { %8667 = vsyncadd [#allocation4], 4294966272 }
 0x7c7   :  { %8668 = dma.done.wait [#allocation19], 1024  }
 0x7c8   :  { %8669 = vsyncadd [#allocation19], 4294966272 }
 0x7c9   :  { %6559 = vsyncpa [#allocation3], 1 }
 0x7ca   :  { %6560 = vsyncpa [#allocation6], 1 }
 0x7cb   :  { %6561 = vsyncpa [#allocation9], 1 }
 0x7cc   :  { %6562 = vsyncpa [#allocation12], 1 }
 0x7cd   :  { %6563 = vsyncpa [#allocation15], 1 }
 0x7ce   :  { %6564 = vsyncpa [#allocation4], 1 }
 0x7cf   :  { %6565 = vsyncpa [#allocation19], 1 }

</bundles_post_ra>
